<compile_context>
chip_gen: v7x
topology: tpu7x:2x2x1
jax: 0.10.0
libtpu: 0.0.40
codegen_flags: <defaults>
</compile_context>

<pallas_src>
import math
import functools

import jax
import jax.numpy as jnp
from jax.experimental import pallas as pl
from jax.experimental.pallas import tpu as pltpu


def _round_up(x, m):
    return (x + m - 1) // m * m


def siren_kernel(x_ref, wt_ref, b_ref, o_ref):
    # x_ref : (tm, k_pad)   input rows (w0 already folded into the weight)
    # wt_ref: (k_pad, tn)   transposed, w0-scaled, zero-padded weight block
    # b_ref : (1, tn)       f32 bias block
    # o_ref : (tm, tn)      output tile
    acc = jnp.dot(x_ref[...], wt_ref[...], preferred_element_type=jnp.float32)
    acc = acc + b_ref[...]
    o_ref[...] = jnp.sin(acc).astype(o_ref.dtype)


def siren_forward(x, weight, bias=None, w0=1.0, *, tm=512,
                  vmem_budget_bytes=40 * 1024 * 1024):
    """Siren layer forward.

    x:      [N, dim_in]
    weight: [dim_out, dim_in]   (PyTorch nn.Linear layout)
    bias:   [dim_out] or None
    Returns [N, dim_out] with x.dtype.
    """
    N, dim_in = x.shape
    dim_out = weight.shape[0]

    # Fold w0 into the weight (in f32, then cast to the matmul operand dtype).
    wt = (jnp.float32(w0) * weight.astype(jnp.float32)).T       # [dim_in, dim_out]
    wt = wt.astype(x.dtype)
    b = jnp.zeros((dim_out,), jnp.float32) if bias is None else bias.astype(jnp.float32)

    # Lane-dense padding of the feature dims.
    k_pad = _round_up(dim_in, 128)
    n_pad = _round_up(dim_out, 128)

    # Output-column tile: largest of {512, 384, 256, 128} dividing n_pad.
    tn = min(n_pad, 512)
    while n_pad % tn:
        tn -= 128

    x_bytes = jnp.dtype(x.dtype).itemsize
    w_bytes = jnp.dtype(wt.dtype).itemsize

    # Row tile: big by default, clamped to N, shrunk to fit the VMEM budget
    # (double-buffered x / out tiles + weight / bias blocks).
    tm_eff = _round_up(max(8, min(tm, _round_up(N, 8))), 8)

    def _footprint(t):
        return 2 * (t * k_pad * x_bytes            # x tile (double buffered)
                    + t * tn * x_bytes             # out tile
                    + k_pad * tn * w_bytes         # weight block
                    + tn * 4)                      # bias block

    while tm_eff > 8 and _footprint(tm_eff) > vmem_budget_bytes:
        tm_eff = _round_up(max(8, tm_eff // 2), 8)

    m_pad = _round_up(N, tm_eff)

    # Zero-pad operands once on the host side of the kernel.
    xp = jnp.pad(x, ((0, m_pad - N), (0, k_pad - dim_in)))
    wtp = jnp.pad(wt, ((0, k_pad - dim_in), (0, n_pad - dim_out)))
    bp = jnp.pad(b, (0, n_pad - dim_out)).reshape(1, n_pad)

    grid = (m_pad // tm_eff, n_pad // tn)

    est_vmem = _footprint(tm_eff)
    vmem_limit = int(min(60 << 20, max(32 << 20, 2 * est_vmem)))

    cost = pl.CostEstimate(
        flops=2 * m_pad * k_pad * n_pad,
        transcendentals=m_pad * n_pad,
        bytes_accessed=(xp.size * x_bytes + wtp.size * w_bytes
                        + bp.size * 4 + m_pad * n_pad * x_bytes),
    )

    out = pl.pallas_call(
        siren_kernel,
        out_shape=jax.ShapeDtypeStruct((m_pad, n_pad), x.dtype),
        grid_spec=pltpu.PrefetchScalarGridSpec(
            num_scalar_prefetch=0,
            grid=grid,
            in_specs=[
                pl.BlockSpec((tm_eff, k_pad), lambda i, j: (i, 0)),
                pl.BlockSpec((k_pad, tn), lambda i, j: (0, j)),
                pl.BlockSpec((1, tn), lambda i, j: (0, j)),
            ],
            out_specs=pl.BlockSpec((tm_eff, tn), lambda i, j: (i, j)),
        ),
        compiler_params=pltpu.CompilerParams(
            dimension_semantics=("parallel", "parallel"),
            vmem_limit_bytes=vmem_limit),
        cost_estimate=cost,
    )(xp, wtp, bp)

    return out[:N, :dim_out]


def init_siren_params(key, dim_in, dim_out, w0=1.0, c=6.0, is_first=False):
    """Deterministic init mirroring Siren.init_ (weight) and nn.Linear default (bias)."""
    kw, kb = jax.random.split(key)
    if is_first:
        w_bound = 1.0 / dim_in
    else:
        w_bound = math.sqrt(c / dim_in) / w0
    weight = jax.random.uniform(kw, (dim_out, dim_in), jnp.float32,
                                minval=-w_bound, maxval=w_bound)
    # nn.Linear default bias init: U(-1/sqrt(fan_in), 1/sqrt(fan_in))
    b_bound = 1.0 / math.sqrt(dim_in)
    bias = jax.random.uniform(kb, (dim_out,), jnp.float32,
                              minval=-b_bound, maxval=b_bound)
    return weight, bias


if __name__ == "__main__":
    key = jax.random.PRNGKey(0)
    k_x, k_p = jax.random.split(key)

    # Small coordinate-MLP style shapes: 256 points, 3-D coords -> 64 features.
    N, dim_in, dim_out = 256, 3, 64
    w0, c, is_first = 30.0, 6.0, False

    x = jax.random.normal(k_x, (N, dim_in), jnp.float32)
    weight, bias = init_siren_params(k_p, dim_in, dim_out, w0=w0, c=c,
                                     is_first=is_first)

    out = siren_forward(x, weight, bias, w0=w0)
    out = jax.block_until_ready(out)

    # Pure-JAX reference (exact f32 matmul) for the PyTorch semantics.
    ref = jnp.sin(jnp.dot(w0 * x, weight.T,
                          precision=jax.lax.Precision.HIGHEST) + bias)
    assert out.shape == (N, dim_out)
    assert jnp.allclose(out, ref, atol=2e-5, rtol=2e-5), "mismatch vs reference"

    print("KERNEL_OK")
</pallas_src>

<mosaic_0001>
module attributes {stable_mosaic.version = 11 : i64} {
  func.func @siren_kernel(%arg0: i32, %arg1: i32, %arg2: memref<256x128xf32, #tpu.memory_space<vmem>>, %arg3: memref<128x128xf32, #tpu.memory_space<vmem>>, %arg4: memref<1x128xf32, #tpu.memory_space<vmem>>, %arg5: memref<256x128xf32, #tpu.memory_space<vmem>>) attributes {dimension_semantics = [#tpu.dimension_semantics<parallel>, #tpu.dimension_semantics<parallel>], iteration_bounds = array<i64: 1, 1>, scalar_prefetch = 0 : i64, scratch_operands = 0 : i64, tpu.core_type = #tpu.core_type<tc>, window_params = [{transform_indices = @transform_0, window_bounds = array<i64: 256, 128>}, {transform_indices = @transform_1, window_bounds = array<i64: 128, 128>}, {transform_indices = @transform_2, window_bounds = array<i64: 1, 128>}, {transform_indices = @transform_3, window_bounds = array<i64: 256, 128>}]} {
    %c0 = arith.constant 0 : index
    %c0_0 = arith.constant 0 : index
    %0 = vector.load %arg2[%c0, %c0_0] : memref<256x128xf32, #tpu.memory_space<vmem>>, vector<256x128xf32>
    %c0_1 = arith.constant 0 : index
    %c0_2 = arith.constant 0 : index
    %1 = vector.load %arg3[%c0_1, %c0_2] : memref<128x128xf32, #tpu.memory_space<vmem>>, vector<128x128xf32>
    %cst = arith.constant dense<0.000000e+00> : vector<256x128xf32>
    %2 = tpu.matmul %0, %1, %cst {dimension_numbers = #tpu.dot_dimension_numbers<[1], [0], [0], [1], [0, 0, 1, 1], [], []>} : vector<256x128xf32>, vector<128x128xf32>, vector<256x128xf32> -> vector<256x128xf32>
    %c0_3 = arith.constant 0 : index
    %c0_4 = arith.constant 0 : index
    %3 = vector.load %arg4[%c0_3, %c0_4] : memref<1x128xf32, #tpu.memory_space<vmem>>, vector<1x128xf32>
    %4 = vector.broadcast %3 : vector<1x128xf32> to vector<256x128xf32>
    %5 = arith.addf %2, %4 : vector<256x128xf32>
    %6 = math.sin %5 : vector<256x128xf32>
    %c0_5 = arith.constant 0 : index
    %c0_6 = arith.constant 0 : index
    %7 = vector.load %arg5[%c0_5, %c0_6] : memref<256x128xf32, #tpu.memory_space<vmem>>, vector<256x128xf32>
    tpu.vector_store %arg5[%c0_5, %c0_6], %6 {strides = array<i32>} : memref<256x128xf32, #tpu.memory_space<vmem>>, vector<256x128xf32>,
    return
  }
  func.func @transform_0(%arg0: i32, %arg1: i32) -> (i32, i32) {
    %c0_i32 = arith.constant 0 : i32
    %c0_i32_0 = arith.constant 0 : i32
    return %arg0, %c0_i32 : i32, i32
  }
  func.func @transform_1(%arg0: i32, %arg1: i32) -> (i32, i32) {
    %c0_i32 = arith.constant 0 : i32
    %c0_i32_0 = arith.constant 0 : i32
    return %c0_i32, %arg1 : i32, i32
  }
  func.func @transform_2(%arg0: i32, %arg1: i32) -> (i32, i32) {
    %c0_i32 = arith.constant 0 : i32
    %c0_i32_0 = arith.constant 0 : i32
    return %c0_i32, %arg1 : i32, i32
  }
  func.func @transform_3(%arg0: i32, %arg1: i32) -> (i32, i32) {
    %c0_i32 = arith.constant 0 : i32
    return %arg0, %arg1 : i32, i32
  }
}

</mosaic_0001>

<bundles_post_ra>
// kernel: tpu_custom_call.1
= control target key start
LH: loop header
LB: loop body
LE: loop exit
PB: predicated region body
PF: predicated region fallthrough
CT: control target
= control target key end

     0   :  { %8 = vsyncpa [#allocation3], 0  ;;  %s7061_s0 = inlined_call_operand.hbm [shape: f32[256,128], index: 0, kind: input, shape index: {}]   ;;  %s7062_s1 = inlined_call_operand.hbm [shape: f32[128,128], index: 1, kind: input, shape index: {}]   ;;  %s7063_s2 = inlined_call_operand.vmem [shape: f32[1,128], index: 2, kind: input, shape index: {}]   ;;  %s7064_s3 = inlined_call_operand.hbm [shape: f32[256,128], index: 3, kind: output, shape index: {}]  }
   0x1   :  { %9 = vsyncpa [#allocation6], 0 }
   0x2   :  { %10 = vsyncpa [#allocation4], 0  ;;  %s4350_s12 = smov [#allocation2]   ;;  %s4278_s16 = scalar_lea.hbm %s7061_s0, 4096 }
   0x3   :  { %s16_s13 = sshll.u32 %s4350_s12, 4  ;;  %p4279_p0 = scmp.ne.s32.totalorder %s7061_s0, %s4278_s16  ;;  %s17_s13 = int_to_ptr.vmem [resolvable:$true] %s16_s13 }
   0x4   :  { %p4282_p1 = scmp.lt.u32.totalorder %s4278_s16, %s7061_s0 }
   0x6   :  { %p4284_p2 = pnand %p4282_p1, %p4279_p0 }
   0x8   :  { %4287 = shalt.err (!%p4284_p2)
}
   0x9   :  { %s4288_s21 = scalar_lea.vmem %s17_s13, 4096  ;;  %p4293_p4 = scmp.lt.s32.totalorder %s17_s13, %s17_s13 }
   0xa   :  { %p4289_p3 = scmp.ne.s32.totalorder %s17_s13, %s4288_s21  ;;  %p4294_p5 = scmp.lt.s32.totalorder %s4288_s21, %s4288_s21 }
   0xc   :  { %p4295_p6 = por %p4294_p5, %p4293_p4 }
   0xe   :  { %p4296_p7 = pnand %p4295_p6, %p4289_p3 }
  0x10   :  { %4299 = shalt.err (!%p4296_p7)
}
  0x11   :  { %s4351_s22 = smov 128   ;;  %s4352_s23 = smov 8  }
  0x12   :  { %22 = dma.hbm_to_vmem [thread:$0]  %s7061_s0, 4096, %s17_s13, [#allocation3], %s4351_s22, %s4351_s22, %s4352_s23  }
  0x13   :  { %s4353_s26 = smov [#allocation5]   ;;  %s4300_s30 = scalar_lea.hbm %s7062_s1, 2048 }
  0x14   :  { %s28_s27 = sshll.u32 %s4353_s26, 4  ;;  %p4301_p8 = scmp.ne.s32.totalorder %s7062_s1, %s4300_s30  ;;  %s29_s27 = int_to_ptr.vmem [resolvable:$true] %s28_s27 }
  0x15   :  { %p4304_p9 = scmp.lt.u32.totalorder %s4300_s30, %s7062_s1 }
  0x17   :  { %p4306_p10 = pnand %p4304_p9, %p4301_p8 }
  0x19   :  { %4309 = shalt.err (!%p4306_p10)
}
  0x1a   :  { %s4310_s8 = scalar_lea.vmem %s29_s27, 2048  ;;  %p4315_p12 = scmp.lt.s32.totalorder %s29_s27, %s29_s27 }
  0x1b   :  { %p4311_p11 = scmp.ne.s32.totalorder %s29_s27, %s4310_s8  ;;  %p4316_p13 = scmp.lt.s32.totalorder %s4310_s8, %s4310_s8 }
  0x1d   :  { %p4317_p0 = por %p4316_p13, %p4315_p12 }
  0x1f   :  { %p4318_p1 = pnand %p4317_p0, %p4311_p11 }
  0x21   :  { %4321 = shalt.err (!%p4318_p1)
}
  0x22   :  { %34 = dma.hbm_to_vmem [thread:$0]  %s7062_s1, 2048, %s29_s27, [#allocation6], %s4351_s22, %s4351_s22, %s4352_s23  }
  0x23   :  { %4344 = dma.done.wait [#allocation3], 4096  }
  0x24   :  { %4345 = vsyncadd [#allocation3], 4294963200 }
  0x25   :  { %4346 = dma.done.wait [#allocation6], 2048  }
  0x26   :  { %4347 = vsyncadd [#allocation6], 4294965248  ;;  %v75_v0 = vld [vmem:[#allocation5] sm:$0xff]  ;;  %v76_v1 = vld [vmem:[#allocation5 + $0x8] sm:$0xff] }
  0x27   :  { %v77_v2 = vld [vmem:[#allocation5 + $0x10] sm:$0xff]  ;;  %v3958_v3 = vpack.c.bf16 %v76_v1, %v75_v0  ;;  %v78_v4 = vld [vmem:[#allocation5 + $0x18] sm:$0xff]  ;;  %v79_v6 = vld [vmem:[#allocation5 + $0x20] sm:$0xff] }
  0x28   :  { %v3962_v5 = vpack.c.bf16 %v78_v4, %v77_v2  ;;  %v80_v7 = vld [vmem:[#allocation5 + $0x28] sm:$0xff]  ;;  %v43_v9 = vld [vmem:[#allocation2] sm:$0xff]  ;;  %v81_v11 = vld [vmem:[#allocation5 + $0x30] sm:$0xff] }
  0x29   :  { %3959 = vmatprep.subr.bf16.mxu0 %v3958_v3  ;;  %3990 = vmatprep.subr.bf16.mxu1 %v3958_v3  ;;  %v3966_v8 = vpack.c.bf16 %v80_v7, %v79_v6  ;;  %v59_v10 = vld [vmem:[#allocation2 + $0x80] sm:$0xff]  ;;  %v82_v12 = vld [vmem:[#allocation5 + $0x38] sm:$0xff]  ;;  %v84_v15 = vld [vmem:[#allocation5 + $0x48] sm:$0xff] }
  0x2a   :  { %3961 = vmatpush3.bf16.msra.mxu0 %v3958_v3  ;;  %3998 = vmatpush3.bf16.msra.mxu1 %v3958_v3  ;;  %v3970_v13 = vpack.c.bf16 %v82_v12, %v81_v11  ;;  %v83_v14 = vld [vmem:[#allocation5 + $0x40] sm:$0xff]  ;;  %v85_v17 = vld [vmem:[#allocation5 + $0x50] sm:$0xff]  ;;  %v86_v18 = vld [vmem:[#allocation5 + $0x58] sm:$0xff] }
  0x2b   :  { %3963 = vmatprep.subr.bf16.mxu0 %v3962_v5  ;;  %3991 = vmatprep.subr.bf16.mxu1 %v3962_v5  ;;  %v3974_v16 = vpack.c.bf16 %v84_v15, %v83_v14  ;;  %v3978_v19 = vpack.c.bf16 %v86_v18, %v85_v17  ;;  %v87_v20 = vld [vmem:[#allocation5 + $0x60] sm:$0xff]  ;;  %v88_v21 = vld [vmem:[#allocation5 + $0x68] sm:$0xff]  ;;  %v89_v23 = vld [vmem:[#allocation5 + $0x70] sm:$0xff] }
  0x2c   :  { %3910 = vmatprep.mubr.f32.mxu0 %v43_v9  ;;  %3934 = vmatprep.mubr.f32.mxu1 %v59_v10  ;;  %v3982_v22 = vpack.c.bf16 %v88_v21, %v87_v20  ;;  %v90_v24 = vld [vmem:[#allocation5 + $0x78] sm:$0xff]  ;;  %v44_v26 = vld [vmem:[#allocation2 + $0x8] sm:$0xff]  ;;  %v45_v28 = vld [vmem:[#allocation2 + $0x10] sm:$0xff] }
  0x2d   :  { %v3986_v25 = vpack.c.bf16 %v90_v24, %v89_v23  ;;  %v60_v27 = vld [vmem:[#allocation2 + $0x88] sm:$0xff]  ;;  %v61_v29 = vld [vmem:[#allocation2 + $0x90] sm:$0xff]  ;;  %v46_v30 = vld [vmem:[#allocation2 + $0x18] sm:$0xff] }
  0x2e   :  { %3965 = vmatpush3.bf16.msra.mxu0 %v3962_v5  ;;  %3999 = vmatpush3.bf16.msra.mxu1 %v3962_v5  ;;  %v62_v31 = vld [vmem:[#allocation2 + $0x98] sm:$0xff]  ;;  %v47_v32 = vld [vmem:[#allocation2 + $0x20] sm:$0xff]  ;;  %v48_v34 = vld [vmem:[#allocation2 + $0x28] sm:$0xff] }
  0x2f   :  { %3967 = vmatprep.subr.bf16.mxu0 %v3966_v8  ;;  %3992 = vmatprep.subr.bf16.mxu1 %v3966_v8  ;;  %v63_v33 = vld [vmem:[#allocation2 + $0xa0] sm:$0xff]  ;;  %v64_v35 = vld [vmem:[#allocation2 + $0xa8] sm:$0xff]  ;;  %v49_v36 = vld [vmem:[#allocation2 + $0x30] sm:$0xff] }
  0x30   :  { %v65_v37 = vld [vmem:[#allocation2 + $0xb0] sm:$0xff]  ;;  %v50_v38 = vld [vmem:[#allocation2 + $0x38] sm:$0xff]  ;;  %v51_v40 = vld [vmem:[#allocation2 + $0x40] sm:$0xff] }
  0x31   :  { %v66_v39 = vld [vmem:[#allocation2 + $0xb8] sm:$0xff]  ;;  %v67_v41 = vld [vmem:[#allocation2 + $0xc0] sm:$0xff]  ;;  %v52_v42 = vld [vmem:[#allocation2 + $0x48] sm:$0xff] }
  0x32   :  { %3969 = vmatpush3.bf16.msra.mxu0 %v3966_v8  ;;  %4000 = vmatpush3.bf16.msra.mxu1 %v3966_v8  ;;  %v68_v43 = vld [vmem:[#allocation2 + $0xc8] sm:$0xff]  ;;  %v53_v44 = vld [vmem:[#allocation2 + $0x50] sm:$0xff]  ;;  %v54_v46 = vld [vmem:[#allocation2 + $0x58] sm:$0xff] }
  0x33   :  { %3971 = vmatprep.subr.bf16.mxu0 %v3970_v13  ;;  %3993 = vmatprep.subr.bf16.mxu1 %v3970_v13  ;;  %v69_v45 = vld [vmem:[#allocation2 + $0xd0] sm:$0xff]  ;;  %v70_v47 = vld [vmem:[#allocation2 + $0xd8] sm:$0xff]  ;;  %v55_v48 = vld [vmem:[#allocation2 + $0x60] sm:$0xff] }
  0x34   :  { %v71_v49 = vld [vmem:[#allocation2 + $0xe0] sm:$0xff]  ;;  %v56_v50 = vld [vmem:[#allocation2 + $0x68] sm:$0xff]  ;;  %v57_v52 = vld [vmem:[#allocation2 + $0x70] sm:$0xff] }
  0x35   :  { %v72_v51 = vld [vmem:[#allocation2 + $0xe8] sm:$0xff]  ;;  %v73_v53 = vld [vmem:[#allocation2 + $0xf0] sm:$0xff]  ;;  %v58_v54 = vld [vmem:[#allocation2 + $0x78] sm:$0xff] }
  0x36   :  { %3973 = vmatpush3.bf16.msra.mxu0 %v3970_v13  ;;  %4001 = vmatpush3.bf16.msra.mxu1 %v3970_v13  ;;  %v74_v55 = vld [vmem:[#allocation2 + $0xf8] sm:$0xff]  ;;  %v4414_v56 = vld [vmem:[%s7063_s2] ss:$0 sm:$0xff] }
  0x37   :  { %3975 = vmatprep.subr.bf16.mxu0 %v3974_v16  ;;  %3994 = vmatprep.subr.bf16.mxu1 %v3974_v16 }
  0x3a   :  { %3977 = vmatpush3.bf16.msra.mxu0 %v3974_v16  ;;  %4002 = vmatpush3.bf16.msra.mxu1 %v3974_v16 }
  0x3b   :  { %3979 = vmatprep.subr.bf16.mxu0 %v3978_v19  ;;  %3995 = vmatprep.subr.bf16.mxu1 %v3978_v19 }
  0x3e   :  { %3981 = vmatpush3.bf16.msra.mxu0 %v3978_v19  ;;  %4003 = vmatpush3.bf16.msra.mxu1 %v3978_v19 }
  0x3f   :  { %3983 = vmatprep.subr.bf16.mxu0 %v3982_v22  ;;  %3996 = vmatprep.subr.bf16.mxu1 %v3982_v22 }
  0x42   :  { %3985 = vmatpush3.bf16.msra.mxu0 %v3982_v22  ;;  %4004 = vmatpush3.bf16.msra.mxu1 %v3982_v22 }
  0x43   :  { %3987 = vmatprep.subr.bf16.mxu0 %v3986_v25  ;;  %3997 = vmatprep.subr.bf16.mxu1 %v3986_v25 }
  0x46   :  { %3989 = vmatpush3.bf16.msra.mxu0 %v3986_v25  ;;  %4005 = vmatpush3.bf16.msra.mxu1 %v3986_v25 }
  0x49   :  { %3911 = vmatmul.mubr.f32.vlgmr.msra.gmra.mrb[0].mxu0 %v44_v26  ;;  %3935 = vmatmul.mubr.f32.vlgmr.msra.gmra.mrb[0].mxu1 %v60_v27 }
  0x4a   :  { %3913 = vmatprep.mubr.f32.mxu0 %v45_v28  ;;  %3937 = vmatprep.mubr.f32.mxu1 %v61_v29 }
  0x4d   :  { %3914 = vmatmul.mubr.f32.gmra.mrb[2].mxu0 %v46_v30  ;;  %3938 = vmatmul.mubr.f32.gmra.mrb[2].mxu1 %v62_v31 }
  0x4e   :  { %3916 = vmatprep.mubr.f32.mxu0 %v47_v32  ;;  %3940 = vmatprep.mubr.f32.mxu1 %v63_v33  ;;  %v4354_v33 = vmov 683565275  }
  0x51   :  { %3917 = vmatmul.mubr.f32.gmra.mrb[4].mxu0 %v48_v34  ;;  %3941 = vmatmul.mubr.f32.gmra.mrb[4].mxu1 %v64_v35 }
  0x52   :  { %3919 = vmatprep.mubr.f32.mxu0 %v49_v36  ;;  %3943 = vmatprep.mubr.f32.mxu1 %v65_v37  ;;  %v4355_v37 = vmov 2475754826  }
  0x55   :  { %3920 = vmatmul.mubr.f32.gmra.mrb[6].mxu0 %v50_v38  ;;  %3944 = vmatmul.mubr.f32.gmra.mrb[6].mxu1 %v66_v39  ;;  %v4356_v39 = vmov 2131351028  }
  0x56   :  { %3922 = vmatprep.mubr.f32.mxu0 %v51_v40  ;;  %3946 = vmatprep.mubr.f32.mxu1 %v67_v41  ;;  %v4357_v41 = vmov 2102212464  }
  0x59   :  { %3923 = vmatmul.mubr.f32.gmra.mrb[8].mxu0 %v52_v42  ;;  %3947 = vmatmul.mubr.f32.gmra.mrb[8].mxu1 %v68_v43  ;;  %v4358_v43 = vmov 920167782  }
  0x5a   :  { %3925 = vmatprep.mubr.f32.mxu0 %v53_v44  ;;  %3949 = vmatprep.mubr.f32.mxu1 %v69_v45 }
  0x5d   :  { %3926 = vmatmul.mubr.f32.gmra.mrb[10].mxu0 %v54_v46  ;;  %3950 = vmatmul.mubr.f32.gmra.mrb[10].mxu1 %v70_v47 }
  0x5e   :  { %3928 = vmatprep.mubr.f32.mxu0 %v55_v48  ;;  %3952 = vmatprep.mubr.f32.mxu1 %v71_v49 }
  0x61   :  { %3929 = vmatmul.mubr.f32.gmra.mrb[12].mxu0 %v56_v50  ;;  %3953 = vmatmul.mubr.f32.gmra.mrb[12].mxu1 %v72_v51  ;;  %v4359_v50 = vmov 1326507024  }
  0x62   :  { %3931 = vmatprep.mubr.f32.mxu0 %v57_v52  ;;  %3955 = vmatprep.mubr.f32.mxu1 %v73_v53 }
  0x65   :  { %3932 = vmatmul.mubr.f32.gmra.mrb[14].mxu0 %v58_v54  ;;  %3956 = vmatmul.mubr.f32.gmra.mrb[14].mxu1 %v74_v55 }
 0x11c   :  { %v3912_v57 = vpop.f32.mrb[0].mxu0  ;;  %v3936_v58 = vpop.f32.mrb[0].mxu1 }
 0x11d   :  { %v4417_v59 = vadd.f32 %v3912_v57, %v4414_v56  ;;  %v4420_v60 = vadd.f32 %v3936_v58, %v4414_v56  ;;  %v164_v61 = vpop.f32.mrb[1].mxu0  ;;  %v244_v62 = vpop.f32.mrb[1].mxu1 }
 0x11e   :  { %v4423_v63 = vadd.f32 %v4414_v56, %v164_v61  ;;  %v4441_v17 = vadd.f32 %v4414_v56, %v244_v62 }
 0x11f   :  { %v427_v0 = vand.u32 2147483647, %v4417_v59  ;;  %v430_v1 = vand.u32 2139095040, %v4417_v59  ;;  %v2091_v2 = vand.u32 2147483647, %v4420_v60  ;;  %v2094_v3 = vand.u32 2139095040, %v4420_v60 }
 0x120   :  { %v4429_v4 = vpop.f32.mrb[2].mxu0  ;;  %v4431_v5 = vpop.f32.mrb[2].mxu1  ;;  %v326_v10 = vand.u32 2139095040, %v4423_v63  ;;  %v323_v20 = vand.u32 2147483647, %v4423_v63  ;;  %v1990_v31 = vand.u32 2139095040, %v4441_v17 }
 0x121   :  { %v431_v6 = vshrl.u32 %v430_v1, 23  ;;  %v434_v7 = vand.u32 8388607, %v427_v0  ;;  %v2095_v8 = vshrl.u32 %v2094_v3, 23  ;;  %v2098_v9 = vand.u32 8388607, %v2091_v2 }
 0x122   :  { %v4438_v12 = vpop.f32.mrb[3].mxu0  ;;  %v327_v14 = vshrl.u32 %v326_v10, 23  ;;  %v4444_v22 = vpop.f32.mrb[3].mxu1  ;;  %v4452_v29 = vand.u32 8388607, %v323_v20  ;;  %vm429_vm13 = vcmp.lt.s32.totalorder %v4417_v59, 0 }
 0x123   :  { %v3706_v11 = vadd.s32 4294967169, %v431_v6  ;;  %v3770_v13 = vadd.s32 4294967169, %v2095_v8  ;;  %v435_v15 = vor.u32 8388608, %v434_v7  ;;  %v2099_v18 = vor.u32 8388608, %v2098_v9 }
 0x124   :  { %v3702_v21 = vadd.s32 4294967169, %v327_v14  ;;  %vm4544_vm14 = vcmp.le.f32.partialorder %v427_v0, 0.7853982 }
 0x125   :  { %v437_v16 = vadd.s32 1, %v3706_v11  ;;  %v2101_v19 = vadd.s32 1, %v3770_v13  ;;  %v4446_v26 = vshll.u32 %v435_v15, 8  ;;  %v4448_v28 = vshll.u32 %v2099_v18, 8 }
 0x126   :  { %v4454_v30 = vadd.s32 1, %v3702_v21 }
 0x127   :  { %vm438_vm0 = vcmp.gt.s32.totalorder %v437_v16, 0  ;;  %vm2102_vm1 = vcmp.gt.s32.totalorder %v2101_v19, 0 }
 0x128   :  { %v439_v23 = vsel %vm438_vm0, %v437_v16, 0  ;;  %v2103_v27 = vsel %vm2102_vm1, %v2101_v19, 0  ;;  %vm334_vm6 = vcmp.gt.s32.totalorder %v4454_v30, 0 }
 0x129   :  { %v440_v24 = vshrl.u32 %v439_v23, 5  ;;  %v441_v25 = vand.u32 31, %v439_v23  ;;  %v4458_v35 = vshrl.u32 %v2103_v27, 5  ;;  %v2105_v36 = vand.u32 31, %v2103_v27 }
 0x12b   :  { %v442_v32 = vsub.s32 32, %v441_v25  ;;  %v444_v34 = vshll.u32 %v4354_v33, %v441_v25  ;;  %v447_v38 = vshll.u32 %v4355_v37, %v441_v25  ;;  %v450_v40 = vshll.u32 %v4356_v39, %v441_v25 }
 0x12c   :  { %v453_v42 = vshll.u32 %v4357_v41, %v441_v25  ;;  %v456_v44 = vshll.u32 %v4358_v43, %v441_v25  ;;  %vm459_vm2 = vcmp.lt.s32.totalorder %v440_v24, 1  ;;  %vm460_vm3 = vcmp.lt.s32.totalorder %v440_v24, 2 }
 0x12d   :  { %v445_v45 = vshrl.u32 %v4355_v37, %v442_v32  ;;  %v448_v46 = vshrl.u32 %v4356_v39, %v442_v32  ;;  %v451_v47 = vshrl.u32 %v4357_v41, %v442_v32  ;;  %v443_v48 = vshrl.u32 %v4354_v33, %v442_v32 }
 0x12e   :  { %v454_v49 = vshrl.u32 %v4358_v43, %v442_v32  ;;  %v457_v51 = vshrl.u32 %v4359_v50, %v442_v32  ;;  %v2106_v55 = vsub.s32 32, %v2105_v36  ;;  %vm461_vm4 = vcmp.lt.s32.totalorder %v440_v24, 3 }
 0x12f   :  { %v446_v52 = vor.u32 %v445_v45, %v444_v34  ;;  %v449_v53 = vor.u32 %v448_v46, %v447_v38  ;;  %v452_v54 = vor.u32 %v451_v47, %v450_v40  ;;  %vm462_vm5 = vcmp.lt.s32.totalorder %v440_v24, 4 }
 0x130   :  { %v455_v57 = vor.u32 %v454_v49, %v453_v42  ;;  %v458_v58 = vor.u32 %v457_v51, %v456_v44  ;;  %v2108_v9 = vshll.u32 %v4354_v33, %v2105_v36  ;;  %v2109_v13 = vshrl.u32 %v4355_v37, %v2106_v55 }
 0x131   :  { %v463_v61 = vsel %vm459_vm2, %v443_v48, %v446_v52  ;;  %v464_v62 = vsel %vm462_vm5, %v452_v54, 2102212464  ;;  %v467_v1 = vsel %vm459_vm2, %v446_v52, %v449_v53  ;;  %v471_v3 = vsel %vm459_vm2, %v449_v53, %v452_v54 }
 0x132   :  { %v465_v6 = vsel %vm461_vm4, %v449_v53, %v464_v62  ;;  %v468_v7 = vsel %vm462_vm5, %v455_v57, 920167782  ;;  %v472_v8 = vsel %vm462_vm5, %v458_v58, 1326507024  ;;  %v2111_v14 = vshll.u32 %v4355_v37, %v2105_v36 }
 0x133   :  { %v469_v10 = vsel %vm461_vm4, %v452_v54, %v468_v7  ;;  %v473_v11 = vsel %vm461_vm4, %v455_v57, %v472_v8  ;;  %v466_v15 = vsel %vm460_vm3, %v463_v61, %v465_v6  ;;  %v2112_v19 = vshrl.u32 %v4356_v39, %v2106_v55 }
 0x134   :  { %v470_v16 = vsel %vm460_vm3, %v467_v1, %v469_v10  ;;  %v474_v18 = vsel %vm460_vm3, %v471_v3, %v473_v11  ;;  %v2110_v32 = vor.u32 %v2109_v13, %v2108_v9  ;;  %v2114_v38 = vshll.u32 %v4356_v39, %v2105_v36 }
 0x135   :  { %v4482_v21 = vmul.u32.u64.low %v4446_v26, %v474_v18  ;;  %v4483_v23 = vmul.u32.u64.high %v4446_v26, %v474_v18, %v4482_v21  ;;  %v4486_v25 = vmul.u32.u64.low %v4446_v26, %v470_v16  ;;  %v4487_v27 = vmul.u32.u64.high %v4446_v26, %v470_v16, %v4486_v25 }
 0x136   :  { %v2113_v34 = vor.u32 %v2112_v19, %v2111_v14  ;;  %v2115_v40 = vshrl.u32 %v4357_v41, %v2106_v55  ;;  %v2107_v42 = vshrl.u32 %v4354_v33, %v2106_v55  ;;  %v2117_v24 = vshll.u32 %v4357_v41, %v2105_v36 }
 0x137   :  { %v2118_v44 = vshrl.u32 %v4358_v43, %v2106_v55  ;;  %v2121_v45 = vshrl.u32 %v4359_v50, %v2106_v55  ;;  %v482_v46 = vmul.u32 %v4446_v26, %v466_v15  ;;  %v2120_v48 = vshll.u32 %v4358_v43, %v2105_v36 }
 0x138   :  { %v2116_v47 = vor.u32 %v2115_v40, %v2114_v38  ;;  %vm2123_vm7 = vcmp.lt.s32.totalorder %v4458_v35, 1  ;;  %vm484_vm8 = vc.u32 %v4483_v23, %v4486_v25  ;;  %v485_v49 = vadd.s32 1, %v4487_v27  ;;  %v4527_v38 = vpop.f32.mrb[4].mxu0 }
 0x139   :  { %v2119_v51 = vor.u32 %v2118_v44, %v2117_v24  ;;  %vm2124_vm9 = vcmp.lt.s32.totalorder %v4458_v35, 2  ;;  %v2122_v52 = vor.u32 %v2121_v45, %v2120_v48  ;;  %vm2125_vm10 = vcmp.lt.s32.totalorder %v4458_v35, 3 }
 0x13a   :  { %vm2126_vm11 = vcmp.lt.s32.totalorder %v4458_v35, 4  ;;  %v2131_v53 = vsel %vm2123_vm7, %v2110_v32, %v2113_v34  ;;  %v486_v26 = vsel %vm484_vm8, %v485_v49, %v4487_v27  ;;  %v2135_v36 = vsel %vm2123_vm7, %v2113_v34, %v2116_v47 }
 0x13b   :  { %v2128_v54 = vsel %vm2126_vm11, %v2116_v47, 2102212464  ;;  %v2132_v55 = vsel %vm2126_vm11, %v2119_v51, 920167782  ;;  %v487_v57 = vadd.s32 %v486_v26, %v482_v46  ;;  %v2127_v58 = vsel %vm2123_vm7, %v2107_v42, %v2110_v32 }
 0x13c   :  { %v2133_v61 = vsel %vm2125_vm10, %v2116_v47, %v2132_v55  ;;  %v2136_v62 = vsel %vm2126_vm11, %v2122_v52, 1326507024  ;;  %v2129_v1 = vsel %vm2125_vm10, %v2113_v34, %v2128_v54  ;;  %v335_v7 = vsel %vm334_vm6, %v4454_v30, 0 }
 0x13d   :  { %v2134_v3 = vsel %vm2124_vm9, %v2131_v53, %v2133_v61  ;;  %v2137_v6 = vsel %vm2125_vm10, %v2119_v51, %v2136_v62  ;;  %v488_v8 = vadd.s32 536870912, %v487_v57  ;;  %v1987_v15 = vand.u32 2147483647, %v4441_v17 }
 0x13e   :  { %v2138_v9 = vsel %vm2124_vm9, %v2135_v36, %v2137_v6  ;;  %v4512_v10 = vmul.u32.u64.low %v4448_v28, %v2134_v3  ;;  %v4513_v11 = vmul.u32.u64.high %v4448_v28, %v2134_v3, %v4512_v10  ;;  %v2130_v18 = vsel %vm2124_vm9, %v2127_v58, %v2129_v1 }
 0x13f   :  { %v4517_v13 = vmul.u32.u64.low %v4448_v28, %v2138_v9  ;;  %v4518_v14 = vmul.u32.u64.high %v4448_v28, %v2138_v9, %v4517_v13  ;;  %v489_v16 = vshrl.u32 %v488_v8, 30  ;;  %v331_v30 = vor.u32 8388608, %v4452_v29 }
 0x140   :  { %v337_v19 = vand.u32 31, %v335_v7  ;;  %v2149_v27 = vadd.s32 1, %v4513_v11  ;;  %v1991_v34 = vshrl.u32 %v1990_v31, 23  ;;  %v2146_v40 = vmul.u32 %v4448_v28, %v2130_v18 }
 0x141   :  { %v490_v21 = vshll.u32 %v489_v16, 30  ;;  %vm2148_vm12 = vc.u32 %v4518_v14, %v4512_v10  ;;  %v4534_v35 = vand.u32 8388607, %v1987_v15  ;;  %v4540_v24 = vshll.u32 %v331_v30, 8 }
 0x142   :  { %v338_v32 = vsub.s32 32, %v337_v19  ;;  %v2150_v42 = vsel %vm2148_vm12, %v2149_v27, %v4513_v11  ;;  %v483_v28 = vadd.s32 %v4486_v25, %v4483_v23  ;;  %v4549_v45 = vshrl.u32 %v335_v7, 5 }
 0x143   :  { %v4537_v29 = vsub.s32 %v487_v57, %v490_v21  ;;  %v2151_v44 = vadd.s32 %v2150_v42, %v2146_v40  ;;  %v3766_v51 = vadd.s32 4294967169, %v1991_v34  ;;  %v513_v52 = vsub.s32 4, %v489_v16 }
 0x144   :  { %v341_v46 = vshrl.u32 %v4355_v37, %v338_v32  ;;  %v344_v48 = vshrl.u32 %v4356_v39, %v338_v32  ;;  %v347_v49 = vshrl.u32 %v4357_v41, %v338_v32  ;;  %v340_v0 = vshll.u32 %v4354_v33, %v337_v19 }
 0x145   :  { %v493_v47 = vsub.s32 0, %v4537_v29  ;;  %v2152_v53 = vadd.s32 536870912, %v2151_v44  ;;  %v1995_v26 = vor.u32 8388608, %v4534_v35  ;;  %v343_v25 = vshll.u32 %v4355_v37, %v337_v19 }
 0x146   :  { %v346_v54 = vshll.u32 %v4356_v39, %v337_v19  ;;  %v350_v55 = vshrl.u32 %v4358_v43, %v338_v32  ;;  %v342_v57 = vor.u32 %v341_v46, %v340_v0  ;;  %v349_v58 = vshll.u32 %v4357_v41, %v337_v19 }
 0x147   :  { %v3707_v23 = vmin.u32 %v493_v47, %v4537_v29  ;;  %v2153_v36 = vshrl.u32 %v2152_v53, 30  ;;  %v353_v61 = vshrl.u32 %v4359_v50, %v338_v32  ;;  %v345_v1 = vor.u32 %v344_v48, %v343_v25 }
 0x148   :  { %v348_v3 = vor.u32 %v347_v49, %v346_v54  ;;  %v352_v6 = vshll.u32 %v4358_v43, %v337_v19  ;;  %v514_v7 = vsel %vm429_vm13, %v513_v52, %v489_v16  ;;  %v351_v9 = vor.u32 %v350_v55, %v349_v58 }
 0x149   :  { %v495_v62 = vclz %v3707_v23  ;;  %v2154_v8 = vshll.u32 %v2153_v36, 30  ;;  %vm355_vm15 = vcmp.lt.s32.totalorder %v4549_v45, 1  ;;  %vm356_vm0 = vcmp.lt.s32.totalorder %v4549_v45, 2 }
 0x14a   :  { %v354_v13 = vor.u32 %v353_v61, %v352_v6  ;;  %vm358_vm1 = vcmp.lt.s32.totalorder %v4549_v45, 4  ;;  %vm2093_vm2 = vcmp.lt.s32.totalorder %v4420_v60, 0  ;;  %v339_v30 = vshrl.u32 %v4354_v33, %v338_v32 }
 0x14b   :  { %v3708_v11 = vadd.s32 4294967294, %v495_v62  ;;  %v4570_v18 = vsub.s32 %v2151_v44, %v2154_v8  ;;  %vm357_vm3 = vcmp.lt.s32.totalorder %v4549_v45, 3  ;;  %v364_v16 = vsel %vm358_vm1, %v351_v9, 920167782 }
 0x14c   :  { %v516_v19 = vsel %vm4544_vm14, 0, %v514_v7  ;;  %v363_v21 = vsel %vm355_vm15, %v342_v57, %v345_v1  ;;  %v365_v27 = vsel %vm357_vm3, %v348_v3, %v364_v16  ;;  %v2177_v42 = vsub.s32 4, %v2153_v36 }
 0x14d   :  { %vm3709_vm4 = vcmp.lt.s32.totalorder %v3708_v11, 0  ;;  %v2157_v40 = vsub.s32 0, %v4570_v18  ;;  %v367_v32 = vsel %vm355_vm15, %v345_v1, %v348_v3  ;;  %vm4587_vm5 = vcmp.le.f32.partialorder %v2091_v2, 0.7853982 }
 0x14e   :  { %v498_v34 = vsel %vm3709_vm4, 0, %v3708_v11  ;;  %v360_v48 = vsel %vm358_vm1, %v348_v3, 2102212464  ;;  %v368_v49 = vsel %vm358_vm1, %v354_v13, 1326507024  ;;  %v366_v0 = vsel %vm356_vm0, %v363_v21, %v365_v27  ;;  %v4607_v3 = vpop.f32.mrb[4].mxu1 }
 0x14f   :  { %v499_v44 = vsub.s32 32, %v498_v34  ;;  %v503_v46 = vsub.s32 4294967266, %v498_v34  ;;  %v500_v52 = vshll.u32 %v4537_v29, %v498_v34  ;;  %v3771_v53 = vmin.u32 %v2157_v40, %v4570_v18 }
 0x150   :  { %v369_v23 = vsel %vm357_vm3, %v351_v9, %v368_v49  ;;  %v1997_v55 = vadd.s32 1, %v3766_v51  ;;  %v520_v58 = vadd.s32 3, %v516_v19  ;;  %v359_v62 = vsel %vm355_vm15, %v339_v30, %v342_v57 }
 0x151   :  { %v501_v2 = vshrl.u32 %v483_v28, %v499_v44  ;;  %v504_v25 = vadd.s32 127, %v503_v46  ;;  %v370_v54 = vsel %vm356_vm0, %v367_v32, %v369_v23  ;;  %v2159_v61 = vclz %v3771_v53 }
 0x152   :  { %v361_v29 = vsel %vm357_vm3, %v345_v1, %v360_v48  ;;  %v4610_v8 = vmul.u32.u64.low %v4540_v24, %v370_v54  ;;  %v4611_v28 = vmul.u32.u64.high %v4540_v24, %v370_v54, %v4610_v8  ;;  %vm1998_vm6 = vcmp.gt.s32.totalorder %v1997_v55, 0 }
 0x153   :  { %v502_v6 = vor.u32 %v501_v2, %v500_v52  ;;  %v505_v7 = vshll.u32 %v504_v25, 23  ;;  %v3772_v9 = vadd.s32 4294967294, %v2159_v61  ;;  %v2147_v57 = vadd.s32 %v4512_v10, %v4518_v14 }
 0x154   :  { %v4614_v11 = vmul.u32.u64.low %v4540_v24, %v366_v0  ;;  %v4615_v51 = vmul.u32.u64.high %v4540_v24, %v366_v0, %v4614_v11  ;;  %v2178_v1 = vsel %vm2093_vm2, %v2177_v42, %v2153_v36  ;;  %v1999_v30 = vsel %vm1998_vm6, %v1997_v55, 0 }
 0x155   :  { %v506_v13 = vor.u32 4788187, %v505_v7  ;;  %v4622_v16 = vand.u32 3, %v520_v58  ;;  %vm3773_vm7 = vcmp.lt.s32.totalorder %v3772_v9, 0  ;;  %v362_v19 = vsel %vm356_vm0, %v359_v62, %v361_v29 }
 0x156   :  { %v2001_v21 = vand.u32 31, %v1999_v30  ;;  %v509_v34 = vcvt.s32.f32 %v502_v6  ;;  %v2162_v40 = vsel %vm3773_vm7, 0, %v3772_v9  ;;  %vm380_vm8 = vc.u32 %v4611_v28, %v4614_v11 }
 0x157   :  { %v507_v27 = vand.u32 2147483647, %v506_v13  ;;  %v2163_v32 = vsub.s32 32, %v2162_v40  ;;  %v2167_v44 = vsub.s32 4294967266, %v2162_v40  ;;  %v2180_v10 = vsel %vm4587_vm5, 0, %v2178_v1 }
 0x158   :  { %v381_v14 = vadd.s32 1, %v4615_v51  ;;  %v378_v42 = vmul.u32 %v4540_v24, %v362_v19  ;;  %v4632_v46 = vshrl.u32 %v1999_v30, 5  ;;  %v2002_v45 = vsub.s32 32, %v2001_v21 }
 0x159   :  { %v510_v36 = vmul.f32 %v509_v34, %v507_v27  ;;  %v2164_v48 = vshll.u32 %v4570_v18, %v2162_v40  ;;  %v2165_v49 = vshrl.u32 %v2147_v57, %v2163_v32  ;;  %v2168_v52 = vadd.s32 127, %v2167_v44 }
 0x15a   :  { %v382_v53 = vsel %vm380_vm8, %v381_v14, %v4615_v51  ;;  %v2004_v2 = vshll.u32 %v4354_v33, %v2001_v21  ;;  %v2005_v25 = vshrl.u32 %v4355_v37, %v2002_v45  ;;  %v2007_v58 = vshll.u32 %v4355_v37, %v2001_v21 }
 0x15b   :  { %v511_v0 = vxor.u32 2147483648, %v510_v36  ;;  %v383_v23 = vadd.s32 %v382_v53, %v378_v42  ;;  %v2166_v54 = vor.u32 %v2165_v49, %v2164_v48  ;;  %v2169_v55 = vshll.u32 %v2168_v52, 23 }
 0x15c   :  { %v2008_v24 = vshrl.u32 %v4356_v39, %v2002_v45  ;;  %v2010_v62 = vshll.u32 %v4356_v39, %v2001_v21  ;;  %v2011_v29 = vshrl.u32 %v4357_v41, %v2002_v45  ;;  %v2006_v8 = vor.u32 %v2005_v25, %v2004_v2 }
 0x15d   :  { %v512_v61 = vsel %vm429_vm13, %v511_v0, %v510_v36  ;;  %v384_v18 = vadd.s32 536870912, %v383_v23  ;;  %v2170_v7 = vor.u32 4788187, %v2169_v55  ;;  %v2013_v9 = vshll.u32 %v4357_v41, %v2001_v21 }
 0x15e   :  { %v515_v6 = vsel %vm4544_vm14, %v4417_v59, %v512_v61  ;;  %v2173_v51 = vcvt.s32.f32 %v2166_v54  ;;  %v2014_v57 = vshrl.u32 %v4358_v43, %v2002_v45  ;;  %v2009_v30 = vor.u32 %v2008_v24, %v2007_v58 }
 0x15f   :  { %4145 = vcosq.f32 %v515_v6  ;;  %v4648_v13 = vshrl.u32 %v384_v18, 30  ;;  %v2171_v1 = vand.u32 2147483647, %v2170_v7  ;;  %v2017_v19 = vshrl.u32 %v4359_v50, %v2002_v45 }
 0x160   :  { %4147 = vsinq.f32 %v515_v6  ;;  %v2015_v34 = vor.u32 %v2014_v57, %v2013_v9  ;;  %v2012_v40 = vor.u32 %v2011_v29, %v2010_v62  ;;  %v2016_v32 = vshll.u32 %v4358_v43, %v2001_v21 }
 0x161   :  { %v386_v27 = vshll.u32 %v4648_v13, 30  ;;  %v2174_v31 = vmul.f32 %v2173_v51, %v2171_v1  ;;  %v2184_v44 = vadd.s32 3, %v2180_v10  ;;  %vm2019_vm9 = vcmp.lt.s32.totalorder %v4632_v46, 1 }
 0x162   :  { %v4659_v36 = vshll.u32 %v1995_v26, 8  ;;  %vm523_vm10 = vcmp.eq.s32.totalorder %v4622_v16, 0  ;;  %v2018_v48 = vor.u32 %v2017_v19, %v2016_v32  ;;  %vm2022_vm11 = vcmp.lt.s32.totalorder %v4632_v46, 4 }
 0x163   :  { %v4654_v14 = vsub.s32 %v383_v23, %v386_v27  ;;  %v2175_v42 = vxor.u32 2147483648, %v2174_v31  ;;  %v2027_v49 = vsel %vm2019_vm9, %v2006_v8, %v2009_v30  ;;  %vm522_vm12 = vcmp.lt.s32.totalorder %v4622_v16, 2 }
 0x164   :  { %v2003_v10 = vshrl.u32 %v4354_v33, %v2002_v45  ;;  %vm2021_vm13 = vcmp.lt.s32.totalorder %v4632_v46, 3  ;;  %v2028_v35 = vsel %vm2022_vm11, %v2015_v34, 920167782  ;;  %vm519_vm14 = vweird.f32 %v4417_v59 }
 0x165   :  { %v389_v21 = vsub.s32 0, %v4654_v14  ;;  %v2176_v26 = vsel %vm2093_vm2, %v2175_v42, %v2174_v31  ;;  %vm325_vm15 = vcmp.lt.s32.totalorder %v4423_v63, 0  ;;  %vm2020_vm0 = vcmp.lt.s32.totalorder %v4632_v46, 2 }
 0x166   :  { %v2024_v52 = vsel %vm2022_vm11, %v2012_v40, 2102212464  ;;  %v2029_v45 = vsel %vm2021_vm13, %v2012_v40, %v2028_v35  ;;  %v2179_v53 = vsel %vm4587_vm5, %v4420_v60, %v2176_v26  ;;  %v2031_v2 = vsel %vm2019_vm9, %v2009_v30, %v2012_v40  ;;  %v4735_v26 = vpop.f32.mrb[5].mxu0 }
 0x167   :  { %v3703_v0 = vmin.u32 %v389_v21, %v4654_v14  ;;  %v2030_v23 = vsel %vm2020_vm0, %v2027_v49, %v2029_v45  ;;  %4149 = vcosq.f32 %v2179_v53  ;;  %v2032_v25 = vsel %vm2022_vm11, %v2018_v48, 1326507024 }
 0x168   :  { %v4691_v54 = vmul.u32.u64.low %v4659_v36, %v2030_v23  ;;  %v4692_v55 = vmul.u32.u64.high %v4659_v36, %v2030_v23, %v4691_v54  ;;  %vm526_vm1 = vcmp.eq.s32.totalorder %v4622_v16, 2  ;;  %4151 = vsinq.f32 %v2179_v53 }
 0x169   :  { %v4146_v58 = vpop.eup %4145  ;;  %v391_v47 = vclz %v3703_v0  ;;  %v409_v24 = vsub.s32 4, %v4648_v13  ;;  %v2023_v62 = vsel %vm2019_vm9, %v2003_v10, %v2006_v8  ;;  %v2025_v29 = vsel %vm2021_vm13, %v2009_v30, %v2024_v52 }
 0x16a   :  { %v4148_v61 = vpop.eup %4147  ;;  %v527_v18 = vxor.u32 2147483648, %v4146_v58  ;;  %v2033_v6 = vsel %vm2021_vm13, %v2015_v34, %v2032_v25  ;;  %v4707_v57 = vadd.f32 %v4429_v4, %v4414_v56  ;;  %v2185_v19 = vand.u32 3, %v2184_v44 }
 0x16b   :  { %v524_v7 = vxor.u32 2147483648, %v4148_v61  ;;  %v3704_v9 = vadd.s32 4294967294, %v391_v47  ;;  %v2034_v51 = vsel %vm2020_vm0, %v2031_v2, %v2033_v6  ;;  %v2026_v34 = vsel %vm2020_vm0, %v2023_v62, %v2025_v29 }
 0x16c   :  { %v528_v1 = vsel %vm526_vm1, %v527_v18, %v4148_v61  ;;  %v4710_v27 = vmul.u32.u64.low %v4659_v36, %v2034_v51  ;;  %v4711_v8 = vmul.u32.u64.high %v4659_v36, %v2034_v51, %v4710_v27  ;;  %v2045_v31 = vadd.s32 1, %v4692_v55 }
 0x16d   :  { %v525_v30 = vsel %vm523_vm10, %v4146_v58, %v524_v7  ;;  %vm3705_vm2 = vcmp.lt.s32.totalorder %v3704_v9, 0  ;;  %v379_v4 = vadd.s32 %v4614_v11, %v4611_v28  ;;  %v638_v44 = vand.u32 2139095040, %v4707_v57 }
 0x16e   :  { %v529_v40 = vsel %vm522_vm12, %v525_v30, %v528_v1  ;;  %v394_v32 = vsel %vm3705_vm2, 0, %v3704_v9  ;;  %vm2183_vm3 = vweird.f32 %v4420_v60  ;;  %v410_v46 = vsel %vm325_vm15, %v409_v24, %v4648_v13 }
 0x16f   :  { %v530_v42 = vsel %vm519_vm14, nan, %v529_v40  ;;  %v395_v48 = vsub.s32 32, %v394_v32  ;;  %v399_v49 = vsub.s32 4294967266, %v394_v32  ;;  %v2042_v16 = vmul.u32 %v4659_v36, %v2026_v34 }
 0x170   :  { %3652 = vst [vmem:[#allocation7 + $0x8] sm:$0xff] %v530_v42  ;;  %vm2044_vm4 = vc.u32 %v4711_v8, %v4691_v54  ;;  %v635_v28 = vand.u32 2147483647, %v4707_v57  ;;  %v639_v11 = vshrl.u32 %v638_v44, 23  ;;  %v396_v59 = vshll.u32 %v4654_v14, %v394_v32 }
 0x171   :  { %v397_v21 = vshrl.u32 %v379_v4, %v395_v48  ;;  %v400_v10 = vadd.s32 127, %v399_v49  ;;  %v2046_v35 = vsel %vm2044_vm4, %v2045_v31, %v4692_v55  ;;  %v4150_v52 = vpop.eup %4149  ;;  %vm2190_vm5 = vcmp.eq.s32.totalorder %v2185_v19, 2 }
 0x172   :  { %vm4739_vm6 = vcmp.le.f32.partialorder %v323_v20, 0.7853982  ;;  %v2047_v36 = vadd.s32 %v2046_v35, %v2042_v16  ;;  %v3714_v45 = vadd.s32 4294967169, %v639_v11  ;;  %v4152_v53 = vpop.eup %4151  ;;  %v2191_v0 = vxor.u32 2147483648, %v4150_v52 }
 0x173   :  { %v398_v23 = vor.u32 %v397_v21, %v396_v59  ;;  %v401_v14 = vshll.u32 %v400_v10, 23  ;;  %v412_v2 = vsel %vm4739_vm6, 0, %v410_v46  ;;  %v2188_v25 = vxor.u32 2147483648, %v4152_v53 }
 0x174   :  { %v2048_v55 = vadd.s32 536870912, %v2047_v36  ;;  %v642_v58 = vand.u32 8388607, %v635_v28  ;;  %v645_v47 = vadd.s32 1, %v3714_v45  ;;  %vm2186_vm7 = vcmp.lt.s32.totalorder %v2185_v19, 2 }
 0x175   :  { %vm2187_vm8 = vcmp.eq.s32.totalorder %v2185_v19, 0  ;;  %v2192_v20 = vsel %vm2190_vm5, %v2191_v0, %v4152_v53  ;;  %v402_v24 = vor.u32 4788187, %v401_v14  ;;  %v416_v18 = vadd.s32 3, %v412_v2 }
 0x176   :  { %v2189_v61 = vsel %vm2187_vm8, %v4150_v52, %v2188_v25  ;;  %v4747_v62 = vshrl.u32 %v2048_v55, 30  ;;  %vm646_vm9 = vcmp.gt.s32.totalorder %v645_v47, 0  ;;  %v405_v7 = vcvt.s32.f32 %v398_v23 }
 0x177   :  { %v2193_v29 = vsel %vm2186_vm7, %v2189_v61, %v2192_v20  ;;  %v403_v6 = vand.u32 2147483647, %v402_v24  ;;  %v647_v9 = vsel %vm646_vm9, %v645_v47, 0  ;;  %v643_v27 = vor.u32 8388608, %v642_v58  ;;  %v4801_v20 = vpop.f32.mrb[5].mxu1 }
 0x178   :  { %v2194_v51 = vsel %vm2183_vm3, nan, %v2193_v29  ;;  %v2050_v1 = vshll.u32 %v4747_v62, 30  ;;  %v649_v19 = vand.u32 31, %v647_v9  ;;  %v4752_v34 = vand.u32 3, %v416_v18 }
 0x179   :  { %3668 = vst [vmem:[#allocation7 + $0x88] sm:$0xff] %v2194_v51  ;;  %v406_v30 = vmul.f32 %v405_v7, %v403_v6  ;;  %v2043_v4 = vadd.s32 %v4691_v54, %v4711_v8  ;;  %v4760_v44 = vadd.f32 %v4431_v5, %v4414_v56  ;;  %v4763_v42 = vshrl.u32 %v647_v9, 5 }
 0x17a   :  { %v4754_v31 = vsub.s32 %v2047_v36, %v2050_v1  ;;  %v650_v32 = vsub.s32 32, %v649_v19  ;;  %v4765_v48 = vshll.u32 %v643_v27, 8  ;;  %v4769_v49 = vadd.f32 %v4414_v56, %v4438_v12 }
 0x17b   :  { %v407_v40 = vxor.u32 2147483648, %v406_v30  ;;  %v652_v54 = vshll.u32 %v4354_v33, %v649_v19  ;;  %v655_v59 = vshll.u32 %v4355_v37, %v649_v19  ;;  %v2073_v12 = vsub.s32 4, %v4747_v62 }
 0x17c   :  { %v2053_v60 = vsub.s32 0, %v4754_v31  ;;  %v653_v8 = vshrl.u32 %v4355_v37, %v650_v32  ;;  %v656_v5 = vshrl.u32 %v4356_v39, %v650_v32  ;;  %v659_v56 = vshrl.u32 %v4357_v41, %v650_v32 }
 0x17d   :  { %v408_v46 = vsel %vm325_vm15, %v407_v40, %v406_v30  ;;  %v658_v21 = vshll.u32 %v4356_v39, %v649_v19  ;;  %v2302_v10 = vand.u32 2139095040, %v4760_v44  ;;  %v661_v13 = vshll.u32 %v4357_v41, %v649_v19 }
 0x17e   :  { %v411_v16 = vsel %vm4739_vm6, %v4423_v63, %v408_v46  ;;  %v3767_v11 = vmin.u32 %v2053_v60, %v4754_v31  ;;  %v654_v52 = vor.u32 %v653_v8, %v652_v54  ;;  %v657_v36 = vor.u32 %v656_v5, %v655_v59 }
 0x17f   :  { %4153 = vcosq.f32 %v411_v16  ;;  %v660_v45 = vor.u32 %v659_v56, %v658_v21  ;;  %v662_v53 = vshrl.u32 %v4358_v43, %v650_v32  ;;  %vm667_vm10 = vcmp.lt.s32.totalorder %v4763_v42, 1 }
 0x180   :  { %4155 = vsinq.f32 %v411_v16  ;;  %v2055_v35 = vclz %v3767_v11  ;;  %v664_v23 = vshll.u32 %v4358_v43, %v649_v19  ;;  %v665_v14 = vshrl.u32 %v4359_v50, %v650_v32 }
 0x181   :  { %vm668_vm11 = vcmp.lt.s32.totalorder %v4763_v42, 2  ;;  %vm422_vm12 = vcmp.eq.s32.totalorder %v4752_v34, 2  ;;  %v651_v2 = vshrl.u32 %v4354_v33, %v650_v32  ;;  %v663_v25 = vor.u32 %v662_v53, %v661_v13 }
 0x182   :  { %v3768_v0 = vadd.s32 4294967294, %v2055_v35  ;;  %vm669_vm13 = vcmp.lt.s32.totalorder %v4763_v42, 3  ;;  %vm670_vm14 = vcmp.lt.s32.totalorder %v4763_v42, 4  ;;  %vm419_vm15 = vcmp.eq.s32.totalorder %v4752_v34, 0 }
 0x183   :  { %vm1989_vm0 = vcmp.lt.s32.totalorder %v4441_v17, 0  ;;  %v666_v55 = vor.u32 %v665_v14, %v664_v23  ;;  %v672_v58 = vsel %vm670_vm14, %v660_v45, 2102212464  ;;  %v675_v47 = vsel %vm667_vm10, %v654_v52, %v657_v36 }
 0x184   :  { %vm3769_vm1 = vcmp.lt.s32.totalorder %v3768_v0, 0  ;;  %vm418_vm2 = vcmp.lt.s32.totalorder %v4752_v34, 2  ;;  %v671_v61 = vsel %vm667_vm10, %v651_v2, %v654_v52  ;;  %v676_v18 = vsel %vm670_vm14, %v663_v25, 920167782 }
 0x185   :  { %v2058_v24 = vsel %vm3769_vm1, 0, %v3768_v0  ;;  %v2303_v29 = vshrl.u32 %v2302_v10, 23  ;;  %vm415_vm3 = vweird.f32 %v4423_v63  ;;  %v677_v9 = vsel %vm669_vm13, %v660_v45, %v676_v18 }
 0x186   :  { %v2059_v6 = vsub.s32 32, %v2058_v24  ;;  %v2063_v7 = vsub.s32 4294967266, %v2058_v24  ;;  %v679_v51 = vsel %vm667_vm10, %v657_v36, %v660_v45  ;;  %vm4815_vm4 = vcmp.le.f32.partialorder %v1987_v15, 0.7853982 }
 0x187   :  { %v673_v27 = vsel %vm669_vm13, %v657_v36, %v672_v58  ;;  %v678_v30 = vsel %vm668_vm11, %v675_v47, %v677_v9  ;;  %v680_v19 = vsel %vm670_vm14, %v666_v55, 1326507024  ;;  %v3778_v40 = vadd.s32 4294967169, %v2303_v29 }
 0x188   :  { %v2060_v32 = vshll.u32 %v4754_v31, %v2058_v24  ;;  %v2061_v60 = vshrl.u32 %v2043_v4, %v2059_v6  ;;  %v2064_v46 = vadd.s32 127, %v2063_v7  ;;  %v681_v15 = vsel %vm669_vm13, %v663_v25, %v680_v19 }
 0x189   :  { %v4154_v54 = vpop.eup %4153  ;;  %v682_v8 = vsel %vm668_vm11, %v679_v51, %v681_v15  ;;  %v4831_v5 = vmul.u32.u64.low %v4765_v48, %v678_v30  ;;  %v4832_v16 = vmul.u32.u64.high %v4765_v48, %v678_v30, %v4831_v5  ;;  %v2309_v11 = vadd.s32 1, %v3778_v40 }
 0x18a   :  { %v4156_v59 = vpop.eup %4155  ;;  %v423_v56 = vxor.u32 2147483648, %v4154_v54  ;;  %v2062_v21 = vor.u32 %v2061_v60, %v2060_v32  ;;  %v2065_v10 = vshll.u32 %v2064_v46, 23  ;;  %v2299_v31 = vand.u32 2147483647, %v4760_v44 }
 0x18b   :  { %v420_v4 = vxor.u32 2147483648, %v4156_v59  ;;  %v4837_v35 = vmul.u32.u64.low %v4765_v48, %v682_v8  ;;  %v4838_v52 = vmul.u32.u64.high %v4765_v48, %v682_v8, %v4837_v35  ;;  %vm2310_vm5 = vcmp.gt.s32.totalorder %v2309_v11, 0 }
 0x18c   :  { %v424_v36 = vsel %vm422_vm12, %v423_v56, %v4156_v59  ;;  %v2066_v45 = vor.u32 4788187, %v2065_v10  ;;  %v674_v13 = vsel %vm668_vm11, %v671_v61, %v673_v27  ;;  %v2311_v53 = vsel %vm2310_vm5, %v2309_v11, 0 }
 0x18d   :  { %v421_v0 = vsel %vm419_vm15, %v4154_v54, %v420_v4  ;;  %v2074_v23 = vsel %vm1989_vm0, %v2073_v12, %v4747_v62  ;;  %v693_v14 = vadd.s32 1, %v4832_v16  ;;  %v2313_v2 = vand.u32 31, %v2311_v53 }
 0x18e   :  { %v425_v25 = vsel %vm418_vm2, %v421_v0, %v424_v36  ;;  %v2067_v55 = vand.u32 2147483647, %v2066_v45  ;;  %v2069_v58 = vcvt.s32.f32 %v2062_v21  ;;  %v2306_v42 = vand.u32 8388607, %v2299_v31 }
 0x18f   :  { %v426_v47 = vsel %vm415_vm3, nan, %v425_v25  ;;  %v690_v24 = vmul.u32 %v4765_v48, %v674_v13  ;;  %vm692_vm6 = vc.u32 %v4838_v52, %v4831_v5  ;;  %v2314_v62 = vsub.s32 32, %v2313_v2 }
 0x190   :  { %3651 = vst [vmem:[#allocation7] sm:$0xff] %v426_v47  ;;  %v2070_v12 = vmul.f32 %v2069_v58, %v2067_v55  ;;  %v2076_v34 = vsel %vm4815_vm4, 0, %v2074_v23  ;;  %v694_v61 = vsel %vm692_vm6, %v693_v14, %v4832_v16  ;;  %v2312_v18 = vshrl.u32 %v2311_v53, 5 }
 0x191   :  { %v695_v29 = vadd.s32 %v694_v61, %v690_v24  ;;  %v2316_v6 = vshll.u32 %v4354_v33, %v2313_v2  ;;  %v2317_v63 = vshrl.u32 %v4355_v37, %v2314_v62  ;;  %v2320_v7 = vshrl.u32 %v4356_v39, %v2314_v62 }
 0x192   :  { %v2071_v48 = vxor.u32 2147483648, %v2070_v12  ;;  %v2319_v9 = vshll.u32 %v4355_v37, %v2313_v2  ;;  %v2322_v51 = vshll.u32 %v4356_v39, %v2313_v2  ;;  %v2323_v27 = vshrl.u32 %v4357_v41, %v2314_v62 }
 0x193   :  { %v696_v30 = vadd.s32 536870912, %v695_v29  ;;  %v2318_v19 = vor.u32 %v2317_v63, %v2316_v6  ;;  %v2325_v40 = vshll.u32 %v4357_v41, %v2313_v2  ;;  %v2326_v32 = vshrl.u32 %v4358_v43, %v2314_v62 }
 0x194   :  { %v2072_v60 = vsel %vm1989_vm0, %v2071_v48, %v2070_v12  ;;  %v2321_v46 = vor.u32 %v2320_v7, %v2319_v9  ;;  %v2324_v15 = vor.u32 %v2323_v27, %v2322_v51  ;;  %v2329_v54 = vshrl.u32 %v4359_v50, %v2314_v62 }
 0x195   :  { %v2075_v8 = vsel %vm4815_vm4, %v4441_v17, %v2072_v60  ;;  %v697_v16 = vshrl.u32 %v696_v30, 30  ;;  %v2327_v11 = vor.u32 %v2326_v32, %v2325_v40  ;;  %v2328_v59 = vshll.u32 %v4358_v43, %v2313_v2 }
 0x196   :  { %4157 = vcosq.f32 %v2075_v8  ;;  %v2080_v56 = vadd.s32 3, %v2076_v34  ;;  %v2307_v21 = vor.u32 8388608, %v2306_v42  ;;  %vm2331_vm7 = vcmp.lt.s32.totalorder %v2312_v18, 1 }
 0x197   :  { %4159 = vsinq.f32 %v2075_v8  ;;  %v698_v10 = vshll.u32 %v697_v16, 30  ;;  %v2330_v4 = vor.u32 %v2329_v54, %v2328_v59  ;;  %vm2334_vm8 = vcmp.lt.s32.totalorder %v2312_v18, 4 }
 0x198   :  { %v2315_v35 = vshrl.u32 %v4354_v33, %v2314_v62  ;;  %vm2333_vm9 = vcmp.lt.s32.totalorder %v2312_v18, 3  ;;  %v2339_v36 = vsel %vm2331_vm7, %v2318_v19, %v2321_v46  ;;  %v2340_v1 = vsel %vm2334_vm8, %v2327_v11, 920167782 }
 0x199   :  { %v4882_v45 = vsub.s32 %v695_v29, %v698_v10  ;;  %vm2332_vm10 = vcmp.lt.s32.totalorder %v2312_v18, 2  ;;  %v2336_v13 = vsel %vm2334_vm8, %v2324_v15, 2102212464  ;;  %v2341_v53 = vsel %vm2333_vm9, %v2324_v15, %v2340_v1 }
 0x19a   :  { %v721_v0 = vsub.s32 4, %v697_v16  ;;  %v2342_v23 = vsel %vm2332_vm10, %v2339_v36, %v2341_v53  ;;  %v2343_v14 = vsel %vm2331_vm7, %v2321_v46, %v2324_v15  ;;  %v2347_v2 = vshll.u32 %v2307_v21, 8 }
 0x19b   :  { %v2081_v25 = vand.u32 3, %v2080_v56  ;;  %v701_v55 = vsub.s32 0, %v4882_v45  ;;  %v2335_v58 = vsel %vm2331_vm7, %v2315_v35, %v2318_v19  ;;  %v2344_v42 = vsel %vm2334_vm8, %v2330_v4, 1326507024 }
 0x19c   :  { %v2337_v47 = vsel %vm2333_vm9, %v2321_v46, %v2336_v13  ;;  %v2345_v24 = vsel %vm2333_vm9, %v2327_v11, %v2344_v42  ;;  %v4893_v62 = vmul.u32.u64.low %v2347_v2, %v2342_v23  ;;  %v4894_v12 = vmul.u32.u64.high %v2347_v2, %v2342_v23, %v4893_v62  ;;  %v4927_v23 = vpop.f32.mrb[6].mxu0 }
 0x19d   :  { %vm2079_vm11 = vweird.f32 %v4441_v17  ;;  %vm637_vm12 = vcmp.lt.s32.totalorder %v4707_v57, 0  ;;  %v3715_v34 = vmin.u32 %v701_v55, %v4882_v45  ;;  %v2346_v61 = vsel %vm2332_vm10, %v2343_v14, %v2345_v24 }
 0x19e   :  { %v722_v29 = vsel %vm637_vm12, %v721_v0, %v697_v16  ;;  %v4902_v6 = vmul.u32.u64.low %v2347_v2, %v2346_v61  ;;  %v4903_v63 = vmul.u32.u64.high %v2347_v2, %v2346_v61, %v4902_v6  ;;  %v534_v7 = vand.u32 2139095040, %v4769_v49 }
 0x19f   :  { %vm4908_vm13 = vcmp.le.f32.partialorder %v635_v28, 0.7853982  ;;  %v703_v9 = vclz %v3715_v34  ;;  %v2338_v51 = vsel %vm2332_vm10, %v2335_v58, %v2337_v47  ;;  %v531_v27 = vand.u32 2147483647, %v4769_v49 }
 0x1a0   :  { %v4158_v30 = vpop.eup %4157  ;;  %vm2082_vm14 = vcmp.lt.s32.totalorder %v2081_v25, 2  ;;  %vm2083_vm15 = vcmp.eq.s32.totalorder %v2081_v25, 0  ;;  %v2357_v19 = vadd.s32 1, %v4894_v12  ;;  %v535_v40 = vshrl.u32 %v534_v7, 23 }
 0x1a1   :  { %v4160_v32 = vpop.eup %4159  ;;  %vm2086_vm0 = vcmp.eq.s32.totalorder %v2081_v25, 2  ;;  %v2087_v60 = vxor.u32 2147483648, %v4158_v30  ;;  %v3716_v46 = vadd.s32 4294967294, %v703_v9  ;;  %v724_v28 = vsel %vm4908_vm13, 0, %v722_v29 }
 0x1a2   :  { %v2084_v15 = vxor.u32 2147483648, %v4160_v32  ;;  %v2354_v54 = vmul.u32 %v2347_v2, %v2338_v51  ;;  %vm2356_vm1 = vc.u32 %v4903_v63, %v4893_v62  ;;  %v3710_v18 = vadd.s32 4294967169, %v535_v40 }
 0x1a3   :  { %v2088_v8 = vsel %vm2086_vm0, %v2087_v60, %v4160_v32  ;;  %vm3717_vm2 = vcmp.lt.s32.totalorder %v3716_v46, 0  ;;  %v2358_v16 = vsel %vm2356_vm1, %v2357_v19, %v4894_v12  ;;  %v538_v11 = vand.u32 8388607, %v531_v27 }
 0x1a4   :  { %v2085_v59 = vsel %vm2083_vm15, %v4158_v30, %v2084_v15  ;;  %v706_v56 = vsel %vm3717_vm2, 0, %v3716_v46  ;;  %v2359_v21 = vadd.s32 %v2358_v16, %v2354_v54  ;;  %v541_v10 = vadd.s32 1, %v3710_v18 }
 0x1a5   :  { %v2089_v4 = vsel %vm2082_vm14, %v2085_v59, %v2088_v8  ;;  %v691_v35 = vadd.s32 %v4831_v5, %v4838_v52  ;;  %v707_v36 = vsub.s32 32, %v706_v56  ;;  %v711_v1 = vsub.s32 4294967266, %v706_v56 }
 0x1a6   :  { %v2090_v13 = vsel %vm2079_vm11, nan, %v2089_v4  ;;  %v728_v53 = vadd.s32 3, %v724_v28  ;;  %v2360_v0 = vadd.s32 536870912, %v2359_v21  ;;  %vm542_vm3 = vcmp.gt.s32.totalorder %v541_v10, 0 }
 0x1a7   :  { %3667 = vst [vmem:[#allocation7 + $0x80] sm:$0xff] %v2090_v13  ;;  %v708_v14 = vshll.u32 %v4882_v45, %v706_v56  ;;  %v709_v2 = vshrl.u32 %v691_v35, %v707_v36  ;;  %v712_v55 = vadd.s32 127, %v711_v1  ;;  %v543_v25 = vsel %vm542_vm3, %v541_v10, 0  ;;  %v4937_v45 = vld [vmem:[%s7063_s2] ss:$0 sm:$0xff] }
 0x1a8   :  { %v2361_v58 = vshrl.u32 %v2360_v0, 30  ;;  %v539_v42 = vor.u32 8388608, %v538_v11  ;;  %v545_v47 = vand.u32 31, %v543_v25  ;;  %v4930_v24 = vand.u32 3, %v728_v53 }
 0x1a9   :  { %v710_v5 = vor.u32 %v709_v2, %v708_v14  ;;  %v713_v52 = vshll.u32 %v712_v55, 23  ;;  %vm2301_vm4 = vcmp.lt.s32.totalorder %v4760_v44, 0  ;;  %v2355_v61 = vadd.s32 %v4893_v62, %v4903_v63 }
 0x1aa   :  { %v2362_v17 = vshll.u32 %v2361_v58, 30  ;;  %v546_v12 = vsub.s32 32, %v545_v47  ;;  %v4941_v29 = vadd.f32 %v4937_v45, %v4444_v22  ;;  %v4945_v6 = vadd.f32 %v4937_v45, %v4527_v38 }
 0x1ab   :  { %v714_v34 = vor.u32 4788187, %v713_v52  ;;  %v544_v9 = vshrl.u32 %v543_v25, 5  ;;  %v4950_v30 = vshll.u32 %v539_v42, 8  ;;  %v717_v63 = vcvt.s32.f32 %v710_v5 }
 0x1ac   :  { %v4947_v7 = vsub.s32 %v2359_v21, %v2362_v17  ;;  %v549_v51 = vshrl.u32 %v4355_v37, %v546_v12  ;;  %v552_v19 = vshrl.u32 %v4356_v39, %v546_v12  ;;  %v555_v40 = vshrl.u32 %v4357_v41, %v546_v12 }
 0x1ad   :  { %v715_v62 = vand.u32 2147483647, %v714_v34  ;;  %v2385_v32 = vsub.s32 4, %v2361_v58  ;;  %v548_v60 = vshll.u32 %v4354_v33, %v545_v47  ;;  %v551_v38 = vshll.u32 %v4355_v37, %v545_v47 }
 0x1ae   :  { %v2365_v22 = vsub.s32 0, %v4947_v7  ;;  %v554_v28 = vshll.u32 %v4356_v39, %v545_v47  ;;  %v557_v15 = vshll.u32 %v4357_v41, %v545_v47  ;;  %v558_v54 = vshrl.u32 %v4358_v43, %v546_v12 }
 0x1af   :  { %v718_v46 = vmul.f32 %v717_v63, %v715_v62  ;;  %v550_v8 = vor.u32 %v549_v51, %v548_v60  ;;  %v553_v16 = vor.u32 %v552_v19, %v551_v38  ;;  %v561_v11 = vshrl.u32 %v4359_v50, %v546_v12 }
 0x1b0   :  { %v3779_v18 = vmin.u32 %v2365_v22, %v4947_v7  ;;  %v556_v56 = vor.u32 %v555_v40, %v554_v28  ;;  %v559_v21 = vor.u32 %v558_v54, %v557_v15  ;;  %v560_v10 = vshll.u32 %v4358_v43, %v545_v47  ;;  %v4975_v47 = vpop.f32.mrb[6].mxu1 }
 0x1b1   :  { %v719_v59 = vxor.u32 2147483648, %v718_v46  ;;  %v2386_v35 = vsel %vm2301_vm4, %v2385_v32, %v2361_v58  ;;  %v547_v36 = vshrl.u32 %v4354_v33, %v546_v12  ;;  %v2198_v1 = vand.u32 2139095040, %v4941_v29 }
 0x1b2   :  { %v2367_v4 = vclz %v3779_v18  ;;  %v562_v53 = vor.u32 %v561_v11, %v560_v10  ;;  %vm563_vm5 = vcmp.lt.s32.totalorder %v544_v9, 1  ;;  %vm564_vm6 = vcmp.lt.s32.totalorder %v544_v9, 2 }
 0x1b3   :  { %v720_v13 = vsel %vm637_vm12, %v719_v59, %v718_v46  ;;  %vm565_vm7 = vcmp.lt.s32.totalorder %v544_v9, 3  ;;  %vm566_vm8 = vcmp.lt.s32.totalorder %v544_v9, 4  ;;  %v571_v55 = vsel %vm563_vm5, %v550_v8, %v553_v16 }
 0x1b4   :  { %v723_v0 = vsel %vm4908_vm13, %v4707_v57, %v720_v13  ;;  %v3780_v14 = vadd.s32 4294967294, %v2367_v4  ;;  %v568_v2 = vsel %vm566_vm8, %v556_v56, 2102212464  ;;  %v572_v25 = vsel %vm566_vm8, %v559_v21, 920167782 }
 0x1b5   :  { %4161 = vcosq.f32 %v723_v0  ;;  %v567_v58 = vsel %vm563_vm5, %v547_v36, %v550_v8  ;;  %v573_v42 = vsel %vm565_vm7, %v556_v56, %v572_v25  ;;  %v575_v52 = vsel %vm563_vm5, %v553_v16, %v556_v56 }
 0x1b6   :  { %4163 = vsinq.f32 %v723_v0  ;;  %vm3781_vm9 = vcmp.lt.s32.totalorder %v3780_v14, 0  ;;  %v574_v48 = vsel %vm564_vm6, %v571_v55, %v573_v42  ;;  %v576_v17 = vsel %vm566_vm8, %v562_v53, 1326507024 }
 0x1b7   :  { %v2370_v5 = vsel %vm3781_vm9, 0, %v3780_v14  ;;  %v569_v51 = vsel %vm565_vm7, %v553_v16, %v568_v2  ;;  %v577_v62 = vsel %vm565_vm7, %v559_v21, %v576_v17  ;;  %vm4994_vm10 = vcmp.le.f32.partialorder %v2299_v31, 0.7853982 }
 0x1b8   :  { %v2371_v12 = vsub.s32 32, %v2370_v5  ;;  %v2375_v34 = vsub.s32 4294967266, %v2370_v5  ;;  %v2372_v63 = vshll.u32 %v4947_v7, %v2370_v5  ;;  %v578_v19 = vsel %vm564_vm6, %v575_v52, %v577_v62 }
 0x1b9   :  { %v4984_v40 = vmul.u32.u64.low %v4950_v30, %v574_v48  ;;  %v4985_v22 = vmul.u32.u64.high %v4950_v30, %v574_v48, %v4984_v40  ;;  %v4989_v38 = vmul.u32.u64.low %v4950_v30, %v578_v19  ;;  %v4990_v46 = vmul.u32.u64.high %v4950_v30, %v578_v19, %v4989_v38 }
 0x1ba   :  { %v2373_v32 = vshrl.u32 %v2355_v61, %v2371_v12  ;;  %v2376_v60 = vadd.s32 127, %v2375_v34  ;;  %v570_v7 = vsel %vm564_vm6, %v567_v58, %v569_v51  ;;  %v2199_v15 = vshrl.u32 %v2198_v1, 23 }
 0x1bb   :  { %v2388_v8 = vsel %vm4994_vm10, 0, %v2386_v35  ;;  %v589_v61 = vadd.s32 1, %v4985_v22  ;;  %v2195_v16 = vand.u32 2147483647, %v4941_v29  ;;  %v846_v59 = vand.u32 2139095040, %v4945_v6 }
 0x1bc   :  { %v2374_v54 = vor.u32 %v2373_v32, %v2372_v63  ;;  %v2377_v18 = vshll.u32 %v2376_v60, 23  ;;  %v3774_v11 = vadd.s32 4294967169, %v2199_v15  ;;  %vm731_vm11 = vcmp.eq.s32.totalorder %v4930_v24, 0 }
 0x1bd   :  { %v586_v56 = vmul.u32 %v4950_v30, %v570_v7  ;;  %vm588_vm12 = vc.u32 %v4990_v46, %v4984_v40  ;;  %vm734_vm13 = vcmp.eq.s32.totalorder %v4930_v24, 2  ;;  %v2392_v21 = vadd.s32 3, %v2388_v8 }
 0x1be   :  { %v2378_v31 = vor.u32 4788187, %v2377_v18  ;;  %v590_v10 = vsel %vm588_vm12, %v589_v61, %v4985_v22  ;;  %v2205_v4 = vadd.s32 1, %v3774_v11  ;;  %v2381_v13 = vcvt.s32.f32 %v2374_v54 }
 0x1bf   :  { %v4162_v9 = vpop.eup %4161  ;;  %v591_v53 = vadd.s32 %v590_v10, %v586_v56  ;;  %v2202_v14 = vand.u32 8388607, %v2195_v16  ;;  %v847_v30 = vshrl.u32 %v846_v59, 23  ;;  %vm727_vm15 = vweird.f32 %v4707_v57 }
 0x1c0   :  { %v4164_v35 = vpop.eup %4163  ;;  %v735_v36 = vxor.u32 2147483648, %v4162_v9  ;;  %v2379_v1 = vand.u32 2147483647, %v2378_v31  ;;  %vm2206_vm14 = vcmp.gt.s32.totalorder %v2205_v4, 0  ;;  %vm730_vm0 = vcmp.lt.s32.totalorder %v4930_v24, 2 }
 0x1c1   :  { %v732_v0 = vxor.u32 2147483648, %v4164_v35  ;;  %v592_v25 = vadd.s32 536870912, %v591_v53  ;;  %v2207_v58 = vsel %vm2206_vm14, %v2205_v4, 0  ;;  %v5016_v17 = vand.u32 3, %v2392_v21 }
 0x1c2   :  { %v736_v2 = vsel %vm734_vm13, %v735_v36, %v4164_v35  ;;  %v2382_v55 = vmul.f32 %v2381_v13, %v2379_v1  ;;  %v2209_v5 = vand.u32 31, %v2207_v58  ;;  %v2203_v51 = vor.u32 8388608, %v2202_v14 }
 0x1c3   :  { %v733_v42 = vsel %vm731_vm11, %v4162_v9, %v732_v0  ;;  %v5018_v12 = vshrl.u32 %v592_v25, 30  ;;  %v843_v63 = vand.u32 2147483647, %v4945_v6  ;;  %v3722_v22 = vadd.s32 4294967169, %v847_v30 }
 0x1c4   :  { %v737_v48 = vsel %vm730_vm0, %v733_v42, %v736_v2  ;;  %v2383_v52 = vxor.u32 2147483648, %v2382_v55  ;;  %v2210_v62 = vsub.s32 32, %v2209_v5  ;;  %v2212_v24 = vshll.u32 %v4354_v33, %v2209_v5 }
 0x1c5   :  { %v738_v34 = vsel %vm727_vm15, nan, %v737_v48  ;;  %v594_v19 = vshll.u32 %v5018_v12, 30  ;;  %v2215_v38 = vshll.u32 %v4355_v37, %v2209_v5  ;;  %v2218_v54 = vshll.u32 %v4356_v39, %v2209_v5 }
 0x1c6   :  { %3654 = vst [vmem:[#allocation7 + $0x18] sm:$0xff] %v738_v34  ;;  %v2384_v57 = vsel %vm2301_vm4, %v2383_v52, %v2382_v55  ;;  %v2213_v60 = vshrl.u32 %v4355_v37, %v2210_v62  ;;  %v2216_v7 = vshrl.u32 %v4356_v39, %v2210_v62  ;;  %v2219_v18 = vshrl.u32 %v4357_v41, %v2210_v62 }
 0x1c7   :  { %v2387_v32 = vsel %vm4994_vm10, %v4760_v44, %v2384_v57  ;;  %v5031_v15 = vsub.s32 %v591_v53, %v594_v19  ;;  %v587_v8 = vadd.s32 %v4984_v40, %v4990_v46  ;;  %v2208_v61 = vshrl.u32 %v2207_v58, 5 }
 0x1c8   :  { %4165 = vcosq.f32 %v2387_v32  ;;  %v5037_v28 = vshll.u32 %v2203_v51, 8  ;;  %v2214_v59 = vor.u32 %v2213_v60, %v2212_v24  ;;  %v2217_v31 = vor.u32 %v2216_v7, %v2215_v38  ;;  %v5067_v7 = vpop.f32.mrb[7].mxu0 }
 0x1c9   :  { %4167 = vsinq.f32 %v2387_v32  ;;  %v597_v11 = vsub.s32 0, %v5031_v15  ;;  %v2220_v56 = vor.u32 %v2219_v18, %v2218_v54  ;;  %v2221_v9 = vshll.u32 %v4357_v41, %v2209_v5 }
 0x1ca   :  { %v2222_v21 = vshrl.u32 %v4358_v43, %v2210_v62  ;;  %v2224_v10 = vshll.u32 %v4358_v43, %v2209_v5  ;;  %v2225_v4 = vshrl.u32 %v4359_v50, %v2210_v62  ;;  %vm2398_vm1 = vcmp.eq.s32.totalorder %v5016_v17, 2 }
 0x1cb   :  { %v3711_v40 = vmin.u32 %v597_v11, %v5031_v15  ;;  %v617_v46 = vsub.s32 4, %v5018_v12  ;;  %v5049_v35 = vand.u32 8388607, %v843_v63  ;;  %v853_v36 = vadd.s32 1, %v3722_v22 }
 0x1cc   :  { %vm2395_vm2 = vcmp.eq.s32.totalorder %v5016_v17, 0  ;;  %v2211_v1 = vshrl.u32 %v4354_v33, %v2210_v62  ;;  %v2223_v13 = vor.u32 %v2222_v21, %v2221_v9  ;;  %v2226_v53 = vor.u32 %v2225_v4, %v2224_v10 }
 0x1cd   :  { %vm2227_vm3 = vcmp.lt.s32.totalorder %v2208_v61, 1  ;;  %vm2394_vm4 = vcmp.lt.s32.totalorder %v5016_v17, 2  ;;  %vm533_vm5 = vcmp.lt.s32.totalorder %v4769_v49, 0  ;;  %v599_v0 = vclz %v3711_v40 }
 0x1ce   :  { %vm2228_vm6 = vcmp.lt.s32.totalorder %v2208_v61, 2  ;;  %vm2229_vm7 = vcmp.lt.s32.totalorder %v2208_v61, 3  ;;  %vm2230_vm8 = vcmp.lt.s32.totalorder %v2208_v61, 4  ;;  %vm2391_vm9 = vweird.f32 %v4760_v44 }
 0x1cf   :  { %v2232_v14 = vsel %vm2230_vm8, %v2220_v56, 2102212464  ;;  %v2235_v30 = vsel %vm2227_vm3, %v2214_v59, %v2217_v31  ;;  %v2236_v2 = vsel %vm2230_vm8, %v2223_v13, 920167782  ;;  %v2239_v55 = vsel %vm2227_vm3, %v2217_v31, %v2220_v56 }
 0x1d0   :  { %v3712_v25 = vadd.s32 4294967294, %v599_v0  ;;  %v2231_v58 = vsel %vm2227_vm3, %v2211_v1, %v2214_v59  ;;  %v2237_v42 = vsel %vm2229_vm7, %v2220_v56, %v2236_v2  ;;  %v2240_v5 = vsel %vm2230_vm8, %v2226_v53, 1326507024 }
 0x1d1   :  { %v2233_v48 = vsel %vm2229_vm7, %v2217_v31, %v2232_v14  ;;  %v2238_v52 = vsel %vm2228_vm6, %v2235_v30, %v2237_v42  ;;  %v2241_v34 = vsel %vm2229_vm7, %v2223_v13, %v2240_v5  ;;  %vm854_vm10 = vcmp.gt.s32.totalorder %v853_v36, 0 }
 0x1d2   :  { %v4166_v51 = vpop.eup %4165  ;;  %vm3713_vm11 = vcmp.lt.s32.totalorder %v3712_v25, 0  ;;  %v2242_v62 = vsel %vm2228_vm6, %v2239_v55, %v2241_v34  ;;  %v5059_v57 = vmul.u32.u64.low %v5037_v28, %v2238_v52  ;;  %v5060_v19 = vmul.u32.u64.high %v5037_v28, %v2238_v52, %v5059_v57 }
 0x1d3   :  { %v4168_v24 = vpop.eup %4167  ;;  %v2399_v22 = vxor.u32 2147483648, %v4166_v51  ;;  %v602_v32 = vsel %vm3713_vm11, 0, %v3712_v25  ;;  %v5064_v60 = vmul.u32.u64.low %v5037_v28, %v2242_v62  ;;  %v5065_v38 = vmul.u32.u64.high %v5037_v28, %v2242_v62, %v5064_v60 }
 0x1d4   :  { %v2396_v54 = vxor.u32 2147483648, %v4168_v24  ;;  %v603_v18 = vsub.s32 32, %v602_v32  ;;  %v607_v11 = vsub.s32 4294967266, %v602_v32  ;;  %v2234_v59 = vsel %vm2228_vm6, %v2231_v58, %v2233_v48 }
 0x1d5   :  { %v2400_v31 = vsel %vm2398_vm1, %v2399_v22, %v4168_v24  ;;  %v604_v56 = vshll.u32 %v5031_v15, %v602_v32  ;;  %v851_v9 = vor.u32 8388608, %v5049_v35  ;;  %v855_v21 = vsel %vm854_vm10, %v853_v36, 0 }
 0x1d6   :  { %v2397_v10 = vsel %vm2395_vm2, %v4166_v51, %v2396_v54  ;;  %v605_v4 = vshrl.u32 %v587_v8, %v603_v18  ;;  %v608_v40 = vadd.s32 127, %v607_v11  ;;  %v2253_v1 = vadd.s32 1, %v5060_v19 }
 0x1d7   :  { %v2401_v61 = vsel %vm2394_vm4, %v2397_v10, %v2400_v31  ;;  %v618_v13 = vsel %vm533_vm5, %v617_v46, %v5018_v12  ;;  %v2250_v15 = vmul.u32 %v5037_v28, %v2234_v59  ;;  %vm2252_vm12 = vc.u32 %v5065_v38, %v5059_v57 }
 0x1d8   :  { %v2402_v35 = vsel %vm2391_vm9, nan, %v2401_v61  ;;  %v606_v36 = vor.u32 %v605_v4, %v604_v56  ;;  %v609_v8 = vshll.u32 %v608_v40, 23  ;;  %v2254_v53 = vsel %vm2252_vm12, %v2253_v1, %v5060_v19 }
 0x1d9   :  { %3670 = vst [vmem:[#allocation7 + $0x98] sm:$0xff] %v2402_v35  ;;  %vm5091_vm13 = vcmp.le.f32.partialorder %v531_v27, 0.7853982  ;;  %v2255_v12 = vadd.s32 %v2254_v53, %v2250_v15  ;;  %v857_v46 = vand.u32 31, %v855_v21  ;;  %v5097_v14 = vshll.u32 %v851_v9, 8 }
 0x1da   :  { %v610_v28 = vor.u32 4788187, %v609_v8  ;;  %v620_v0 = vsel %vm5091_vm13, 0, %v618_v13  ;;  %v613_v44 = vcvt.s32.f32 %v606_v36  ;;  %v5099_v2 = vshrl.u32 %v855_v21, 5 }
 0x1db   :  { %v2256_v30 = vadd.s32 536870912, %v2255_v12  ;;  %v858_v55 = vsub.s32 32, %v857_v46  ;;  %v860_v58 = vshll.u32 %v4354_v33, %v857_v46  ;;  %v863_v27 = vshll.u32 %v4355_v37, %v857_v46 }
 0x1dc   :  { %v611_v25 = vand.u32 2147483647, %v610_v28  ;;  %v866_v42 = vshll.u32 %v4356_v39, %v857_v46  ;;  %v869_v34 = vshll.u32 %v4357_v41, %v857_v46  ;;  %v624_v22 = vadd.s32 3, %v620_v0 }
 0x1dd   :  { %v2257_v5 = vshrl.u32 %v2256_v30, 30  ;;  %v861_v48 = vshrl.u32 %v4355_v37, %v858_v55  ;;  %v864_v52 = vshrl.u32 %v4356_v39, %v858_v55  ;;  %v867_v62 = vshrl.u32 %v4357_v41, %v858_v55 }
 0x1de   :  { %v614_v51 = vmul.f32 %v613_v44, %v611_v25  ;;  %v870_v19 = vshrl.u32 %v4358_v43, %v858_v55  ;;  %v873_v24 = vshrl.u32 %v4359_v50, %v858_v55  ;;  %v872_v31 = vshll.u32 %v4358_v43, %v857_v46  ;;  %v5148_v44 = vpop.f32.mrb[7].mxu1 }
 0x1df   :  { %v2258_v32 = vshll.u32 %v2257_v5, 30  ;;  %v862_v60 = vor.u32 %v861_v48, %v860_v58  ;;  %v865_v54 = vor.u32 %v864_v52, %v863_v27  ;;  %v868_v11 = vor.u32 %v867_v62, %v866_v42 }
 0x1e0   :  { %v615_v18 = vxor.u32 2147483648, %v614_v51  ;;  %v871_v59 = vor.u32 %v870_v19, %v869_v34  ;;  %vm875_vm14 = vcmp.lt.s32.totalorder %v5099_v2, 1  ;;  %vm878_vm15 = vcmp.lt.s32.totalorder %v5099_v2, 4 }
 0x1e1   :  { %v5111_v56 = vsub.s32 %v2255_v12, %v2258_v32  ;;  %v5117_v9 = vadd.f32 %v4937_v45, %v4607_v3  ;;  %v874_v10 = vor.u32 %v873_v24, %v872_v31  ;;  %v883_v4 = vsel %vm875_vm14, %v862_v60, %v865_v54 }
 0x1e2   :  { %v616_v21 = vsel %vm533_vm5, %v615_v18, %v614_v51  ;;  %v884_v40 = vsel %vm878_vm15, %v871_v59, 920167782  ;;  %vm876_vm0 = vcmp.lt.s32.totalorder %v5099_v2, 2  ;;  %vm877_vm1 = vcmp.lt.s32.totalorder %v5099_v2, 3 }
 0x1e3   :  { %v619_v1 = vsel %vm5091_vm13, %v4769_v49, %v616_v21  ;;  %v2261_v61 = vsub.s32 0, %v5111_v56  ;;  %v2281_v3 = vsub.s32 4, %v2257_v5  ;;  %v859_v13 = vshrl.u32 %v4354_v33, %v858_v55 }
 0x1e4   :  { %4169 = vcosq.f32 %v619_v1  ;;  %v885_v15 = vsel %vm877_vm1, %v868_v11, %v884_v40  ;;  %v880_v36 = vsel %vm878_vm15, %v868_v11, 2102212464  ;;  %v887_v53 = vsel %vm875_vm14, %v865_v54, %v868_v11 }
 0x1e5   :  { %4171 = vsinq.f32 %v619_v1  ;;  %v3775_v35 = vmin.u32 %v2261_v61, %v5111_v56  ;;  %v886_v8 = vsel %vm876_vm0, %v883_v4, %v885_v15  ;;  %v888_v17 = vsel %vm878_vm15, %v874_v10, 1326507024 }
 0x1e6   :  { %v5144_v12 = vmul.u32.u64.low %v5097_v14, %v886_v8  ;;  %v5145_v46 = vmul.u32.u64.high %v5097_v14, %v886_v8, %v5144_v12  ;;  %v625_v28 = vand.u32 3, %v624_v22  ;;  %v879_v30 = vsel %vm875_vm14, %v859_v13, %v862_v60 }
 0x1e7   :  { %v2263_v0 = vclz %v3775_v35  ;;  %v881_v55 = vsel %vm877_vm1, %v865_v54, %v880_v36  ;;  %v889_v25 = vsel %vm877_vm1, %v871_v59, %v888_v17  ;;  %v2510_v58 = vand.u32 2139095040, %v5117_v9 }
 0x1e8   :  { %vm5159_vm2 = vcmp.le.f32.partialorder %v2195_v16, 0.7853982  ;;  %vm2197_vm3 = vcmp.lt.s32.totalorder %v4941_v29, 0  ;;  %v890_v48 = vsel %vm876_vm0, %v887_v53, %v889_v25  ;;  %v2507_v62 = vand.u32 2147483647, %v5117_v9 }
 0x1e9   :  { %v3776_v42 = vadd.s32 4294967294, %v2263_v0  ;;  %v2282_v52 = vsel %vm2197_vm3, %v2281_v3, %v2257_v5  ;;  %v5169_v34 = vmul.u32.u64.low %v5097_v14, %v890_v48  ;;  %v5170_v51 = vmul.u32.u64.high %v5097_v14, %v890_v48, %v5169_v34 }
 0x1ea   :  { %vm623_vm4 = vweird.f32 %v4769_v49  ;;  %v882_v16 = vsel %vm876_vm0, %v879_v30, %v881_v55  ;;  %v901_v19 = vadd.s32 1, %v5145_v46  ;;  %v2511_v24 = vshrl.u32 %v2510_v58, 23 }
 0x1eb   :  { %vm3777_vm5 = vcmp.lt.s32.totalorder %v3776_v42, 0  ;;  %vm626_vm6 = vcmp.lt.s32.totalorder %v625_v28, 2  ;;  %vm630_vm7 = vcmp.eq.s32.totalorder %v625_v28, 2  ;;  %v2251_v5 = vadd.s32 %v5059_v57, %v5065_v38 }
 0x1ec   :  { %v2266_v22 = vsel %vm3777_vm5, 0, %v3776_v42  ;;  %v2284_v54 = vsel %vm5159_vm2, 0, %v2282_v52  ;;  %v3786_v18 = vadd.s32 4294967169, %v2511_v24  ;;  %v898_v2 = vmul.u32 %v5097_v14, %v882_v16 }
 0x1ed   :  { %v2267_v32 = vsub.s32 32, %v2266_v22  ;;  %v2271_v60 = vsub.s32 4294967266, %v2266_v22  ;;  %v2268_v59 = vshll.u32 %v5111_v56, %v2266_v22  ;;  %vm900_vm8 = vc.u32 %v5170_v51, %v5144_v12 }
 0x1ee   :  { %v4170_v11 = vpop.eup %4169  ;;  %v2514_v31 = vand.u32 8388607, %v2507_v62  ;;  %v902_v4 = vsel %vm900_vm8, %v901_v19, %v5145_v46  ;;  %v2517_v61 = vadd.s32 1, %v3786_v18  ;;  %v5190_v56 = vadd.f32 %v4937_v45, %v4735_v26 }
 0x1ef   :  { %v4172_v21 = vpop.eup %4171  ;;  %v631_v57 = vxor.u32 2147483648, %v4170_v11  ;;  %v2269_v38 = vshrl.u32 %v2251_v5, %v2267_v32  ;;  %v2272_v10 = vadd.s32 127, %v2271_v60  ;;  %v903_v1 = vadd.s32 %v902_v4, %v898_v2 }
 0x1f0   :  { %v628_v40 = vxor.u32 2147483648, %v4172_v21  ;;  %vm627_vm9 = vcmp.eq.s32.totalorder %v625_v28, 0  ;;  %v2288_v35 = vadd.s32 3, %v2284_v54  ;;  %vm2518_vm10 = vcmp.gt.s32.totalorder %v2517_v61, 0 }
 0x1f1   :  { %v632_v14 = vsel %vm630_vm7, %v631_v57, %v4172_v21  ;;  %v2270_v3 = vor.u32 %v2269_v38, %v2268_v59  ;;  %v2273_v13 = vshll.u32 %v2272_v10, 23  ;;  %v904_v36 = vadd.s32 536870912, %v903_v1 }
 0x1f2   :  { %v629_v15 = vsel %vm627_vm9, %v4170_v11, %v628_v40  ;;  %v2515_v17 = vor.u32 8388608, %v2514_v31  ;;  %v2519_v46 = vsel %vm2518_vm10, %v2517_v61, 0  ;;  %v742_v55 = vand.u32 2139095040, %v5190_v56 }
 0x1f3   :  { %v633_v8 = vsel %vm626_vm6, %v629_v15, %v632_v14  ;;  %v2274_v53 = vor.u32 4788187, %v2273_v13  ;;  %v905_v30 = vshrl.u32 %v904_v36, 30  ;;  %v2521_v26 = vand.u32 31, %v2519_v46 }
 0x1f4   :  { %v634_v0 = vsel %vm623_vm4, nan, %v633_v8  ;;  %v2277_v58 = vcvt.s32.f32 %v2270_v3  ;;  %vm845_vm11 = vcmp.lt.s32.totalorder %v4945_v6, 0  ;;  %v5198_v42 = vand.u32 3, %v2288_v35 }
 0x1f5   :  { %3653 = vst [vmem:[#allocation7 + $0x10] sm:$0xff] %v634_v0  ;;  %v2275_v25 = vand.u32 2147483647, %v2274_v53  ;;  %vm5202_vm12 = vcmp.le.f32.partialorder %v843_v63, 0.7853982  ;;  %v906_v48 = vshll.u32 %v905_v30, 30  ;;  %v899_v16 = vadd.s32 %v5144_v12, %v5170_v51 }
 0x1f6   :  { %v2522_v49 = vsub.s32 32, %v2521_v26  ;;  %v739_v52 = vand.u32 2147483647, %v5190_v56  ;;  %v929_v19 = vsub.s32 4, %v905_v30  ;;  %v5209_v24 = vshll.u32 %v2515_v17, 8 }
 0x1f7   :  { %v2278_v34 = vmul.f32 %v2277_v58, %v2275_v25  ;;  %v5211_v5 = vsub.s32 %v903_v1, %v906_v48  ;;  %v5213_v22 = vshrl.u32 %v2519_v46, 5  ;;  %v743_v32 = vshrl.u32 %v742_v55, 23 }
 0x1f8   :  { %v2525_v63 = vshrl.u32 %v4355_v37, %v2522_v49  ;;  %v2524_v54 = vshll.u32 %v4354_v33, %v2521_v26  ;;  %v2528_v18 = vshrl.u32 %v4356_v39, %v2522_v49  ;;  %v2531_v11 = vshrl.u32 %v4357_v41, %v2522_v49 }
 0x1f9   :  { %v2279_v60 = vxor.u32 2147483648, %v2278_v34  ;;  %v909_v59 = vsub.s32 0, %v5211_v5  ;;  %v2527_v12 = vshll.u32 %v4355_v37, %v2521_v26  ;;  %v2530_v51 = vshll.u32 %v4356_v39, %v2521_v26 }
 0x1fa   :  { %v2534_v2 = vshrl.u32 %v4358_v43, %v2522_v49  ;;  %v930_v21 = vsel %vm845_vm11, %v929_v19, %v905_v30  ;;  %v2526_v57 = vor.u32 %v2525_v63, %v2524_v54  ;;  %v2533_v38 = vshll.u32 %v4357_v41, %v2521_v26 }
 0x1fb   :  { %v2280_v31 = vsel %vm2197_vm3, %v2279_v60, %v2278_v34  ;;  %v3723_v4 = vmin.u32 %v909_v59, %v5211_v5  ;;  %v2529_v40 = vor.u32 %v2528_v18, %v2527_v12  ;;  %v2532_v1 = vor.u32 %v2531_v11, %v2530_v51 }
 0x1fc   :  { %v2283_v10 = vsel %vm5159_vm2, %v4941_v29, %v2280_v31  ;;  %v2535_v61 = vor.u32 %v2534_v2, %v2533_v38  ;;  %v2536_v14 = vshll.u32 %v4358_v43, %v2521_v26  ;;  %v2537_v3 = vshrl.u32 %v4359_v50, %v2522_v49  ;;  %v5267_v31 = vpop.f32.mrb[8].mxu0 }
 0x1fd   :  { %4173 = vcosq.f32 %v2283_v10  ;;  %v911_v13 = vclz %v3723_v4  ;;  %v3718_v15 = vadd.s32 4294967169, %v743_v32  ;;  %v5236_v35 = vand.u32 8388607, %v739_v52 }
 0x1fe   :  { %4175 = vsinq.f32 %v2283_v10  ;;  %v932_v27 = vsel %vm5202_vm12, 0, %v930_v21  ;;  %v2523_v36 = vshrl.u32 %v4354_v33, %v2522_v49  ;;  %v2538_v8 = vor.u32 %v2537_v3, %v2536_v14 }
 0x1ff   :  { %vm2539_vm13 = vcmp.lt.s32.totalorder %v5213_v22, 1  ;;  %v3724_v53 = vadd.s32 4294967294, %v911_v13  ;;  %vm2541_vm14 = vcmp.lt.s32.totalorder %v5213_v22, 3  ;;  %vm2542_vm15 = vcmp.lt.s32.totalorder %v5213_v22, 4 }
 0x200   :  { %v2547_v17 = vsel %vm2539_vm13, %v2526_v57, %v2529_v40  ;;  %v2544_v46 = vsel %vm2542_vm15, %v2532_v1, 2102212464  ;;  %v2548_v0 = vsel %vm2542_vm15, %v2535_v61, 920167782  ;;  %v2551_v30 = vsel %vm2539_vm13, %v2529_v40, %v2532_v1 }
 0x201   :  { %v2552_v26 = vsel %vm2542_vm15, %v2538_v8, 1326507024  ;;  %vm3725_vm0 = vcmp.lt.s32.totalorder %v3724_v53, 0  ;;  %vm2540_vm1 = vcmp.lt.s32.totalorder %v5213_v22, 2  ;;  %v2549_v55 = vsel %vm2541_vm14, %v2532_v1, %v2548_v0 }
 0x202   :  { %v2553_v25 = vsel %vm2541_vm14, %v2535_v61, %v2552_v26  ;;  %vm2290_vm2 = vcmp.lt.s32.totalorder %v5198_v42, 2  ;;  %v914_v58 = vsel %vm3725_vm0, 0, %v3724_v53  ;;  %v2543_v48 = vsel %vm2539_vm13, %v2523_v36, %v2526_v57 }
 0x203   :  { %v2550_v49 = vsel %vm2540_vm1, %v2547_v17, %v2549_v55  ;;  %v2554_v34 = vsel %vm2540_vm1, %v2551_v30, %v2553_v25  ;;  %vm2287_vm3 = vweird.f32 %v4941_v29  ;;  %v915_v19 = vsub.s32 32, %v914_v58 }
 0x204   :  { %v919_v63 = vsub.s32 4294967266, %v914_v58  ;;  %v2545_v32 = vsel %vm2541_vm14, %v2529_v40, %v2544_v46  ;;  %v749_v60 = vadd.s32 1, %v3718_v15  ;;  %v916_v12 = vshll.u32 %v5211_v5, %v914_v58 }
 0x205   :  { %v5258_v54 = vmul.u32.u64.low %v5209_v24, %v2554_v34  ;;  %v5259_v18 = vmul.u32.u64.high %v5209_v24, %v2554_v34, %v5258_v54  ;;  %v5262_v11 = vmul.u32.u64.low %v5209_v24, %v2550_v49  ;;  %v5263_v59 = vmul.u32.u64.high %v5209_v24, %v2550_v49, %v5262_v11 }
 0x206   :  { %v917_v51 = vshrl.u32 %v899_v16, %v915_v19  ;;  %v920_v2 = vadd.s32 127, %v919_v63  ;;  %vm750_vm4 = vcmp.gt.s32.totalorder %v749_v60, 0  ;;  %vm2291_vm5 = vcmp.eq.s32.totalorder %v5198_v42, 0 }
 0x207   :  { %v4174_v21 = vpop.eup %4173  ;;  %vm2294_vm6 = vcmp.eq.s32.totalorder %v5198_v42, 2  ;;  %v2546_v57 = vsel %vm2540_vm1, %v2543_v48, %v2545_v32  ;;  %v751_v38 = vsel %vm750_vm4, %v749_v60, 0  ;;  %v747_v5 = vor.u32 8388608, %v5236_v35 }
 0x208   :  { %v4176_v10 = vpop.eup %4175  ;;  %v2295_v4 = vxor.u32 2147483648, %v4174_v21  ;;  %v918_v40 = vor.u32 %v917_v51, %v916_v12  ;;  %v921_v1 = vshll.u32 %v920_v2, 23  ;;  %v936_v61 = vadd.s32 3, %v932_v27 }
 0x209   :  { %v2292_v16 = vxor.u32 2147483648, %v4176_v10  ;;  %vm2564_vm7 = vc.u32 %v5259_v18, %v5262_v11  ;;  %v2565_v14 = vadd.s32 1, %v5263_v59  ;;  %v2562_v15 = vmul.u32 %v5209_v24, %v2546_v57 }
 0x20a   :  { %v2296_v3 = vsel %vm2294_vm6, %v2295_v4, %v4176_v10  ;;  %v922_v13 = vor.u32 4788187, %v921_v1  ;;  %v753_v22 = vand.u32 31, %v751_v38  ;;  %v925_v8 = vcvt.s32.f32 %v918_v40 }
 0x20b   :  { %v2293_v36 = vsel %vm2291_vm5, %v4174_v21, %v2292_v16  ;;  %v2566_v53 = vsel %vm2564_vm7, %v2565_v14, %v5263_v59  ;;  %v5283_v35 = vadd.f32 %v4937_v45, %v4801_v20  ;;  %v5289_v30 = vand.u32 3, %v936_v61 }
 0x20c   :  { %v2297_v27 = vsel %vm2290_vm2, %v2293_v36, %v2296_v3  ;;  %v923_v17 = vand.u32 2147483647, %v922_v13  ;;  %v2567_v46 = vadd.s32 %v2566_v53, %v2562_v15  ;;  %v754_v0 = vsub.s32 32, %v753_v22 }
 0x20d   :  { %v2298_v24 = vsel %vm2287_vm3, nan, %v2297_v27  ;;  %v752_v26 = vshrl.u32 %v751_v38, 5  ;;  %v756_v55 = vshll.u32 %v4354_v33, %v753_v22  ;;  %v759_v48 = vshll.u32 %v4355_v37, %v753_v22 }
 0x20e   :  { %3669 = vst [vmem:[#allocation7 + $0x90] sm:$0xff] %v2298_v24  ;;  %v926_v25 = vmul.f32 %v925_v8, %v923_v17  ;;  %v2568_v58 = vadd.s32 536870912, %v2567_v46  ;;  %v757_v20 = vshrl.u32 %v4355_v37, %v754_v0  ;;  %v760_v42 = vshrl.u32 %v4356_v39, %v754_v0 }
 0x20f   :  { %v762_v49 = vshll.u32 %v4356_v39, %v753_v22  ;;  %v763_v34 = vshrl.u32 %v4357_v41, %v754_v0  ;;  %v766_v29 = vshrl.u32 %v4358_v43, %v754_v0  ;;  %v765_v60 = vshll.u32 %v4357_v41, %v753_v22 }
 0x210   :  { %v927_v19 = vxor.u32 2147483648, %v926_v25  ;;  %v2569_v63 = vshrl.u32 %v2568_v58, 30  ;;  %v758_v32 = vor.u32 %v757_v20, %v756_v55  ;;  %v761_v54 = vor.u32 %v760_v42, %v759_v48 }
 0x211   :  { %v764_v59 = vor.u32 %v763_v34, %v762_v49  ;;  %v768_v12 = vshll.u32 %v4358_v43, %v753_v22  ;;  %v769_v51 = vshrl.u32 %v4359_v50, %v754_v0  ;;  %v767_v57 = vor.u32 %v766_v29, %v765_v60 }
 0x212   :  { %v928_v2 = vsel %vm845_vm11, %v927_v19, %v926_v25  ;;  %v2570_v21 = vshll.u32 %v2569_v63, 30  ;;  %v5303_v38 = vshll.u32 %v747_v5, 8  ;;  %vm771_vm8 = vcmp.lt.s32.totalorder %v752_v26, 1 }
 0x213   :  { %v931_v10 = vsel %vm5202_vm12, %v4945_v6, %v928_v2  ;;  %v770_v4 = vor.u32 %v769_v51, %v768_v12  ;;  %v2406_v40 = vand.u32 2139095040, %v5283_v35  ;;  %vm772_vm9 = vcmp.lt.s32.totalorder %v752_v26, 2 }
 0x214   :  { %4177 = vcosq.f32 %v931_v10  ;;  %v5309_v1 = vsub.s32 %v2567_v46, %v2570_v21  ;;  %vm774_vm10 = vcmp.lt.s32.totalorder %v752_v26, 4  ;;  %v755_v16 = vshrl.u32 %v4354_v33, %v754_v0 }
 0x215   :  { %4179 = vsinq.f32 %v931_v10  ;;  %v776_v61 = vsel %vm774_vm10, %v764_v59, 2102212464  ;;  %v779_v5 = vsel %vm771_vm8, %v758_v32, %v761_v54  ;;  %v2593_v3 = vsub.s32 4, %v2569_v63 }
 0x216   :  { %v2573_v14 = vsub.s32 0, %v5309_v1  ;;  %vm773_vm11 = vcmp.lt.s32.totalorder %v752_v26, 3  ;;  %v780_v28 = vsel %vm774_vm10, %v767_v57, 920167782  ;;  %v775_v13 = vsel %vm771_vm8, %v755_v16, %v758_v32  ;;  %v5343_v26 = vpop.f32.mrb[8].mxu1 }
 0x217   :  { %v781_v15 = vsel %vm773_vm11, %v764_v59, %v780_v28  ;;  %v783_v22 = vsel %vm771_vm8, %v761_v54, %v764_v59  ;;  %v784_v36 = vsel %vm774_vm10, %v770_v4, 1326507024  ;;  %v777_v53 = vsel %vm773_vm11, %v761_v54, %v776_v61 }
 0x218   :  { %v3787_v8 = vmin.u32 %v2573_v14, %v5309_v1  ;;  %v782_v27 = vsel %vm772_vm9, %v779_v5, %v781_v15  ;;  %v785_v17 = vsel %vm773_vm11, %v767_v57, %v784_v36  ;;  %vm2509_vm12 = vcmp.lt.s32.totalorder %v5117_v9, 0 }
 0x219   :  { %v786_v46 = vsel %vm772_vm9, %v783_v22, %v785_v17  ;;  %v5321_v0 = vmul.u32.u64.low %v5303_v38, %v782_v27  ;;  %v5322_v24 = vmul.u32.u64.high %v5303_v38, %v782_v27, %v5321_v0  ;;  %v2594_v25 = vsel %vm2509_vm12, %v2593_v3, %v2569_v63 }
 0x21a   :  { %v2575_v55 = vclz %v3787_v8  ;;  %v2403_v58 = vand.u32 2147483647, %v5283_v35  ;;  %v778_v20 = vsel %vm772_vm9, %v775_v13, %v777_v53  ;;  %v2407_v49 = vshrl.u32 %v2406_v40, 23 }
 0x21b   :  { %v5329_v48 = vmul.u32.u64.low %v5303_v38, %v786_v46  ;;  %v5330_v42 = vmul.u32.u64.high %v5303_v38, %v786_v46, %v5329_v48  ;;  %vm938_vm13 = vcmp.lt.s32.totalorder %v5289_v30, 2  ;;  %vm5335_vm14 = vcmp.le.f32.partialorder %v2507_v62, 0.7853982 }
 0x21c   :  { %v3788_v29 = vadd.s32 4294967294, %v2575_v55  ;;  %v5341_v19 = vadd.f32 %v4937_v45, %v4927_v23  ;;  %vm939_vm15 = vcmp.eq.s32.totalorder %v5289_v30, 0  ;;  %vm942_vm0 = vcmp.eq.s32.totalorder %v5289_v30, 2 }
 0x21d   :  { %v797_v63 = vadd.s32 1, %v5322_v24  ;;  %v3782_v32 = vadd.s32 4294967169, %v2407_v49  ;;  %v2563_v62 = vadd.s32 %v5262_v11, %v5259_v18  ;;  %v2596_v54 = vsel %vm5335_vm14, 0, %v2594_v25 }
 0x21e   :  { %v4178_v60 = vpop.eup %4177  ;;  %vm3789_vm1 = vcmp.lt.s32.totalorder %v3788_v29, 0  ;;  %v794_v23 = vmul.u32 %v5303_v38, %v778_v20  ;;  %vm796_vm2 = vc.u32 %v5330_v42, %v5321_v0  ;;  %v2410_v51 = vand.u32 8388607, %v2403_v58 }
 0x21f   :  { %v4180_v45 = vpop.eup %4179  ;;  %v943_v59 = vxor.u32 2147483648, %v4178_v60  ;;  %v2578_v12 = vsel %vm3789_vm1, 0, %v3788_v29  ;;  %v1054_v10 = vand.u32 2139095040, %v5341_v19  ;;  %v798_v38 = vsel %vm796_vm2, %v797_v63, %v5322_v24 }
 0x220   :  { %v940_v2 = vxor.u32 2147483648, %v4180_v45  ;;  %v2579_v21 = vsub.s32 32, %v2578_v12  ;;  %v2583_v57 = vsub.s32 4294967266, %v2578_v12  ;;  %v2580_v11 = vshll.u32 %v5309_v1, %v2578_v12 }
 0x221   :  { %v944_v18 = vsel %vm942_vm0, %v943_v59, %v4180_v45  ;;  %v2413_v4 = vadd.s32 1, %v3782_v32  ;;  %v799_v5 = vadd.s32 %v798_v38, %v794_v23  ;;  %vm935_vm3 = vweird.f32 %v4945_v6 }
 0x222   :  { %v941_v40 = vsel %vm939_vm15, %v4178_v60, %v940_v2  ;;  %v2581_v16 = vshrl.u32 %v2563_v62, %v2579_v21  ;;  %v2584_v61 = vadd.s32 127, %v2583_v57  ;;  %v2600_v3 = vadd.s32 3, %v2596_v54 }
 0x223   :  { %v945_v14 = vsel %vm938_vm13, %v941_v40, %v944_v18  ;;  %vm2414_vm4 = vcmp.gt.s32.totalorder %v2413_v4, 0  ;;  %v800_v1 = vadd.s32 536870912, %v799_v5  ;;  %v2411_v22 = vor.u32 8388608, %v2410_v51 }
 0x224   :  { %v946_v28 = vsel %vm935_vm3, nan, %v945_v14  ;;  %v2582_v13 = vor.u32 %v2581_v16, %v2580_v11  ;;  %v2585_v15 = vshll.u32 %v2584_v61, 23  ;;  %v2415_v36 = vsel %vm2414_vm4, %v2413_v4, 0 }
 0x225   :  { %3656 = vst [vmem:[#allocation7 + $0x28] sm:$0xff] %v946_v28  ;;  %v801_v53 = vshrl.u32 %v800_v1, 30  ;;  %v1055_v27 = vshrl.u32 %v1054_v10, 23  ;;  %v2417_v17 = vand.u32 31, %v2415_v36  ;;  %v5366_v55 = vand.u32 3, %v2600_v3 }
 0x226   :  { %v2586_v8 = vor.u32 4788187, %v2585_v15  ;;  %v2589_v24 = vcvt.s32.f32 %v2582_v13  ;;  %vm741_vm5 = vcmp.lt.s32.totalorder %v5190_v56, 0  ;;  %v5370_v30 = vadd.s32 %v5321_v0, %v5330_v42 }
 0x227   :  { %v802_v6 = vshll.u32 %v801_v53, 30  ;;  %v2418_v25 = vsub.s32 32, %v2417_v17  ;;  %v5372_v20 = vshll.u32 %v2411_v22, 8  ;;  %v1051_v48 = vand.u32 2147483647, %v5341_v19 }
 0x228   :  { %v2587_v46 = vand.u32 2147483647, %v2586_v8  ;;  %v5377_v63 = vshrl.u32 %v2415_v36, 5  ;;  %v3730_v32 = vadd.s32 4294967169, %v1055_v27  ;;  %v825_v60 = vsub.s32 4, %v801_v53 }
 0x229   :  { %v5375_v29 = vsub.s32 %v799_v5, %v802_v6  ;;  %v2420_v62 = vshll.u32 %v4354_v33, %v2417_v17  ;;  %v2421_v54 = vshrl.u32 %v4355_v37, %v2418_v25  ;;  %v2424_v23 = vshrl.u32 %v4356_v39, %v2418_v25  ;;  %v5424_v6 = vpop.f32.mrb[9].mxu0 }
 0x22a   :  { %v2590_v49 = vmul.f32 %v2589_v24, %v2587_v46  ;;  %vm5384_vm6 = vcmp.le.f32.partialorder %v739_v52, 0.7853982  ;;  %v2423_v59 = vshll.u32 %v4355_v37, %v2417_v17  ;;  %v2427_v12 = vshrl.u32 %v4357_v41, %v2418_v25 }
 0x22b   :  { %v805_v45 = vsub.s32 0, %v5375_v29  ;;  %v2422_v51 = vor.u32 %v2421_v54, %v2420_v62  ;;  %v2426_v2 = vshll.u32 %v4356_v39, %v2417_v17  ;;  %v2429_v21 = vshll.u32 %v4357_v41, %v2417_v17 }
 0x22c   :  { %v2591_v0 = vxor.u32 2147483648, %v2590_v49  ;;  %v2430_v57 = vshrl.u32 %v4358_v43, %v2418_v25  ;;  %v2425_v18 = vor.u32 %v2424_v23, %v2423_v59  ;;  %v2432_v11 = vshll.u32 %v4358_v43, %v2417_v17 }
 0x22d   :  { %v3719_v52 = vmin.u32 %v805_v45, %v5375_v29  ;;  %v2428_v4 = vor.u32 %v2427_v12, %v2426_v2  ;;  %v2433_v16 = vshrl.u32 %v4359_v50, %v2418_v25  ;;  %vm2435_vm7 = vcmp.lt.s32.totalorder %v5377_v63, 1 }
 0x22e   :  { %v2592_v10 = vsel %vm2509_vm12, %v2591_v0, %v2590_v49  ;;  %v2431_v40 = vor.u32 %v2430_v57, %v2429_v21  ;;  %v1061_v5 = vadd.s32 1, %v3730_v32  ;;  %v826_v14 = vsel %vm741_vm5, %v825_v60, %v801_v53 }
 0x22f   :  { %v2595_v38 = vsel %vm5335_vm14, %v5117_v9, %v2592_v10  ;;  %v807_v61 = vclz %v3719_v52  ;;  %v2419_v3 = vshrl.u32 %v4354_v33, %v2418_v25  ;;  %v2434_v28 = vor.u32 %v2433_v16, %v2432_v11 }
 0x230   :  { %4181 = vcosq.f32 %v2595_v38  ;;  %vm2437_vm8 = vcmp.lt.s32.totalorder %v5377_v63, 3  ;;  %vm2438_vm9 = vcmp.lt.s32.totalorder %v5377_v63, 4  ;;  %v2443_v34 = vsel %vm2435_vm7, %v2422_v51, %v2425_v18 }
 0x231   :  { %4183 = vsinq.f32 %v2595_v38  ;;  %v3720_v13 = vadd.s32 4294967294, %v807_v61  ;;  %v2440_v15 = vsel %vm2438_vm9, %v2428_v4, 2102212464  ;;  %v2444_v1 = vsel %vm2438_vm9, %v2431_v40, 920167782 }
 0x232   :  { %v2447_v22 = vsel %vm2435_vm7, %v2425_v18, %v2428_v4  ;;  %v2448_v36 = vsel %vm2438_vm9, %v2434_v28, 1326507024  ;;  %vm2436_vm11 = vcmp.lt.s32.totalorder %v5377_v63, 2  ;;  %v2445_v8 = vsel %vm2437_vm8, %v2428_v4, %v2444_v1  ;;  %v5454_v63 = vld [vmem:[%s7063_s2] ss:$0 sm:$0xff] }
 0x233   :  { %vm3721_vm10 = vcmp.lt.s32.totalorder %v3720_v13, 0  ;;  %v2449_v53 = vsel %vm2437_vm8, %v2431_v40, %v2448_v36  ;;  %vm2603_vm12 = vcmp.eq.s32.totalorder %v5366_v55, 0  ;;  %v828_v17 = vsel %vm5384_vm6, 0, %v826_v14 }
 0x234   :  { %v810_v27 = vsel %vm3721_vm10, 0, %v3720_v13  ;;  %v2446_v46 = vsel %vm2436_vm11, %v2443_v34, %v2445_v8  ;;  %v2450_v24 = vsel %vm2436_vm11, %v2447_v22, %v2449_v53  ;;  %vm2602_vm13 = vcmp.lt.s32.totalorder %v5366_v55, 2 }
 0x235   :  { %v811_v25 = vsub.s32 32, %v810_v27  ;;  %v815_v49 = vsub.s32 4294967266, %v810_v27  ;;  %v2439_v32 = vsel %vm2435_vm7, %v2419_v3, %v2422_v51  ;;  %v2441_v60 = vsel %vm2437_vm8, %v2425_v18, %v2440_v15 }
 0x236   :  { %vm2599_vm14 = vweird.f32 %v5117_v9  ;;  %v5433_v62 = vmul.u32.u64.low %v5372_v20, %v2450_v24  ;;  %v5434_v54 = vmul.u32.u64.high %v5372_v20, %v2450_v24, %v5433_v62  ;;  %v812_v45 = vshll.u32 %v5375_v29, %v810_v27 }
 0x237   :  { %v5437_v23 = vmul.u32.u64.low %v5372_v20, %v2446_v46  ;;  %v5438_v0 = vmul.u32.u64.high %v5372_v20, %v2446_v46, %v5437_v23  ;;  %v813_v59 = vshrl.u32 %v5370_v30, %v811_v25  ;;  %v816_v12 = vadd.s32 127, %v815_v49 }
 0x238   :  { %vm1062_vm15 = vcmp.gt.s32.totalorder %v1061_v5, 0  ;;  %v832_v51 = vadd.s32 3, %v828_v17  ;;  %v2442_v2 = vsel %vm2436_vm11, %v2439_v32, %v2441_v60  ;;  %v1058_v21 = vand.u32 8388607, %v1051_v48 }
 0x239   :  { %v1063_v57 = vsel %vm1062_vm15, %v1061_v5, 0  ;;  %vm2606_vm0 = vcmp.eq.s32.totalorder %v5366_v55, 2  ;;  %v814_v52 = vor.u32 %v813_v59, %v812_v45  ;;  %v817_v18 = vshll.u32 %v816_v12, 23 }
 0x23a   :  { %v4182_v10 = vpop.eup %4181  ;;  %v1065_v11 = vand.u32 31, %v1063_v57  ;;  %vm2460_vm1 = vc.u32 %v5434_v54, %v5437_v23  ;;  %v2461_v30 = vadd.s32 1, %v5438_v0  ;;  %v5458_v4 = vadd.f32 %v5454_v63, %v4975_v47 }
 0x23b   :  { %v4184_v38 = vpop.eup %4183  ;;  %v2607_v29 = vxor.u32 2147483648, %v4182_v10  ;;  %v818_v16 = vor.u32 4788187, %v817_v18  ;;  %v2458_v61 = vmul.u32 %v5372_v20, %v2442_v2  ;;  %v5461_v3 = vand.u32 3, %v832_v51 }
 0x23c   :  { %v2604_v40 = vxor.u32 2147483648, %v4184_v38  ;;  %v1066_v5 = vsub.s32 32, %v1065_v11  ;;  %v2462_v28 = vsel %vm2460_vm1, %v2461_v30, %v5438_v0  ;;  %v1059_v13 = vor.u32 8388608, %v1058_v21 }
 0x23d   :  { %v2608_v14 = vsel %vm2606_vm0, %v2607_v29, %v4184_v38  ;;  %v819_v15 = vand.u32 2147483647, %v818_v16  ;;  %v821_v1 = vcvt.s32.f32 %v814_v52  ;;  %v2463_v22 = vadd.s32 %v2462_v28, %v2458_v61 }
 0x23e   :  { %v2605_v34 = vsel %vm2603_vm12, %v4182_v10, %v2604_v40  ;;  %v1068_v36 = vshll.u32 %v4354_v33, %v1065_v11  ;;  %v1069_v20 = vshrl.u32 %v4355_v37, %v1066_v5  ;;  %v1072_v8 = vshrl.u32 %v4356_v39, %v1066_v5 }
 0x23f   :  { %v2609_v47 = vsel %vm2602_vm13, %v2605_v34, %v2608_v14  ;;  %v822_v27 = vmul.f32 %v821_v1, %v819_v15  ;;  %v2464_v17 = vadd.s32 536870912, %v2463_v22  ;;  %v1075_v46 = vshrl.u32 %v4357_v41, %v1066_v5 }
 0x240   :  { %v2610_v53 = vsel %vm2599_vm14, nan, %v2609_v47  ;;  %v1064_v24 = vshrl.u32 %v1063_v57, 5  ;;  %v1071_v25 = vshll.u32 %v4355_v37, %v1065_v11  ;;  %v1074_v55 = vshll.u32 %v4356_v39, %v1065_v11 }
 0x241   :  { %3672 = vst [vmem:[#allocation7 + $0xa8] sm:$0xff] %v2610_v53  ;;  %v1078_v49 = vshrl.u32 %v4358_v43, %v1066_v5  ;;  %v823_v32 = vxor.u32 2147483648, %v822_v27  ;;  %v2465_v60 = vshrl.u32 %v2464_v17, 30  ;;  %v1070_v62 = vor.u32 %v1069_v20, %v1068_v36 }
 0x242   :  { %v1077_v0 = vshll.u32 %v4357_v41, %v1065_v11  ;;  %v1073_v45 = vor.u32 %v1072_v8, %v1071_v25  ;;  %v1076_v9 = vor.u32 %v1075_v46, %v1074_v55  ;;  %v1080_v59 = vshll.u32 %v4358_v43, %v1065_v11  ;;  %v5499_v8 = vpop.f32.mrb[9].mxu1 }
 0x243   :  { %v1081_v12 = vshrl.u32 %v4359_v50, %v1066_v5  ;;  %v824_v51 = vsel %vm741_vm5, %v823_v32, %v822_v27  ;;  %v2466_v2 = vshll.u32 %v2465_v60, 30  ;;  %v5482_v57 = vshll.u32 %v1059_v13, 8 }
 0x244   :  { %v1079_v21 = vor.u32 %v1078_v49, %v1077_v0  ;;  %v827_v10 = vsel %vm5384_vm6, %v5190_v56, %v824_v51  ;;  %v1067_v52 = vshrl.u32 %v4354_v33, %v1066_v5  ;;  %v2718_v38 = vand.u32 2139095040, %v5458_v4 }
 0x245   :  { %v1082_v18 = vor.u32 %v1081_v12, %v1080_v59  ;;  %4185 = vcosq.f32 %v827_v10  ;;  %v5489_v11 = vsub.s32 %v2463_v22, %v2466_v2  ;;  %vm1083_vm2 = vcmp.lt.s32.totalorder %v1064_v24, 1 }
 0x246   :  { %vm1086_vm3 = vcmp.lt.s32.totalorder %v1064_v24, 4  ;;  %4187 = vsinq.f32 %v827_v10  ;;  %vm1084_vm4 = vcmp.lt.s32.totalorder %v1064_v24, 2  ;;  %v1091_v30 = vsel %vm1083_vm2, %v1070_v62, %v1073_v45 }
 0x247   :  { %v1088_v29 = vsel %vm1086_vm3, %v1076_v9, 2102212464  ;;  %v2469_v40 = vsub.s32 0, %v5489_v11  ;;  %v2489_v16 = vsub.s32 4, %v2465_v60  ;;  %vm1085_vm5 = vcmp.lt.s32.totalorder %v1064_v24, 3 }
 0x248   :  { %v1092_v42 = vsel %vm1086_vm3, %v1079_v21, 920167782  ;;  %v1087_v61 = vsel %vm1083_vm2, %v1067_v52, %v1070_v62  ;;  %v1095_v5 = vsel %vm1083_vm2, %v1073_v45, %v1076_v9  ;;  %v1096_v28 = vsel %vm1086_vm3, %v1082_v18, 1326507024 }
 0x249   :  { %v1093_v14 = vsel %vm1085_vm5, %v1076_v9, %v1092_v42  ;;  %v3783_v13 = vmin.u32 %v2469_v40, %v5489_v11  ;;  %v1089_v34 = vsel %vm1085_vm5, %v1073_v45, %v1088_v29  ;;  %v1097_v1 = vsel %vm1085_vm5, %v1079_v21, %v1096_v28 }
 0x24a   :  { %v1094_v15 = vsel %vm1084_vm4, %v1091_v30, %v1093_v14  ;;  %v1098_v22 = vsel %vm1084_vm4, %v1095_v5, %v1097_v1  ;;  %v2719_v20 = vshrl.u32 %v2718_v38, 23  ;;  %vm5503_vm6 = vcmp.le.f32.partialorder %v2403_v58, 0.7853982 }
 0x24b   :  { %v5496_v47 = vmul.u32.u64.low %v5482_v57, %v1094_v15  ;;  %v5497_v36 = vmul.u32.u64.high %v5482_v57, %v1094_v15, %v5496_v47  ;;  %vm2405_vm7 = vcmp.lt.s32.totalorder %v5283_v35, 0  ;;  %v2471_v27 = vclz %v3783_v13 }
 0x24c   :  { %vm831_vm8 = vweird.f32 %v5190_v56  ;;  %v2490_v17 = vsel %vm2405_vm7, %v2489_v16, %v2465_v60  ;;  %v5512_v46 = vmul.u32.u64.low %v5482_v57, %v1098_v22  ;;  %v5513_v25 = vmul.u32.u64.high %v5482_v57, %v1098_v22, %v5512_v46 }
 0x24d   :  { %v3794_v55 = vadd.s32 4294967169, %v2719_v20  ;;  %v3784_v49 = vadd.s32 4294967294, %v2471_v27  ;;  %v1090_v32 = vsel %vm1084_vm4, %v1087_v61, %v1089_v34  ;;  %v2715_v58 = vand.u32 2147483647, %v5458_v4 }
 0x24e   :  { %v5519_v62 = vadd.f32 %v5454_v63, %v5067_v7  ;;  %vm834_vm9 = vcmp.lt.s32.totalorder %v5461_v3, 2  ;;  %vm835_vm10 = vcmp.eq.s32.totalorder %v5461_v3, 0  ;;  %v1109_v60 = vadd.s32 1, %v5497_v36 }
 0x24f   :  { %v2725_v0 = vadd.s32 1, %v3794_v55  ;;  %v4186_v45 = vpop.eup %4185  ;;  %vm838_vm11 = vcmp.eq.s32.totalorder %v5461_v3, 2  ;;  %v2459_v24 = vadd.s32 %v5437_v23, %v5434_v54  ;;  %vm3785_vm12 = vcmp.lt.s32.totalorder %v3784_v49, 0 }
 0x250   :  { %v2492_v9 = vsel %vm5503_vm6, 0, %v2490_v17  ;;  %v4188_v59 = vpop.eup %4187  ;;  %v839_v7 = vxor.u32 2147483648, %v4186_v45  ;;  %v2474_v12 = vsel %vm3785_vm12, 0, %v3784_v49  ;;  %v1106_v51 = vmul.u32 %v5482_v57, %v1090_v32 }
 0x251   :  { %vm1108_vm13 = vc.u32 %v5513_v25, %v5496_v47  ;;  %v836_v2 = vxor.u32 2147483648, %v4188_v59  ;;  %v2475_v21 = vsub.s32 32, %v2474_v12  ;;  %v2479_v10 = vsub.s32 4294967266, %v2474_v12 }
 0x252   :  { %v2722_v52 = vand.u32 8388607, %v2715_v58  ;;  %v840_v18 = vsel %vm838_vm11, %v839_v7, %v4188_v59  ;;  %v2476_v54 = vshll.u32 %v5489_v11, %v2474_v12  ;;  %v1110_v23 = vsel %vm1108_vm13, %v1109_v60, %v5497_v36 }
 0x253   :  { %vm2726_vm14 = vcmp.gt.s32.totalorder %v2725_v0, 0  ;;  %v837_v38 = vsel %vm835_vm10, %v4186_v45, %v836_v2  ;;  %v2477_v29 = vshrl.u32 %v2459_v24, %v2475_v21  ;;  %v2480_v30 = vadd.s32 127, %v2479_v10 }
 0x254   :  { %v1111_v57 = vadd.s32 %v1110_v23, %v1106_v51  ;;  %v841_v40 = vsel %vm834_vm9, %v837_v38, %v840_v18  ;;  %v2496_v16 = vadd.s32 3, %v2492_v9  ;;  %v2727_v42 = vsel %vm2726_vm14, %v2725_v0, 0 }
 0x255   :  { %v947_v61 = vand.u32 2147483647, %v5519_v62  ;;  %v842_v14 = vsel %vm831_vm8, nan, %v841_v40  ;;  %v2478_v11 = vor.u32 %v2477_v29, %v2476_v54  ;;  %v2481_v5 = vshll.u32 %v2480_v30, 23 }
 0x256   :  { %v1112_v28 = vadd.s32 536870912, %v1111_v57  ;;  %3655 = vst [vmem:[#allocation7 + $0x20] sm:$0xff] %v842_v14  ;;  %v2723_v13 = vor.u32 8388608, %v2722_v52  ;;  %v2729_v34 = vand.u32 31, %v2727_v42  ;;  %v5544_v22 = vand.u32 3, %v2496_v16 }
 0x257   :  { %v2482_v15 = vor.u32 4788187, %v2481_v5  ;;  %v950_v36 = vand.u32 2139095040, %v5519_v62  ;;  %v5549_v20 = vand.u32 8388607, %v947_v61  ;;  %v2485_v27 = vcvt.s32.f32 %v2478_v11 }
 0x258   :  { %v5542_v1 = vshrl.u32 %v1112_v28, 30  ;;  %v2730_v3 = vsub.s32 32, %v2729_v34  ;;  %v5552_v17 = vadd.s32 %v5496_v47, %v5513_v25  ;;  %v5558_v60 = vshll.u32 %v2723_v13, 8 }
 0x259   :  { %v2483_v56 = vand.u32 2147483647, %v2482_v15  ;;  %v2732_v24 = vshll.u32 %v4354_v33, %v2729_v34  ;;  %v2728_v59 = vshrl.u32 %v2727_v42, 5  ;;  %v2735_v47 = vshll.u32 %v4355_v37, %v2729_v34 }
 0x25a   :  { %v1114_v46 = vshll.u32 %v5542_v1, 30  ;;  %v2733_v55 = vshrl.u32 %v4355_v37, %v2730_v3  ;;  %v2736_v49 = vshrl.u32 %v4356_v39, %v2730_v3  ;;  %v2739_v32 = vshrl.u32 %v4357_v41, %v2730_v3 }
 0x25b   :  { %v2486_v0 = vmul.f32 %v2485_v27, %v2483_v56  ;;  %v2742_v9 = vshrl.u32 %v4358_v43, %v2730_v3  ;;  %v2738_v25 = vshll.u32 %v4356_v39, %v2729_v34  ;;  %v951_v7 = vshrl.u32 %v950_v36, 23 }
 0x25c   :  { %v5560_v45 = vsub.s32 %v1111_v57, %v1114_v46  ;;  %v2734_v2 = vor.u32 %v2733_v55, %v2732_v24  ;;  %v2741_v21 = vshll.u32 %v4357_v41, %v2729_v34  ;;  %v2737_v10 = vor.u32 %v2736_v49, %v2735_v47 }
 0x25d   :  { %v2487_v12 = vxor.u32 2147483648, %v2486_v0  ;;  %v2740_v52 = vor.u32 %v2739_v32, %v2738_v25  ;;  %v2744_v18 = vshll.u32 %v4358_v43, %v2729_v34  ;;  %v2745_v54 = vshrl.u32 %v4359_v50, %v2730_v3 }
 0x25e   :  { %v1117_v51 = vsub.s32 0, %v5560_v45  ;;  %v2743_v29 = vor.u32 %v2742_v9, %v2741_v21  ;;  %v955_v30 = vor.u32 8388608, %v5549_v20  ;;  %v2731_v40 = vshrl.u32 %v4354_v33, %v2730_v3 }
 0x25f   :  { %v2488_v23 = vsel %vm2405_vm7, %v2487_v12, %v2486_v0  ;;  %v2746_v16 = vor.u32 %v2745_v54, %v2744_v18  ;;  %v3726_v42 = vadd.s32 4294967169, %v951_v7  ;;  %vm2747_vm15 = vcmp.lt.s32.totalorder %v2728_v59, 1 }
 0x260   :  { %v3731_v38 = vmin.u32 %v1117_v51, %v5560_v45  ;;  %v2491_v57 = vsel %vm5503_vm6, %v5283_v35, %v2488_v23  ;;  %vm2750_vm0 = vcmp.lt.s32.totalorder %v2728_v59, 4  ;;  %vm1053_vm1 = vcmp.lt.s32.totalorder %v5341_v19, 0  ;;  %v5593_v51 = vpop.f32.mrb[10].mxu0 }
 0x261   :  { %4189 = vcosq.f32 %v2491_v57  ;;  %vm2748_vm2 = vcmp.lt.s32.totalorder %v2728_v59, 2  ;;  %v2752_v11 = vsel %vm2750_vm0, %v2740_v52, 2102212464  ;;  %v2755_v5 = vsel %vm2747_vm15, %v2734_v2, %v2737_v10 }
 0x262   :  { %v1119_v14 = vclz %v3731_v38  ;;  %4191 = vsinq.f32 %v2491_v57  ;;  %vm2749_vm3 = vcmp.lt.s32.totalorder %v2728_v59, 3  ;;  %v2756_v13 = vsel %vm2750_vm0, %v2743_v29, 920167782 }
 0x263   :  { %v2759_v34 = vsel %vm2747_vm15, %v2737_v10, %v2740_v52  ;;  %v2751_v53 = vsel %vm2747_vm15, %v2731_v40, %v2734_v2  ;;  %v2757_v15 = vsel %vm2749_vm3, %v2740_v52, %v2756_v13  ;;  %v2760_v36 = vsel %vm2750_vm0, %v2746_v16, 1326507024 }
 0x264   :  { %v3732_v28 = vadd.s32 4294967294, %v1119_v14  ;;  %v957_v3 = vadd.s32 1, %v3726_v42  ;;  %v2753_v20 = vsel %vm2749_vm3, %v2737_v10, %v2752_v11  ;;  %v2758_v56 = vsel %vm2748_vm2, %v2755_v5, %v2757_v15 }
 0x265   :  { %v2761_v27 = vsel %vm2749_vm3, %v2743_v29, %v2760_v36  ;;  %v5582_v49 = vmul.u32.u64.low %v5558_v60, %v2758_v56  ;;  %v5583_v32 = vmul.u32.u64.high %v5558_v60, %v2758_v56, %v5582_v49  ;;  %v1137_v9 = vsub.s32 4, %v5542_v1 }
 0x266   :  { %vm3733_vm4 = vcmp.lt.s32.totalorder %v3732_v28, 0  ;;  %v2762_v55 = vsel %vm2748_vm2, %v2759_v34, %v2761_v27  ;;  %vm958_vm5 = vcmp.gt.s32.totalorder %v957_v3, 0  ;;  %vm2495_vm6 = vweird.f32 %v5283_v35 }
 0x267   :  { %v1122_v46 = vsel %vm3733_vm4, 0, %v3732_v28  ;;  %v2754_v47 = vsel %vm2748_vm2, %v2751_v53, %v2753_v20  ;;  %v5590_v25 = vmul.u32.u64.low %v5558_v60, %v2762_v55  ;;  %v5591_v7 = vmul.u32.u64.high %v5558_v60, %v2762_v55, %v5590_v25 }
 0x268   :  { %v1123_v0 = vsub.s32 32, %v1122_v46  ;;  %v1127_v24 = vsub.s32 4294967266, %v1122_v46  ;;  %v959_v12 = vsel %vm958_vm5, %v957_v3, 0  ;;  %v1124_v2 = vshll.u32 %v5560_v45, %v1122_v46 }
 0x269   :  { %v961_v52 = vand.u32 31, %v959_v12  ;;  %vm2498_vm7 = vcmp.lt.s32.totalorder %v5544_v22, 2  ;;  %vm2499_vm8 = vcmp.eq.s32.totalorder %v5544_v22, 0  ;;  %vm5601_vm9 = vcmp.le.f32.partialorder %v1051_v48, 0.7853982 }
 0x26a   :  { %v1125_v21 = vshrl.u32 %v5552_v17, %v1123_v0  ;;  %v1128_v10 = vadd.s32 127, %v1127_v24  ;;  %v2773_v18 = vadd.s32 1, %v5583_v32  ;;  %vm2502_vm10 = vcmp.eq.s32.totalorder %v5544_v22, 2 }
 0x26b   :  { %v4190_v54 = vpop.eup %4189  ;;  %v1138_v17 = vsel %vm1053_vm1, %v1137_v9, %v5542_v1  ;;  %v2770_v57 = vmul.u32 %v5558_v60, %v2754_v47  ;;  %vm2772_vm11 = vc.u32 %v5591_v7, %v5582_v49  ;;  %v962_v48 = vsub.s32 32, %v961_v52 }
 0x26c   :  { %v1126_v45 = vor.u32 %v1125_v21, %v1124_v2  ;;  %v1129_v23 = vshll.u32 %v1128_v10, 23  ;;  %v4192_v38 = vpop.eup %4191  ;;  %v2503_v29 = vxor.u32 2147483648, %v4190_v54  ;;  %v2774_v42 = vsel %vm2772_vm11, %v2773_v18, %v5583_v32 }
 0x26d   :  { %v2500_v40 = vxor.u32 2147483648, %v4192_v38  ;;  %v5614_v14 = vshll.u32 %v955_v30, 8  ;;  %v1140_v5 = vsel %vm5601_vm9, 0, %v1138_v17  ;;  %v2775_v28 = vadd.s32 %v2774_v42, %v2770_v57 }
 0x26e   :  { %v1130_v16 = vor.u32 4788187, %v1129_v23  ;;  %v2504_v11 = vsel %vm2502_vm10, %v2503_v29, %v4192_v38  ;;  %v5620_v1 = vadd.f32 %v5454_v63, %v5148_v44  ;;  %v1133_v34 = vcvt.s32.f32 %v1126_v45 }
 0x26f   :  { %v2501_v60 = vsel %vm2499_vm8, %v4190_v54, %v2500_v40  ;;  %v5624_v53 = vshrl.u32 %v959_v12, 5  ;;  %v2776_v15 = vadd.s32 536870912, %v2775_v28  ;;  %v965_v36 = vshrl.u32 %v4355_v37, %v962_v48 }
 0x270   :  { %v1131_v13 = vand.u32 2147483647, %v1130_v16  ;;  %v2505_v30 = vsel %vm2498_vm7, %v2501_v60, %v2504_v11  ;;  %v968_v3 = vshrl.u32 %v4356_v39, %v962_v48  ;;  %v964_v56 = vshll.u32 %v4354_v33, %v961_v52 }
 0x271   :  { %v2506_v20 = vsel %vm2495_vm6, nan, %v2505_v30  ;;  %v971_v27 = vshrl.u32 %v4357_v41, %v962_v48  ;;  %v2777_v46 = vshrl.u32 %v2776_v15, 30  ;;  %v967_v55 = vshll.u32 %v4355_v37, %v961_v52 }
 0x272   :  { %v1134_v44 = vmul.f32 %v1133_v34, %v1131_v13  ;;  %3671 = vst [vmem:[#allocation7 + $0xa0] sm:$0xff] %v2506_v20  ;;  %v970_v22 = vshll.u32 %v4356_v39, %v961_v52  ;;  %v974_v32 = vshrl.u32 %v4358_v43, %v962_v48  ;;  %v973_v24 = vshll.u32 %v4357_v41, %v961_v52 }
 0x273   :  { %v976_v9 = vshll.u32 %v4358_v43, %v961_v52  ;;  %v977_v35 = vshrl.u32 %v4359_v50, %v962_v48  ;;  %v1144_v47 = vadd.s32 3, %v1140_v5  ;;  %v2778_v25 = vshll.u32 %v2777_v46, 30 }
 0x274   :  { %v1135_v0 = vxor.u32 2147483648, %v1134_v44  ;;  %v966_v12 = vor.u32 %v965_v36, %v964_v56  ;;  %v969_v2 = vor.u32 %v968_v3, %v967_v55  ;;  %v972_v10 = vor.u32 %v971_v27, %v970_v22 }
 0x275   :  { %v975_v18 = vor.u32 %v974_v32, %v973_v24  ;;  %v978_v54 = vor.u32 %v977_v35, %v976_v9  ;;  %v5645_v23 = vsub.s32 %v2775_v28, %v2778_v25  ;;  %v963_v52 = vshrl.u32 %v4354_v33, %v962_v48 }
 0x276   :  { %v1136_v21 = vsel %vm1053_vm1, %v1135_v0, %v1134_v44  ;;  %v2614_v17 = vand.u32 2139095040, %v5620_v1  ;;  %vm979_vm12 = vcmp.lt.s32.totalorder %v5624_v53, 1  ;;  %vm980_vm13 = vcmp.lt.s32.totalorder %v5624_v53, 2 }
 0x277   :  { %v1139_v45 = vsel %vm5601_vm9, %v5341_v19, %v1136_v21  ;;  %vm981_vm14 = vcmp.lt.s32.totalorder %v5624_v53, 3  ;;  %v2781_v38 = vsub.s32 0, %v5645_v23  ;;  %vm982_vm15 = vcmp.lt.s32.totalorder %v5624_v53, 4 }
 0x278   :  { %4193 = vcosq.f32 %v1139_v45  ;;  %v987_v59 = vsel %vm979_vm12, %v966_v12, %v969_v2  ;;  %v984_v29 = vsel %vm982_vm15, %v972_v10, 2102212464  ;;  %v988_v57 = vsel %vm982_vm15, %v975_v18, 920167782 }
 0x279   :  { %4195 = vsinq.f32 %v1139_v45  ;;  %v991_v48 = vsel %vm979_vm12, %v969_v2, %v972_v10  ;;  %v992_v40 = vsel %vm982_vm15, %v978_v54, 1326507024  ;;  %v3795_v16 = vmin.u32 %v2781_v38, %v5645_v23 }
 0x27a   :  { %v2801_v42 = vsub.s32 4, %v2777_v46  ;;  %v989_v11 = vsel %vm981_vm14, %v972_v10, %v988_v57  ;;  %v993_v5 = vsel %vm981_vm14, %v975_v18, %v992_v40  ;;  %v1145_v28 = vand.u32 3, %v1144_v47 }
 0x27b   :  { %v990_v60 = vsel %vm980_vm13, %v987_v59, %v989_v11  ;;  %v994_v13 = vsel %vm980_vm13, %v991_v48, %v993_v5  ;;  %v2615_v34 = vshrl.u32 %v2614_v17, 23  ;;  %vm2717_vm0 = vcmp.lt.s32.totalorder %v5458_v4, 0 }
 0x27c   :  { %v2783_v30 = vclz %v3795_v16  ;;  %v983_v15 = vsel %vm979_vm12, %v963_v52, %v966_v12  ;;  %v985_v36 = vsel %vm981_vm14, %v969_v2, %v984_v29  ;;  %vm1143_vm1 = vweird.f32 %v5341_v19 }
 0x27d   :  { %v5673_v3 = vmul.u32.u64.low %v5614_v14, %v994_v13  ;;  %v5674_v20 = vmul.u32.u64.high %v5614_v14, %v994_v13, %v5673_v3  ;;  %v5677_v44 = vmul.u32.u64.low %v5614_v14, %v990_v60  ;;  %v5678_v56 = vmul.u32.u64.high %v5614_v14, %v990_v60, %v5677_v44 }
 0x27e   :  { %vm5684_vm2 = vcmp.le.f32.partialorder %v2715_v58, 0.7853982  ;;  %v3796_v55 = vadd.s32 4294967294, %v2783_v30  ;;  %v2802_v22 = vsel %vm2717_vm0, %v2801_v42, %v2777_v46  ;;  %v3790_v32 = vadd.s32 4294967169, %v2615_v34 }
 0x27f   :  { %vm1146_vm3 = vcmp.lt.s32.totalorder %v1145_v28, 2  ;;  %vm1147_vm4 = vcmp.eq.s32.totalorder %v1145_v28, 0  ;;  %vm1150_vm5 = vcmp.eq.s32.totalorder %v1145_v28, 2  ;;  %v986_v0 = vsel %vm980_vm13, %v983_v15, %v985_v36 }
 0x280   :  { %v2771_v24 = vadd.s32 %v5582_v49, %v5591_v7  ;;  %vm3797_vm6 = vcmp.lt.s32.totalorder %v3796_v55, 0  ;;  %v2611_v58 = vand.u32 2147483647, %v5620_v1  ;;  %v2621_v9 = vadd.s32 1, %v3790_v32 }
 0x281   :  { %v2786_v47 = vsel %vm3797_vm6, 0, %v3796_v55  ;;  %v2804_v25 = vsel %vm5684_vm2, 0, %v2802_v22  ;;  %vm1004_vm7 = vc.u32 %v5674_v20, %v5677_v44  ;;  %v1005_v46 = vadd.s32 1, %v5678_v56  ;;  %v5722_v55 = vpop.f32.mrb[10].mxu1 }
 0x282   :  { %v4194_v35 = vpop.eup %4193  ;;  %v2787_v2 = vsub.s32 32, %v2786_v47  ;;  %v2791_v21 = vsub.s32 4294967266, %v2786_v47  ;;  %v1002_v49 = vmul.u32 %v5614_v14, %v986_v0  ;;  %v2788_v10 = vshll.u32 %v5645_v23, %v2786_v47 }
 0x283   :  { %v4196_v12 = vpop.eup %4195  ;;  %v1151_v53 = vxor.u32 2147483648, %v4194_v35  ;;  %v1006_v18 = vsel %vm1004_vm7, %v1005_v46, %v5678_v56  ;;  %vm2622_vm8 = vcmp.gt.s32.totalorder %v2621_v9, 0  ;;  %v2808_v59 = vadd.s32 3, %v2804_v25 }
 0x284   :  { %v1148_v7 = vxor.u32 2147483648, %v4196_v12  ;;  %v2789_v45 = vshrl.u32 %v2771_v24, %v2787_v2  ;;  %v2792_v52 = vadd.s32 127, %v2791_v21  ;;  %v1007_v17 = vadd.s32 %v1006_v18, %v1002_v49 }
 0x285   :  { %v1152_v54 = vsel %vm1150_vm5, %v1151_v53, %v4196_v12  ;;  %v2618_v29 = vand.u32 8388607, %v2611_v58  ;;  %v2623_v57 = vsel %vm2622_vm8, %v2621_v9, 0  ;;  %v5712_v15 = vand.u32 3, %v2808_v59 }
 0x286   :  { %v1149_v38 = vsel %vm1147_vm4, %v4194_v35, %v1148_v7  ;;  %v2790_v48 = vor.u32 %v2789_v45, %v2788_v10  ;;  %v2793_v40 = vshll.u32 %v2792_v52, 23  ;;  %v1008_v23 = vadd.s32 536870912, %v1007_v17 }
 0x287   :  { %v1153_v14 = vsel %vm1146_vm3, %v1149_v38, %v1152_v54  ;;  %v2625_v42 = vand.u32 31, %v2623_v57  ;;  %v2619_v60 = vor.u32 8388608, %v2618_v29  ;;  %v5720_v56 = vadd.f32 %v5454_v63, %v5267_v31 }
 0x288   :  { %v1154_v16 = vsel %vm1143_vm1, nan, %v1153_v14  ;;  %v2794_v11 = vor.u32 4788187, %v2793_v40  ;;  %v5710_v5 = vshrl.u32 %v1008_v23, 30  ;;  %v2797_v30 = vcvt.s32.f32 %v2790_v48 }
 0x289   :  { %3658 = vst [vmem:[#allocation7 + $0x38] sm:$0xff] %v1154_v16  ;;  %v2626_v13 = vsub.s32 32, %v2625_v42  ;;  %v2628_v0 = vshll.u32 %v4354_v33, %v2625_v42  ;;  %v2624_v9 = vshrl.u32 %v2623_v57, 5  ;;  %v2631_v35 = vshll.u32 %v4355_v37, %v2625_v42 }
 0x28a   :  { %v2795_v34 = vand.u32 2147483647, %v2794_v11  ;;  %v1010_v28 = vshll.u32 %v5710_v5, 30  ;;  %v2634_v47 = vshll.u32 %v4356_v39, %v2625_v42  ;;  %v5730_v25 = vshll.u32 %v2619_v60, 8 }
 0x28b   :  { %v2629_v36 = vshrl.u32 %v4355_v37, %v2626_v13  ;;  %v2632_v3 = vshrl.u32 %v4356_v39, %v2626_v13  ;;  %v2635_v19 = vshrl.u32 %v4357_v41, %v2626_v13  ;;  %v2638_v24 = vshrl.u32 %v4358_v43, %v2626_v13 }
 0x28c   :  { %v2798_v22 = vmul.f32 %v2797_v30, %v2795_v34  ;;  %v5724_v32 = vsub.s32 %v1007_v17, %v1010_v28  ;;  %v2637_v53 = vshll.u32 %v4357_v41, %v2625_v42  ;;  %v2640_v49 = vshll.u32 %v4358_v43, %v2625_v42 }
 0x28d   :  { %v2630_v12 = vor.u32 %v2629_v36, %v2628_v0  ;;  %v2633_v2 = vor.u32 %v2632_v3, %v2631_v35  ;;  %v2636_v21 = vor.u32 %v2635_v19, %v2634_v47  ;;  %v2641_v7 = vshrl.u32 %v4359_v50, %v2626_v13 }
 0x28e   :  { %v2799_v46 = vxor.u32 2147483648, %v2798_v22  ;;  %v1013_v31 = vsub.s32 0, %v5724_v32  ;;  %vm949_vm9 = vcmp.lt.s32.totalorder %v5519_v62, 0  ;;  %v2639_v54 = vor.u32 %v2638_v24, %v2637_v53 }
 0x28f   :  { %v1262_v45 = vand.u32 2139095040, %v5720_v56  ;;  %v1033_v17 = vsub.s32 4, %v5710_v5  ;;  %v2627_v38 = vshrl.u32 %v4354_v33, %v2626_v13  ;;  %v2642_v59 = vor.u32 %v2641_v7, %v2640_v49 }
 0x290   :  { %v2800_v10 = vsel %vm2717_vm0, %v2799_v46, %v2798_v22  ;;  %v3727_v18 = vmin.u32 %v1013_v31, %v5724_v32  ;;  %vm2643_vm10 = vcmp.lt.s32.totalorder %v2624_v9, 1  ;;  %vm2646_vm11 = vcmp.lt.s32.totalorder %v2624_v9, 4 }
 0x291   :  { %v2803_v52 = vsel %vm5684_vm2, %v5458_v4, %v2800_v10  ;;  %vm5748_vm12 = vcmp.le.f32.partialorder %v947_v61, 0.7853982  ;;  %vm2644_vm13 = vcmp.lt.s32.totalorder %v2624_v9, 2  ;;  %v2648_v14 = vsel %vm2646_vm11, %v2636_v21, 2102212464 }
 0x292   :  { %4197 = vcosq.f32 %v2803_v52  ;;  %v1015_v29 = vclz %v3727_v18  ;;  %v2651_v27 = vsel %vm2643_vm10, %v2630_v12, %v2633_v2  ;;  %vm2645_vm14 = vcmp.lt.s32.totalorder %v2624_v9, 3 }
 0x293   :  { %4199 = vsinq.f32 %v2803_v52  ;;  %v2652_v40 = vsel %vm2646_vm11, %v2639_v54, 920167782  ;;  %v2655_v23 = vsel %vm2643_vm10, %v2633_v2, %v2636_v21  ;;  %v2647_v16 = vsel %vm2643_vm10, %v2627_v38, %v2630_v12 }
 0x294   :  { %v3728_v48 = vadd.s32 4294967294, %v1015_v29  ;;  %v2653_v42 = vsel %vm2645_vm14, %v2636_v21, %v2652_v40  ;;  %v2656_v11 = vsel %vm2646_vm11, %v2642_v59, 1326507024  ;;  %v1263_v60 = vshrl.u32 %v1262_v45, 23 }
 0x295   :  { %v2649_v13 = vsel %vm2645_vm14, %v2633_v2, %v2648_v14  ;;  %v2654_v34 = vsel %vm2644_vm13, %v2651_v27, %v2653_v42  ;;  %v2657_v30 = vsel %vm2645_vm14, %v2639_v54, %v2656_v11  ;;  %vm2811_vm0 = vcmp.eq.s32.totalorder %v5712_v15, 0 }
 0x296   :  { %vm3729_vm15 = vcmp.lt.s32.totalorder %v3728_v48, 0  ;;  %v2658_v28 = vsel %vm2644_vm13, %v2655_v23, %v2657_v30  ;;  %v5756_v36 = vmul.u32.u64.low %v5730_v25, %v2654_v34  ;;  %v5757_v3 = vmul.u32.u64.high %v5730_v25, %v2654_v34, %v5756_v36 }
 0x297   :  { %v1018_v61 = vsel %vm3729_vm15, 0, %v3728_v48  ;;  %vm2810_vm1 = vcmp.lt.s32.totalorder %v5712_v15, 2  ;;  %v1003_v19 = vadd.s32 %v5677_v44, %v5674_v20  ;;  %v3738_v24 = vadd.s32 4294967169, %v1263_v60  ;;  %v5773_v44 = vpop.f32.mrb[11].mxu0 }
 0x298   :  { %v1019_v22 = vsub.s32 32, %v1018_v61  ;;  %v1023_v0 = vsub.s32 4294967266, %v1018_v61  ;;  %vm2807_vm2 = vweird.f32 %v5458_v4  ;;  %v1034_v35 = vsel %vm949_vm9, %v1033_v17, %v5710_v5 }
 0x299   :  { %v2650_v47 = vsel %vm2644_vm13, %v2647_v16, %v2649_v13  ;;  %v5769_v46 = vmul.u32.u64.low %v5730_v25, %v2658_v28  ;;  %v5770_v31 = vmul.u32.u64.high %v5730_v25, %v2658_v28, %v5769_v46  ;;  %v1020_v12 = vshll.u32 %v5724_v32, %v1018_v61 }
 0x29a   :  { %v1021_v53 = vshrl.u32 %v1003_v19, %v1019_v22  ;;  %v1024_v2 = vadd.s32 127, %v1023_v0  ;;  %v1269_v20 = vadd.s32 1, %v3738_v24  ;;  %vm2814_vm3 = vcmp.eq.s32.totalorder %v5712_v15, 2 }
 0x29b   :  { %v2669_v21 = vadd.s32 1, %v5757_v3  ;;  %v1259_v49 = vand.u32 2147483647, %v5720_v56  ;;  %v5780_v5 = vadd.f32 %v5454_v63, %v5343_v26  ;;  %v1036_v32 = vsel %vm5748_vm12, 0, %v1034_v35 }
 0x29c   :  { %v4198_v9 = vpop.eup %4197  ;;  %v1022_v7 = vor.u32 %v1021_v53, %v1020_v12  ;;  %v1025_v10 = vshll.u32 %v1024_v2, 23  ;;  %vm1270_vm4 = vcmp.gt.s32.totalorder %v1269_v20, 0  ;;  %v2666_v45 = vmul.u32 %v5730_v25, %v2650_v47 }
 0x29d   :  { %v4200_v18 = vpop.eup %4199  ;;  %v2815_v54 = vxor.u32 2147483648, %v4198_v9  ;;  %vm2668_vm5 = vc.u32 %v5770_v31, %v5756_v36  ;;  %v1271_v52 = vsel %vm1270_vm4, %v1269_v20, 0  ;;  %v5790_v59 = vadd.f32 %v5454_v63, %v5424_v6 }
 0x29e   :  { %v2812_v17 = vxor.u32 2147483648, %v4200_v18  ;;  %v1026_v38 = vor.u32 4788187, %v1025_v10  ;;  %v2670_v26 = vsel %vm2668_vm5, %v2669_v21, %v5757_v3  ;;  %v1266_v27 = vand.u32 8388607, %v1259_v49 }
 0x29f   :  { %v2816_v29 = vsel %vm2814_vm3, %v2815_v54, %v4200_v18  ;;  %v2671_v14 = vadd.s32 %v2670_v26, %v2666_v45  ;;  %v1273_v25 = vand.u32 31, %v1271_v52  ;;  %v1029_v23 = vcvt.s32.f32 %v1022_v7 }
 0x2a0   :  { %v2813_v48 = vsel %vm2811_vm0, %v4198_v9, %v2812_v17  ;;  %v1027_v40 = vand.u32 2147483647, %v1026_v38  ;;  %v1040_v16 = vadd.s32 3, %v1036_v32  ;;  %v2926_v63 = vand.u32 2139095040, %v5780_v5 }
 0x2a1   :  { %v2817_v42 = vsel %vm2810_vm1, %v2813_v48, %v2816_v29  ;;  %v2672_v11 = vadd.s32 536870912, %v2671_v14  ;;  %v1274_v6 = vsub.s32 32, %v1273_v25  ;;  %v1276_v34 = vshll.u32 %v4354_v33, %v1273_v25 }
 0x2a2   :  { %v2818_v60 = vsel %vm2807_vm2, nan, %v2817_v42  ;;  %v1030_v13 = vmul.f32 %v1029_v23, %v1027_v40  ;;  %v1279_v30 = vshll.u32 %v4355_v37, %v1273_v25  ;;  %v1282_v15 = vshll.u32 %v4356_v39, %v1273_v25  ;;  %v5834_v23 = vpop.f32.mrb[11].mxu1 }
 0x2a3   :  { %3674 = vst [vmem:[#allocation7 + $0xb8] sm:$0xff] %v2818_v60  ;;  %v2673_v61 = vshrl.u32 %v2672_v11, 30  ;;  %v1277_v28 = vshrl.u32 %v4355_v37, %v1274_v6  ;;  %v1280_v3 = vshrl.u32 %v4356_v39, %v1274_v6  ;;  %v1283_v22 = vshrl.u32 %v4357_v41, %v1274_v6 }
 0x2a4   :  { %v1031_v19 = vxor.u32 2147483648, %v1030_v13  ;;  %v1285_v0 = vshll.u32 %v4357_v41, %v1273_v25  ;;  %v1286_v4 = vshrl.u32 %v4358_v43, %v1274_v6  ;;  %v5811_v24 = vand.u32 3, %v1040_v16 }
 0x2a5   :  { %vm2613_vm6 = vcmp.lt.s32.totalorder %v5620_v1, 0  ;;  %v2674_v35 = vshll.u32 %v2673_v61, 30  ;;  %v1272_v47 = vshrl.u32 %v1271_v52, 5  ;;  %v1278_v46 = vor.u32 %v1277_v28, %v1276_v34 }
 0x2a6   :  { %v1032_v12 = vsel %vm949_vm9, %v1031_v19, %v1030_v13  ;;  %v1281_v53 = vor.u32 %v1280_v3, %v1279_v30  ;;  %v1284_v2 = vor.u32 %v1283_v22, %v1282_v15  ;;  %v1287_v20 = vor.u32 %v1286_v4, %v1285_v0 }
 0x2a7   :  { %v1035_v21 = vsel %vm5748_vm12, %v5519_v62, %v1032_v12  ;;  %v5819_v9 = vsub.s32 %v2671_v14, %v2674_v35  ;;  %v1288_v7 = vshll.u32 %v4358_v43, %v1273_v25  ;;  %v1289_v10 = vshrl.u32 %v4359_v50, %v1274_v6 }
 0x2a8   :  { %4201 = vcosq.f32 %v1035_v21  ;;  %v1267_v32 = vor.u32 8388608, %v1266_v27  ;;  %v2923_v18 = vand.u32 2147483647, %v5780_v5  ;;  %v2927_v54 = vshrl.u32 %v2926_v63, 23 }
 0x2a9   :  { %4203 = vsinq.f32 %v1035_v21  ;;  %vm5826_vm7 = vcmp.le.f32.partialorder %v2611_v58, 0.7853982  ;;  %v2677_v57 = vsub.s32 0, %v5819_v9  ;;  %v1275_v52 = vshrl.u32 %v4354_v33, %v1274_v6 }
 0x2aa   :  { %v1290_v17 = vor.u32 %v1289_v10, %v1288_v7  ;;  %v2697_v38 = vsub.s32 4, %v2673_v61  ;;  %vm1291_vm8 = vcmp.lt.s32.totalorder %v1272_v47, 1  ;;  %vm1293_vm9 = vcmp.lt.s32.totalorder %v1272_v47, 3 }
 0x2ab   :  { %vm1294_vm10 = vcmp.lt.s32.totalorder %v1272_v47, 4  ;;  %v3791_v26 = vmin.u32 %v2677_v57, %v5819_v9  ;;  %v1299_v14 = vsel %vm1291_vm8, %v1278_v46, %v1281_v53  ;;  %v1303_v58 = vsel %vm1291_vm8, %v1281_v53, %v1284_v2 }
 0x2ac   :  { %v1296_v29 = vsel %vm1294_vm10, %v1284_v2, 2102212464  ;;  %v1300_v27 = vsel %vm1294_vm10, %v1287_v20, 920167782  ;;  %v1304_v48 = vsel %vm1294_vm10, %v1290_v17, 1326507024  ;;  %v1295_v42 = vsel %vm1291_vm8, %v1275_v52, %v1278_v46 }
 0x2ad   :  { %v1301_v25 = vsel %vm1293_vm9, %v1284_v2, %v1300_v27  ;;  %v1307_v40 = vshll.u32 %v1267_v32, 8  ;;  %v2679_v16 = vclz %v3791_v26  ;;  %vm1292_vm11 = vcmp.lt.s32.totalorder %v1272_v47, 2 }
 0x2ae   :  { %v1297_v11 = vsel %vm1293_vm9, %v1281_v53, %v1296_v29  ;;  %v2698_v6 = vsel %vm2613_vm6, %v2697_v38, %v2673_v61  ;;  %v1302_v63 = vsel %vm1292_vm11, %v1299_v14, %v1301_v25  ;;  %v1305_v60 = vsel %vm1293_vm9, %v1287_v20, %v1304_v48 }
 0x2af   :  { %v3802_v13 = vadd.s32 4294967169, %v2927_v54  ;;  %vm1039_vm12 = vweird.f32 %v5519_v62  ;;  %v3792_v34 = vadd.s32 4294967294, %v2679_v16  ;;  %v1306_v30 = vsel %vm1292_vm11, %v1303_v58, %v1305_v60 }
 0x2b0   :  { %v5841_v28 = vmul.u32.u64.low %v1307_v40, %v1302_v63  ;;  %v5842_v3 = vmul.u32.u64.high %v1307_v40, %v1302_v63, %v5841_v28  ;;  %vm1042_vm13 = vcmp.lt.s32.totalorder %v5811_v24, 2  ;;  %v1298_v15 = vsel %vm1292_vm11, %v1295_v42, %v1297_v11 }
 0x2b1   :  { %v5846_v19 = vmul.u32.u64.low %v1307_v40, %v1306_v30  ;;  %v5847_v22 = vmul.u32.u64.high %v1307_v40, %v1306_v30, %v5846_v19  ;;  %vm1043_vm14 = vcmp.eq.s32.totalorder %v5811_v24, 0  ;;  %vm1046_vm15 = vcmp.eq.s32.totalorder %v5811_v24, 2 }
 0x2b2   :  { %vm3793_vm0 = vcmp.lt.s32.totalorder %v3792_v34, 0  ;;  %v2933_v61 = vadd.s32 1, %v3802_v13  ;;  %v4202_v0 = vpop.eup %4201  ;;  %v2667_v4 = vadd.s32 %v5756_v36, %v5770_v31  ;;  %v2700_v47 = vsel %vm5826_vm7, 0, %v2698_v6 }
 0x2b3   :  { %v2682_v35 = vsel %vm3793_vm0, 0, %v3792_v34  ;;  %v2930_v46 = vand.u32 8388607, %v2923_v18  ;;  %v4204_v12 = vpop.eup %4203  ;;  %v1047_v53 = vxor.u32 2147483648, %v4202_v0  ;;  %v1314_v21 = vmul.u32 %v1307_v40, %v1298_v15 }
 0x2b4   :  { %v2683_v2 = vsub.s32 32, %v2682_v35  ;;  %v2687_v20 = vsub.s32 4294967266, %v2682_v35  ;;  %v1044_v7 = vxor.u32 2147483648, %v4204_v12  ;;  %v2684_v10 = vshll.u32 %v5819_v9, %v2682_v35 }
 0x2b5   :  { %vm1316_vm1 = vc.u32 %v5847_v22, %v5841_v28  ;;  %v1317_v36 = vadd.s32 1, %v5842_v3  ;;  %v1048_v31 = vsel %vm1046_vm15, %v1047_v53, %v4204_v12  ;;  %vm2934_vm2 = vcmp.gt.s32.totalorder %v2933_v61, 0 }
 0x2b6   :  { %v2685_v32 = vshrl.u32 %v2667_v4, %v2683_v2  ;;  %v2688_v54 = vadd.s32 127, %v2687_v20  ;;  %v1045_v57 = vsel %vm1043_vm14, %v4202_v0, %v1044_v7  ;;  %v2704_v52 = vadd.s32 3, %v2700_v47 }
 0x2b7   :  { %v1318_v17 = vsel %vm1316_vm1, %v1317_v36, %v5842_v3  ;;  %v2935_v38 = vsel %vm2934_vm2, %v2933_v61, 0  ;;  %v1049_v9 = vsel %vm1042_vm13, %v1045_v57, %v1048_v31  ;;  %v2931_v16 = vor.u32 8388608, %v2930_v46 }
 0x2b8   :  { %v2686_v26 = vor.u32 %v2685_v32, %v2684_v10  ;;  %v2689_v29 = vshll.u32 %v2688_v54, 23  ;;  %v1319_v14 = vadd.s32 %v1318_v17, %v1314_v21  ;;  %v1050_v27 = vsel %vm1039_vm12, nan, %v1049_v9 }
 0x2b9   :  { %v2937_v25 = vand.u32 31, %v2935_v38  ;;  %3657 = vst [vmem:[#allocation7 + $0x30] sm:$0xff] %v1050_v27  ;;  %v5870_v40 = vand.u32 3, %v2704_v52  ;;  %v1158_v24 = vand.u32 2139095040, %v5790_v59  ;;  %v2936_v60 = vshrl.u32 %v2935_v38, 5 }
 0x2ba   :  { %v2690_v58 = vor.u32 4788187, %v2689_v29  ;;  %v1320_v48 = vadd.s32 536870912, %v1319_v14  ;;  %v2693_v6 = vcvt.s32.f32 %v2686_v26  ;;  %v1155_v53 = vand.u32 2147483647, %v5790_v59 }
 0x2bb   :  { %v2938_v42 = vsub.s32 32, %v2937_v25  ;;  %v2946_v15 = vshll.u32 %v4356_v39, %v2937_v25  ;;  %v2940_v61 = vshll.u32 %v4354_v33, %v2937_v25  ;;  %v2943_v0 = vshll.u32 %v4355_v37, %v2937_v25 }
 0x2bc   :  { %v2691_v11 = vand.u32 2147483647, %v2690_v58  ;;  %v5872_v63 = vshrl.u32 %v1320_v48, 30  ;;  %v2949_v4 = vshll.u32 %v4357_v41, %v2937_v25  ;;  %v2952_v7 = vshll.u32 %v4358_v43, %v2937_v25 }
 0x2bd   :  { %v2941_v13 = vshrl.u32 %v4355_v37, %v2938_v42  ;;  %v2944_v62 = vshrl.u32 %v4356_v39, %v2938_v42  ;;  %v2947_v34 = vshrl.u32 %v4357_v41, %v2938_v42  ;;  %v2950_v19 = vshrl.u32 %v4358_v43, %v2938_v42 }
 0x2be   :  { %v2694_v30 = vmul.f32 %v2693_v6, %v2691_v11  ;;  %v1322_v3 = vshll.u32 %v5872_v63, 30  ;;  %v2953_v35 = vshrl.u32 %v4359_v50, %v2938_v42  ;;  %v5892_v31 = vshll.u32 %v2931_v16, 8 }
 0x2bf   :  { %v2948_v12 = vor.u32 %v2947_v34, %v2946_v15  ;;  %v2942_v2 = vor.u32 %v2941_v13, %v2940_v61  ;;  %v2945_v20 = vor.u32 %v2944_v62, %v2943_v0  ;;  %v2951_v21 = vor.u32 %v2950_v19, %v2949_v4 }
 0x2c0   :  { %v2695_v47 = vxor.u32 2147483648, %v2694_v30  ;;  %v5885_v46 = vsub.s32 %v1319_v14, %v1322_v3  ;;  %v1159_v32 = vshrl.u32 %v1158_v24, 23  ;;  %v2939_v57 = vshrl.u32 %v4354_v33, %v2938_v42 }
 0x2c1   :  { %v2954_v52 = vor.u32 %v2953_v35, %v2952_v7  ;;  %vm2958_vm3 = vcmp.lt.s32.totalorder %v2936_v60, 4  ;;  %vm2955_vm4 = vcmp.lt.s32.totalorder %v2936_v60, 1  ;;  %vm2957_vm5 = vcmp.lt.s32.totalorder %v2936_v60, 3 }
 0x2c2   :  { %v2696_v10 = vsel %vm2613_vm6, %v2695_v47, %v2694_v30  ;;  %v1325_v36 = vsub.s32 0, %v5885_v46  ;;  %v2960_v38 = vsel %vm2958_vm3, %v2948_v12, 2102212464  ;;  %v2963_v9 = vsel %vm2955_vm4, %v2942_v2, %v2945_v20 }
 0x2c3   :  { %v2699_v54 = vsel %vm5826_vm7, %v5620_v1, %v2696_v10  ;;  %v2964_v26 = vsel %vm2958_vm3, %v2951_v21, 920167782  ;;  %vm5903_vm6 = vcmp.le.f32.partialorder %v1259_v49, 0.7853982  ;;  %v2959_v14 = vsel %vm2955_vm4, %v2939_v57, %v2942_v2 }
 0x2c4   :  { %4205 = vcosq.f32 %v2699_v54  ;;  %v3739_v17 = vmin.u32 %v1325_v36, %v5885_v46  ;;  %v2961_v27 = vsel %vm2957_vm5, %v2945_v20, %v2960_v38  ;;  %v2967_v25 = vsel %vm2955_vm4, %v2945_v20, %v2948_v12 }
 0x2c5   :  { %4207 = vsinq.f32 %v2699_v54  ;;  %vm2956_vm7 = vcmp.lt.s32.totalorder %v2936_v60, 2  ;;  %v2965_v58 = vsel %vm2957_vm5, %v2948_v12, %v2964_v26  ;;  %v2968_v48 = vsel %vm2958_vm3, %v2954_v52, 1326507024 }
 0x2c6   :  { %v1327_v29 = vclz %v3739_v17  ;;  %v3734_v16 = vadd.s32 4294967169, %v1159_v32  ;;  %v1345_v11 = vsub.s32 4, %v5872_v63  ;;  %v2966_v6 = vsel %vm2956_vm7, %v2963_v9, %v2965_v58  ;;  %v5936_v32 = vpop.f32.mrb[12].mxu0  ;;  %v5944_v9 = vld [vmem:[%s7063_s2] ss:$0 sm:$0xff] }
 0x2c7   :  { %v2969_v24 = vsel %vm2957_vm5, %v2951_v21, %v2968_v48  ;;  %v2962_v13 = vsel %vm2956_vm7, %v2959_v14, %v2961_v27  ;;  %v5910_v49 = vmul.u32.u64.low %v5892_v31, %v2966_v6  ;;  %v5911_v34 = vmul.u32.u64.high %v5892_v31, %v2966_v6, %v5910_v49 }
 0x2c8   :  { %v3740_v42 = vadd.s32 4294967294, %v1327_v29  ;;  %v2970_v62 = vsel %vm2956_vm7, %v2967_v25, %v2969_v24  ;;  %v1165_v60 = vadd.s32 1, %v3734_v16  ;;  %vm2703_vm9 = vweird.f32 %v5620_v1 }
 0x2c9   :  { %v5915_v30 = vmul.u32.u64.low %v5892_v31, %v2970_v62  ;;  %v5916_v3 = vmul.u32.u64.high %v5892_v31, %v2970_v62, %v5915_v30  ;;  %vm2710_vm10 = vcmp.eq.s32.totalorder %v5870_v40, 2  ;;  %vm1261_vm11 = vcmp.lt.s32.totalorder %v5720_v56, 0 }
 0x2ca   :  { %vm3741_vm8 = vcmp.lt.s32.totalorder %v3740_v42, 0  ;;  %v1315_v15 = vadd.s32 %v5841_v28, %v5847_v22  ;;  %v1346_v4 = vsel %vm1261_vm11, %v1345_v11, %v5872_v63  ;;  %vm1166_vm12 = vcmp.gt.s32.totalorder %v1165_v60, 0 }
 0x2cb   :  { %v1330_v19 = vsel %vm3741_vm8, 0, %v3740_v42  ;;  %v2978_v35 = vmul.u32 %v5892_v31, %v2962_v13  ;;  %v2981_v47 = vadd.s32 1, %v5911_v34  ;;  %v1162_v12 = vand.u32 8388607, %v1155_v53 }
 0x2cc   :  { %v1331_v61 = vsub.s32 32, %v1330_v19  ;;  %v1335_v0 = vsub.s32 4294967266, %v1330_v19  ;;  %v1167_v2 = vsel %vm1166_vm12, %v1165_v60, 0  ;;  %v1332_v21 = vshll.u32 %v5885_v46, %v1330_v19 }
 0x2cd   :  { %vm2980_vm13 = vc.u32 %v5916_v3, %v5910_v49  ;;  %v1348_v63 = vsel %vm5903_vm6, 0, %v1346_v4  ;;  %v1169_v31 = vand.u32 31, %v1167_v2  ;;  %vm2707_vm14 = vcmp.eq.s32.totalorder %v5870_v40, 0 }
 0x2ce   :  { %v4206_v20 = vpop.eup %4205  ;;  %v1333_v28 = vshrl.u32 %v1315_v15, %v1331_v61  ;;  %v1336_v22 = vadd.s32 127, %v1335_v0  ;;  %v2982_v36 = vsel %vm2980_vm13, %v2981_v47, %v5911_v34  ;;  %v5948_v26 = vadd.f32 %v5944_v9, %v5499_v8 }
 0x2cf   :  { %v4208_v7 = vpop.eup %4207  ;;  %v2711_v10 = vxor.u32 2147483648, %v4206_v20  ;;  %v2983_v17 = vadd.s32 %v2982_v36, %v2978_v35  ;;  %v1170_v38 = vsub.s32 32, %v1169_v31  ;;  %vm2706_vm15 = vcmp.lt.s32.totalorder %v5870_v40, 2 }
 0x2d0   :  { %v2708_v54 = vxor.u32 2147483648, %v4208_v7  ;;  %v1334_v57 = vor.u32 %v1333_v28, %v1332_v21  ;;  %v1337_v52 = vshll.u32 %v1336_v22, 23  ;;  %v1352_v58 = vadd.s32 3, %v1348_v63 }
 0x2d1   :  { %v2712_v46 = vsel %vm2710_vm10, %v2711_v10, %v4208_v7  ;;  %v2984_v27 = vadd.s32 536870912, %v2983_v17  ;;  %v1163_v48 = vor.u32 8388608, %v1162_v12  ;;  %v5953_v16 = vadd.f32 %v5944_v9, %v5593_v51 }
 0x2d2   :  { %v2709_v29 = vsel %vm2707_vm14, %v4206_v20, %v2708_v54  ;;  %v1338_v14 = vor.u32 4788187, %v1337_v52  ;;  %v1341_v6 = vcvt.s32.f32 %v1334_v57  ;;  %v1168_v8 = vshrl.u32 %v1167_v2, 5 }
 0x2d3   :  { %v2713_v25 = vsel %vm2706_vm15, %v2709_v29, %v2712_v46  ;;  %v2985_v24 = vshrl.u32 %v2984_v27, 30  ;;  %v1173_v40 = vshrl.u32 %v4355_v37, %v1170_v38  ;;  %v1176_v13 = vshrl.u32 %v4356_v39, %v1170_v38 }
 0x2d4   :  { %v2714_v42 = vsel %vm2703_vm9, nan, %v2713_v25  ;;  %v1339_v11 = vand.u32 2147483647, %v1338_v14  ;;  %v1179_v62 = vshrl.u32 %v4357_v41, %v1170_v38  ;;  %v1178_v60 = vshll.u32 %v4356_v39, %v1169_v31 }
 0x2d5   :  { %3673 = vst [vmem:[#allocation7 + $0xb0] sm:$0xff] %v2714_v42  ;;  %v2986_v30 = vshll.u32 %v2985_v24, 30  ;;  %v1182_v51 = vshrl.u32 %v4358_v43, %v1170_v38  ;;  %vm2925_vm0 = vcmp.lt.s32.totalorder %v5780_v5, 0  ;;  %v1172_v1 = vshll.u32 %v4354_v33, %v1169_v31 }
 0x2d6   :  { %v1342_v34 = vmul.f32 %v1341_v6, %v1339_v11  ;;  %v1175_v15 = vshll.u32 %v4355_v37, %v1169_v31  ;;  %v1181_v19 = vshll.u32 %v4357_v41, %v1169_v31  ;;  %v1185_v61 = vshrl.u32 %v4359_v50, %v1170_v38 }
 0x2d7   :  { %v5967_v4 = vand.u32 3, %v1352_v58  ;;  %v5969_v35 = vsub.s32 %v2983_v17, %v2986_v30  ;;  %v1180_v47 = vor.u32 %v1179_v62, %v1178_v60  ;;  %v1174_v12 = vor.u32 %v1173_v40, %v1172_v1  ;;  %v5990_v58 = vpop.f32.mrb[12].mxu1 }
 0x2d8   :  { %v1343_v0 = vxor.u32 2147483648, %v1342_v34  ;;  %v1177_v2 = vor.u32 %v1176_v13, %v1175_v15  ;;  %v1183_v20 = vor.u32 %v1182_v51, %v1181_v19  ;;  %v1184_v21 = vshll.u32 %v4358_v43, %v1169_v31 }
 0x2d9   :  { %v2989_v22 = vsub.s32 0, %v5969_v35  ;;  %v1171_v7 = vshrl.u32 %v4354_v33, %v1170_v38  ;;  %v1203_v10 = vshll.u32 %v1163_v48, 8  ;;  %v3009_v36 = vsub.s32 4, %v2985_v24 }
 0x2da   :  { %v1344_v28 = vsel %vm1261_vm11, %v1343_v0, %v1342_v34  ;;  %v1186_v54 = vor.u32 %v1185_v61, %v1184_v21  ;;  %vm1190_vm1 = vcmp.lt.s32.totalorder %v1168_v8, 4  ;;  %vm5981_vm2 = vcmp.le.f32.partialorder %v2923_v18, 0.7853982 }
 0x2db   :  { %v1347_v63 = vsel %vm5903_vm6, %v5720_v56, %v1344_v28  ;;  %v3803_v57 = vmin.u32 %v2989_v22, %v5969_v35  ;;  %vm1187_vm3 = vcmp.lt.s32.totalorder %v1168_v8, 1  ;;  %v1192_v52 = vsel %vm1190_vm1, %v1180_v47, 2102212464 }
 0x2dc   :  { %4209 = vcosq.f32 %v1347_v63  ;;  %vm1188_vm4 = vcmp.lt.s32.totalorder %v1168_v8, 2  ;;  %v1195_v17 = vsel %vm1187_vm3, %v1174_v12, %v1177_v2  ;;  %v1196_v45 = vsel %vm1190_vm1, %v1183_v20, 920167782 }
 0x2dd   :  { %4211 = vsinq.f32 %v1347_v63  ;;  %v2991_v46 = vclz %v3803_v57  ;;  %vm1189_vm5 = vcmp.lt.s32.totalorder %v1168_v8, 3  ;;  %v1191_v38 = vsel %vm1187_vm3, %v1171_v7, %v1174_v12 }
 0x2de   :  { %v1199_v29 = vsel %vm1187_vm3, %v1177_v2, %v1180_v47  ;;  %v1193_v14 = vsel %vm1189_vm5, %v1177_v2, %v1192_v52  ;;  %v1197_v27 = vsel %vm1189_vm5, %v1180_v47, %v1196_v45  ;;  %v1200_v18 = vsel %vm1190_vm1, %v1186_v54, 1326507024 }
 0x2df   :  { %v2822_v25 = vand.u32 2139095040, %v5948_v26  ;;  %v3804_v48 = vadd.s32 4294967294, %v2991_v46  ;;  %v3010_v42 = vsel %vm2925_vm0, %v3009_v36, %v2985_v24  ;;  %v1198_v11 = vsel %vm1188_vm4, %v1195_v17, %v1197_v27 }
 0x2e0   :  { %v1201_v6 = vsel %vm1189_vm5, %v1183_v20, %v1200_v18  ;;  %v5996_v13 = vmul.u32.u64.low %v1203_v10, %v1198_v11  ;;  %v5997_v62 = vmul.u32.u64.high %v1203_v10, %v1198_v11, %v5996_v13  ;;  %v1194_v30 = vsel %vm1188_vm4, %v1191_v38, %v1193_v14 }
 0x2e1   :  { %v1202_v40 = vsel %vm1188_vm4, %v1199_v29, %v1201_v6  ;;  %v2823_v34 = vshrl.u32 %v2822_v25, 23  ;;  %vm3805_vm6 = vcmp.lt.s32.totalorder %v3804_v48, 0  ;;  %vm1354_vm7 = vcmp.lt.s32.totalorder %v5967_v4, 2 }
 0x2e2   :  { %v6001_v60 = vmul.u32.u64.low %v1203_v10, %v1202_v40  ;;  %v6002_v51 = vmul.u32.u64.high %v1203_v10, %v1202_v40, %v6001_v60  ;;  %vm1355_vm8 = vcmp.eq.s32.totalorder %v5967_v4, 0  ;;  %v2994_v24 = vsel %vm3805_vm6, 0, %v3804_v48 }
 0x2e3   :  { %v3798_v1 = vadd.s32 4294967169, %v2823_v34  ;;  %v2979_v15 = vadd.s32 %v5910_v49, %v5916_v3  ;;  %v2995_v19 = vsub.s32 32, %v2994_v24  ;;  %v2999_v61 = vsub.s32 4294967266, %v2994_v24 }
 0x2e4   :  { %v2819_v0 = vand.u32 2147483647, %v5948_v26  ;;  %v3012_v8 = vsel %vm5981_vm2, 0, %v3010_v42  ;;  %v1210_v47 = vmul.u32 %v1203_v10, %v1194_v30  ;;  %v1213_v12 = vadd.s32 1, %v5997_v62 }
 0x2e5   :  { %v2829_v2 = vadd.s32 1, %v3798_v1  ;;  %v2996_v21 = vshll.u32 %v5969_v35, %v2994_v24  ;;  %v2997_v28 = vshrl.u32 %v2979_v15, %v2995_v19  ;;  %v3000_v22 = vadd.s32 127, %v2999_v61 }
 0x2e6   :  { %v4210_v20 = vpop.eup %4209  ;;  %vm1212_vm9 = vc.u32 %v6002_v51, %v5996_v13  ;;  %vm1358_vm10 = vcmp.eq.s32.totalorder %v5967_v4, 2  ;;  %v3016_v52 = vadd.s32 3, %v3012_v8  ;;  %v2826_v35 = vand.u32 8388607, %v2819_v0 }
 0x2e7   :  { %v4212_v49 = vpop.eup %4211  ;;  %v1359_v3 = vxor.u32 2147483648, %v4210_v20  ;;  %v1214_v7 = vsel %vm1212_vm9, %v1213_v12, %v5997_v62  ;;  %vm2830_vm11 = vcmp.gt.s32.totalorder %v2829_v2, 0  ;;  %v2998_v10 = vor.u32 %v2997_v28, %v2996_v21 }
 0x2e8   :  { %v1356_v63 = vxor.u32 2147483648, %v4212_v49  ;;  %v3001_v36 = vshll.u32 %v3000_v22, 23  ;;  %v1215_v54 = vadd.s32 %v1214_v7, %v1210_v47  ;;  %v2831_v17 = vsel %vm2830_vm11, %v2829_v2, 0 }
 0x2e9   :  { %v1360_v57 = vsel %vm1358_vm10, %v1359_v3, %v4212_v49  ;;  %v1470_v29 = vand.u32 2139095040, %v5953_v16  ;;  %vm1351_vm12 = vweird.f32 %v5720_v56  ;;  %v2833_v27 = vand.u32 31, %v2831_v17 }
 0x2ea   :  { %v1357_v45 = vsel %vm1355_vm8, %v4210_v20, %v1356_v63  ;;  %v3002_v46 = vor.u32 4788187, %v3001_v36  ;;  %v1216_v38 = vadd.s32 536870912, %v1215_v54  ;;  %v3005_v48 = vcvt.s32.f32 %v2998_v10 }
 0x2eb   :  { %v1361_v14 = vsel %vm1354_vm7, %v1357_v45, %v1360_v57  ;;  %v6027_v11 = vand.u32 3, %v3016_v52  ;;  %v2827_v6 = vor.u32 8388608, %v2826_v35  ;;  %v2834_v40 = vsub.s32 32, %v2833_v27 }
 0x2ec   :  { %v1362_v18 = vsel %vm1351_vm12, nan, %v1361_v14  ;;  %v3003_v25 = vand.u32 2147483647, %v3002_v46  ;;  %v6025_v42 = vshrl.u32 %v1216_v38, 30  ;;  %v1467_v62 = vand.u32 2147483647, %v5953_v16 }
 0x2ed   :  { %3660 = vst [vmem:[#allocation7 + $0x48] sm:$0xff] %v1362_v18  ;;  %v2836_v56 = vshll.u32 %v4354_v33, %v2833_v27  ;;  %v1471_v4 = vshrl.u32 %v1470_v29, 23  ;;  %v2837_v60 = vshrl.u32 %v4355_v37, %v2834_v40  ;;  %v2839_v24 = vshll.u32 %v4355_v37, %v2833_v27 }
 0x2ee   :  { %v3006_v34 = vmul.f32 %v3005_v48, %v3003_v25  ;;  %v1218_v30 = vshll.u32 %v6025_v42, 30  ;;  %v2840_v1 = vshrl.u32 %v4356_v39, %v2834_v40  ;;  %v2843_v15 = vshrl.u32 %v4357_v41, %v2834_v40 }
 0x2ef   :  { %v2842_v8 = vshll.u32 %v4356_v39, %v2833_v27  ;;  %v2846_v47 = vshrl.u32 %v4358_v43, %v2834_v40  ;;  %v2832_v12 = vshrl.u32 %v2831_v17, 5  ;;  %v2838_v2 = vor.u32 %v2837_v60, %v2836_v56 }
 0x2f0   :  { %v3007_v19 = vxor.u32 2147483648, %v3006_v34  ;;  %v6036_v61 = vsub.s32 %v1215_v54, %v1218_v30  ;;  %v2845_v20 = vshll.u32 %v4357_v41, %v2833_v27  ;;  %v6041_v21 = vshll.u32 %v2827_v6, 8 }
 0x2f1   :  { %v2841_v49 = vor.u32 %v2840_v1, %v2839_v24  ;;  %v2844_v3 = vor.u32 %v2843_v15, %v2842_v8  ;;  %vm1157_vm13 = vcmp.lt.s32.totalorder %v5790_v59, 0  ;;  %v2848_v10 = vshll.u32 %v4358_v43, %v2833_v27  ;;  %v6082_v8 = vpop.f32.mrb[13].mxu0 }
 0x2f2   :  { %v3008_v28 = vsel %vm2925_vm0, %v3007_v19, %v3006_v34  ;;  %v1221_v22 = vsub.s32 0, %v6036_v61  ;;  %v2847_v63 = vor.u32 %v2846_v47, %v2845_v20  ;;  %v2849_v36 = vshrl.u32 %v4359_v50, %v2834_v40 }
 0x2f3   :  { %v3011_v7 = vsel %vm5981_vm2, %v5780_v5, %v3008_v28  ;;  %v1211_v54 = vadd.s32 %v5996_v13, %v6002_v51  ;;  %v3746_v52 = vadd.s32 4294967169, %v1471_v4  ;;  %v1241_v35 = vsub.s32 4, %v6025_v42 }
 0x2f4   :  { %4213 = vcosq.f32 %v3011_v7  ;;  %v3735_v57 = vmin.u32 %v1221_v22, %v6036_v61  ;;  %v2835_v31 = vshrl.u32 %v4354_v33, %v2834_v40  ;;  %v2850_v17 = vor.u32 %v2849_v36, %v2848_v10 }
 0x2f5   :  { %4215 = vsinq.f32 %v3011_v7  ;;  %vm6059_vm14 = vcmp.le.f32.partialorder %v1155_v53, 0.7853982  ;;  %vm2851_vm15 = vcmp.lt.s32.totalorder %v2832_v12, 1  ;;  %vm2852_vm0 = vcmp.lt.s32.totalorder %v2832_v12, 2 }
 0x2f6   :  { %v1223_v46 = vclz %v3735_v57  ;;  %vm2854_vm1 = vcmp.lt.s32.totalorder %v2832_v12, 4  ;;  %vm2853_vm2 = vcmp.lt.s32.totalorder %v2832_v12, 3  ;;  %v2859_v51 = vsel %vm2851_vm15, %v2838_v2, %v2841_v49 }
 0x2f7   :  { %v2856_v13 = vsel %vm2854_vm1, %v2844_v3, 2102212464  ;;  %v2860_v38 = vsel %vm2854_vm1, %v2847_v63, 920167782  ;;  %vm3022_vm3 = vcmp.eq.s32.totalorder %v6027_v11, 2  ;;  %v2855_v14 = vsel %vm2851_vm15, %v2835_v31, %v2838_v2 }
 0x2f8   :  { %v3736_v29 = vadd.s32 4294967294, %v1223_v46  ;;  %v2861_v27 = vsel %vm2853_vm2, %v2844_v3, %v2860_v38  ;;  %v2863_v18 = vsel %vm2851_vm15, %v2841_v49, %v2844_v3  ;;  %vm3019_vm4 = vcmp.eq.s32.totalorder %v6027_v11, 0 }
 0x2f9   :  { %v2857_v53 = vsel %vm2853_vm2, %v2841_v49, %v2856_v13  ;;  %v2862_v25 = vsel %vm2852_vm0, %v2859_v51, %v2861_v27  ;;  %v2864_v48 = vsel %vm2854_vm1, %v2850_v17, 1326507024  ;;  %v1477_v6 = vadd.s32 1, %v3746_v52 }
 0x2fa   :  { %vm3018_vm5 = vcmp.lt.s32.totalorder %v6027_v11, 2  ;;  %vm3737_vm6 = vcmp.lt.s32.totalorder %v3736_v29, 0  ;;  %v2865_v40 = vsel %vm2853_vm2, %v2847_v63, %v2864_v48  ;;  %vm3015_vm7 = vweird.f32 %v5780_v5 }
 0x2fb   :  { %v6071_v34 = vmul.u32.u64.low %v6041_v21, %v2862_v25  ;;  %v6072_v30 = vmul.u32.u64.high %v6041_v21, %v2862_v25, %v6071_v34  ;;  %v1226_v56 = vsel %vm3737_vm6, 0, %v3736_v29  ;;  %v2866_v4 = vsel %vm2852_vm0, %v2863_v18, %v2865_v40 }
 0x2fc   :  { %v1474_v60 = vand.u32 8388607, %v1467_v62  ;;  %vm1478_vm8 = vcmp.gt.s32.totalorder %v1477_v6, 0  ;;  %v1227_v24 = vsub.s32 32, %v1226_v56  ;;  %v1231_v1 = vsub.s32 4294967266, %v1226_v56 }
 0x2fd   :  { %v1242_v15 = vsel %vm1157_vm13, %v1241_v35, %v6025_v42  ;;  %v1479_v19 = vsel %vm1478_vm8, %v1477_v6, 0  ;;  %v2858_v47 = vsel %vm2852_vm0, %v2855_v14, %v2857_v53  ;;  %v1228_v49 = vshll.u32 %v6036_v61, %v1226_v56 }
 0x2fe   :  { %v6086_v2 = vmul.u32.u64.low %v6041_v21, %v2866_v4  ;;  %v6087_v20 = vmul.u32.u64.high %v6041_v21, %v2866_v4, %v6086_v2  ;;  %v1481_v28 = vand.u32 31, %v1479_v19  ;;  %v4214_v22 = vpop.eup %4213  ;;  %v1229_v3 = vshrl.u32 %v1211_v54, %v1227_v24 }
 0x2ff   :  { %v1232_v7 = vadd.s32 127, %v1231_v1  ;;  %v2877_v63 = vadd.s32 1, %v6072_v30  ;;  %v4216_v10 = vpop.eup %4215  ;;  %v3023_v36 = vxor.u32 2147483648, %v4214_v22  ;;  %v1244_v42 = vsel %vm6059_vm14, 0, %v1242_v15 }
 0x300   :  { %v1475_v57 = vor.u32 8388608, %v1474_v60  ;;  %v1482_v12 = vsub.s32 32, %v1481_v28  ;;  %v3020_v52 = vxor.u32 2147483648, %v4216_v10  ;;  %v1230_v35 = vor.u32 %v1229_v3, %v1228_v49 }
 0x301   :  { %v1233_v31 = vshll.u32 %v1232_v7, 23  ;;  %v2874_v17 = vmul.u32 %v6041_v21, %v2858_v47  ;;  %v3024_v46 = vsel %vm3022_vm3, %v3023_v36, %v4216_v10  ;;  %vm2876_vm9 = vc.u32 %v6087_v20, %v6071_v34 }
 0x302   :  { %v6098_v61 = vshrl.u32 %v1479_v19, 5  ;;  %v1484_v54 = vshll.u32 %v4354_v33, %v1481_v28  ;;  %v3021_v13 = vsel %vm3019_vm4, %v4214_v22, %v3020_v52  ;;  %v2878_v38 = vsel %vm2876_vm9, %v2877_v63, %v6072_v30 }
 0x303   :  { %v1234_v51 = vor.u32 4788187, %v1233_v31  ;;  %v1487_v29 = vshll.u32 %v4355_v37, %v1481_v28  ;;  %v3025_v21 = vsel %vm3018_vm5, %v3021_v13, %v3024_v46  ;;  %v2879_v14 = vadd.s32 %v2878_v38, %v2874_v17 }
 0x304   :  { %v1485_v27 = vshrl.u32 %v4355_v37, %v1482_v12  ;;  %v1488_v18 = vshrl.u32 %v4356_v39, %v1482_v12  ;;  %v3026_v53 = vsel %vm3015_vm7, nan, %v3025_v21  ;;  %v1237_v48 = vcvt.s32.f32 %v1230_v35 }
 0x305   :  { %v1235_v25 = vand.u32 2147483647, %v1234_v51  ;;  %v1491_v6 = vshrl.u32 %v4357_v41, %v1482_v12  ;;  %3676 = vst [vmem:[#allocation7 + $0xc8] sm:$0xff] %v3026_v53  ;;  %v2880_v40 = vadd.s32 536870912, %v2879_v14  ;;  %v1490_v30 = vshll.u32 %v4356_v39, %v1481_v28  ;;  %v6164_v53 = vpop.f32.mrb[13].mxu1 }
 0x306   :  { %v1493_v56 = vshll.u32 %v4357_v41, %v1481_v28  ;;  %v1494_v11 = vshrl.u32 %v4358_v43, %v1482_v12  ;;  %v1486_v60 = vor.u32 %v1485_v27, %v1484_v54  ;;  %v1489_v24 = vor.u32 %v1488_v18, %v1487_v29 }
 0x307   :  { %v1238_v4 = vmul.f32 %v1237_v48, %v1235_v25  ;;  %v1497_v1 = vshrl.u32 %v4359_v50, %v1482_v12  ;;  %v2881_v15 = vshrl.u32 %v2880_v40, 30  ;;  %v1248_v47 = vadd.s32 3, %v1244_v42 }
 0x308   :  { %v1495_v5 = vor.u32 %v1494_v11, %v1493_v56  ;;  %v1492_v2 = vor.u32 %v1491_v6, %v1490_v30  ;;  %v1496_v22 = vshll.u32 %v4358_v43, %v1481_v28  ;;  %vm1499_vm10 = vcmp.lt.s32.totalorder %v6098_v61, 1 }
 0x309   :  { %v1239_v19 = vxor.u32 2147483648, %v1238_v4  ;;  %v2882_v49 = vshll.u32 %v2881_v15, 30  ;;  %vm1502_vm11 = vcmp.lt.s32.totalorder %v6098_v61, 4  ;;  %v6119_v3 = vshll.u32 %v1475_v57, 8 }
 0x30a   :  { %v1498_v63 = vor.u32 %v1497_v1, %v1496_v22  ;;  %v1507_v10 = vsel %vm1499_vm10, %v1486_v60, %v1489_v24  ;;  %v1508_v36 = vsel %vm1502_vm11, %v1495_v5, 920167782  ;;  %v1483_v52 = vshrl.u32 %v4354_v33, %v1482_v12 }
 0x30b   :  { %v1240_v7 = vsel %vm1157_vm13, %v1239_v19, %v1238_v4  ;;  %v6130_v42 = vsub.s32 %v2879_v14, %v2882_v49  ;;  %vm1501_vm12 = vcmp.lt.s32.totalorder %v6098_v61, 3  ;;  %vm1500_vm13 = vcmp.lt.s32.totalorder %v6098_v61, 2 }
 0x30c   :  { %v1243_v28 = vsel %vm6059_vm14, %v5790_v59, %v1240_v7  ;;  %v1504_v57 = vsel %vm1502_vm11, %v1492_v2, 2102212464  ;;  %v1509_v35 = vsel %vm1501_vm12, %v1492_v2, %v1508_v36  ;;  %v1511_v12 = vsel %vm1499_vm10, %v1489_v24, %v1492_v2 }
 0x30d   :  { %4217 = vcosq.f32 %v1243_v28  ;;  %v2885_v31 = vsub.s32 0, %v6130_v42  ;;  %v1510_v45 = vsel %vm1500_vm13, %v1507_v10, %v1509_v35  ;;  %v2905_v17 = vsub.s32 4, %v2881_v15 }
 0x30e   :  { %4219 = vsinq.f32 %v1243_v28  ;;  %v1512_v46 = vsel %vm1502_vm11, %v1498_v63, 1326507024  ;;  %v6147_v54 = vmul.u32.u64.low %v6119_v3, %v1510_v45  ;;  %v6148_v13 = vmul.u32.u64.high %v6119_v3, %v1510_v45, %v6147_v54 }
 0x30f   :  { %v1249_v51 = vand.u32 3, %v1248_v47  ;;  %v3799_v38 = vmin.u32 %v2885_v31, %v6130_v42  ;;  %v1513_v29 = vsel %vm1501_vm12, %v1495_v5, %v1512_v46  ;;  %v1503_v21 = vsel %vm1499_vm10, %v1483_v52, %v1486_v60 }
 0x310   :  { %v1505_v14 = vsel %vm1501_vm12, %v1489_v24, %v1504_v57  ;;  %v1514_v27 = vsel %vm1500_vm13, %v1511_v12, %v1513_v29  ;;  %v6162_v18 = vadd.f32 %v5944_v9, %v5722_v55  ;;  %vm2821_vm14 = vcmp.lt.s32.totalorder %v5948_v26, 0 }
 0x311   :  { %v2887_v25 = vclz %v3799_v38  ;;  %v2906_v48 = vsel %vm2821_vm14, %v2905_v17, %v2881_v15  ;;  %v6170_v6 = vmul.u32.u64.low %v6119_v3, %v1514_v27  ;;  %v6171_v40 = vmul.u32.u64.high %v6119_v3, %v1514_v27, %v6170_v6 }
 0x312   :  { %vm1247_vm15 = vweird.f32 %v5790_v59  ;;  %v1506_v56 = vsel %vm1500_vm13, %v1503_v21, %v1505_v14  ;;  %v3134_v55 = vand.u32 2139095040, %v6162_v18  ;;  %v6179_v11 = vadd.f32 %v5944_v9, %v5773_v44 }
 0x313   :  { %v3800_v30 = vadd.s32 4294967294, %v2887_v25  ;;  %vm1251_vm0 = vcmp.eq.s32.totalorder %v1249_v51, 0  ;;  %vm1254_vm1 = vcmp.eq.s32.totalorder %v1249_v51, 2  ;;  %vm6183_vm2 = vcmp.le.f32.partialorder %v2819_v0, 0.7853982 }
 0x314   :  { %v1525_v60 = vadd.s32 1, %v6148_v13  ;;  %v2875_v61 = vadd.s32 %v6071_v34, %v6087_v20  ;;  %v2908_v24 = vsel %vm6183_vm2, 0, %v2906_v48  ;;  %v3135_v1 = vshrl.u32 %v3134_v55, 23 }
 0x315   :  { %vm3801_vm3 = vcmp.lt.s32.totalorder %v3800_v30, 0  ;;  %v1522_v5 = vmul.u32 %v6119_v3, %v1506_v56  ;;  %vm1524_vm4 = vc.u32 %v6171_v40, %v6147_v54  ;;  %v3131_v0 = vand.u32 2147483647, %v6162_v18 }
 0x316   :  { %v2890_v15 = vsel %vm3801_vm3, 0, %v3800_v30  ;;  %v1366_v34 = vand.u32 2139095040, %v6179_v11  ;;  %v1526_v7 = vsel %vm1524_vm4, %v1525_v60, %v6148_v13  ;;  %v3810_v63 = vadd.s32 4294967169, %v3135_v1 }
 0x317   :  { %v4218_v44 = vpop.eup %4217  ;;  %v2891_v2 = vsub.s32 32, %v2890_v15  ;;  %v2895_v22 = vsub.s32 4294967266, %v2890_v15  ;;  %v2892_v49 = vshll.u32 %v6130_v42, %v2890_v15  ;;  %v1527_v28 = vadd.s32 %v1526_v7, %v1522_v5 }
 0x318   :  { %v4220_v19 = vpop.eup %4219  ;;  %v1255_v47 = vxor.u32 2147483648, %v4218_v44  ;;  %vm1250_vm5 = vcmp.lt.s32.totalorder %v1249_v51, 2  ;;  %v2912_v57 = vadd.s32 3, %v2908_v24  ;;  %v3141_v35 = vadd.s32 1, %v3810_v63 }
 0x319   :  { %v1252_v20 = vxor.u32 2147483648, %v4220_v19  ;;  %v2893_v3 = vshrl.u32 %v2875_v61, %v2891_v2  ;;  %v2896_v36 = vadd.s32 127, %v2895_v22  ;;  %v1528_v17 = vadd.s32 536870912, %v1527_v28 }
 0x31a   :  { %v1256_v10 = vsel %vm1254_vm1, %v1255_v47, %v4220_v19  ;;  %v3138_v46 = vand.u32 8388607, %v3131_v0  ;;  %vm3142_vm6 = vcmp.gt.s32.totalorder %v3141_v35, 0  ;;  %v1367_v21 = vshrl.u32 %v1366_v34, 23 }
 0x31b   :  { %v1253_v52 = vsel %vm1251_vm0, %v4218_v44, %v1252_v20  ;;  %v2894_v45 = vor.u32 %v2893_v3, %v2892_v49  ;;  %v2897_v12 = vshll.u32 %v2896_v36, 23  ;;  %v1529_v38 = vshrl.u32 %v1528_v17, 30 }
 0x31c   :  { %v1257_v31 = vsel %vm1250_vm5, %v1253_v52, %v1256_v10  ;;  %v3143_v29 = vsel %vm3142_vm6, %v3141_v35, 0  ;;  %v6205_v51 = vand.u32 3, %v2912_v57  ;;  %vm1469_vm7 = vcmp.lt.s32.totalorder %v5953_v16, 0 }
 0x31d   :  { %v1258_v42 = vsel %vm1247_vm15, nan, %v1257_v31  ;;  %v2898_v13 = vor.u32 4788187, %v2897_v12  ;;  %v3145_v14 = vand.u32 31, %v3143_v29  ;;  %v2901_v25 = vcvt.s32.f32 %v2894_v45 }
 0x31e   :  { %3659 = vst [vmem:[#allocation7 + $0x40] sm:$0xff] %v1258_v42  ;;  %v1530_v48 = vshll.u32 %v1529_v38, 30  ;;  %v6210_v59 = vadd.f32 %v5944_v9, %v5834_v23  ;;  %v1523_v6 = vadd.s32 %v6147_v54, %v6171_v40  ;;  %v3139_v30 = vor.u32 8388608, %v3138_v46 }
 0x31f   :  { %v2899_v27 = vand.u32 2147483647, %v2898_v13  ;;  %v3146_v56 = vsub.s32 32, %v3145_v14  ;;  %v1363_v55 = vand.u32 2147483647, %v6179_v11  ;;  %v6217_v24 = vshrl.u32 %v3143_v29, 5 }
 0x320   :  { %v6215_v61 = vsub.s32 %v1527_v28, %v1530_v48  ;;  %v3742_v1 = vadd.s32 4294967169, %v1367_v21  ;;  %v1553_v44 = vsub.s32 4, %v1529_v38  ;;  %v3148_v15 = vshll.u32 %v4354_v33, %v3145_v14 }
 0x321   :  { %v2902_v60 = vmul.f32 %v2901_v25, %v2899_v27  ;;  %v3149_v5 = vshrl.u32 %v4355_v37, %v3146_v56  ;;  %v3152_v23 = vshrl.u32 %v4356_v39, %v3146_v56  ;;  %v3151_v40 = vshll.u32 %v4355_v37, %v3145_v14 }
 0x322   :  { %v1533_v54 = vsub.s32 0, %v6215_v61  ;;  %v3155_v47 = vshrl.u32 %v4357_v41, %v3146_v56  ;;  %v3154_v22 = vshll.u32 %v4356_v39, %v3145_v14  ;;  %v3157_v34 = vshll.u32 %v4357_v41, %v3145_v14 }
 0x323   :  { %v2903_v19 = vxor.u32 2147483648, %v2902_v60  ;;  %v3150_v2 = vor.u32 %v3149_v5, %v3148_v15  ;;  %v3158_v20 = vshrl.u32 %v4358_v43, %v3146_v56  ;;  %v3153_v63 = vor.u32 %v3152_v23, %v3151_v40 }
 0x324   :  { %v3747_v7 = vmin.u32 %v1533_v54, %v6215_v61  ;;  %v3160_v10 = vshll.u32 %v4358_v43, %v3145_v14  ;;  %v3156_v36 = vor.u32 %v3155_v47, %v3154_v22  ;;  %v3161_v52 = vshrl.u32 %v4359_v50, %v3146_v56  ;;  %v6273_v47 = vpop.f32.mrb[14].mxu0 }
 0x325   :  { %v2904_v49 = vsel %vm2821_vm14, %v2903_v19, %v2902_v60  ;;  %v3159_v28 = vor.u32 %v3158_v20, %v3157_v34  ;;  %v6236_v35 = vshll.u32 %v3139_v30, 8  ;;  %v1373_v31 = vadd.s32 1, %v3742_v1 }
 0x326   :  { %v2907_v3 = vsel %vm6183_vm2, %v5948_v26, %v2904_v49  ;;  %v1535_v57 = vclz %v3747_v7  ;;  %vm6240_vm8 = vcmp.le.f32.partialorder %v1467_v62, 0.7853982  ;;  %v1554_v4 = vsel %vm1469_vm7, %v1553_v44, %v1529_v38 }
 0x327   :  { %4221 = vcosq.f32 %v2907_v3  ;;  %v3147_v12 = vshrl.u32 %v4354_v33, %v3146_v56  ;;  %v3162_v17 = vor.u32 %v3161_v52, %v3160_v10  ;;  %vm3163_vm9 = vcmp.lt.s32.totalorder %v6217_v24, 1 }
 0x328   :  { %4223 = vsinq.f32 %v2907_v3  ;;  %v3748_v42 = vadd.s32 4294967294, %v1535_v57  ;;  %vm3165_vm10 = vcmp.lt.s32.totalorder %v6217_v24, 3  ;;  %vm3166_vm11 = vcmp.lt.s32.totalorder %v6217_v24, 4 }
 0x329   :  { %v3168_v46 = vsel %vm3166_vm11, %v3156_v36, 2102212464  ;;  %v3171_v13 = vsel %vm3163_vm9, %v3150_v2, %v3153_v63  ;;  %v3172_v29 = vsel %vm3166_vm11, %v3159_v28, 920167782  ;;  %v3175_v62 = vsel %vm3163_vm9, %v3153_v63, %v3156_v36 }
 0x32a   :  { %vm3749_vm12 = vcmp.lt.s32.totalorder %v3748_v42, 0  ;;  %vm3164_vm13 = vcmp.lt.s32.totalorder %v6217_v24, 2  ;;  %v3173_v38 = vsel %vm3165_vm10, %v3156_v36, %v3172_v29  ;;  %v3176_v21 = vsel %vm3166_vm11, %v3162_v17, 1326507024 }
 0x32b   :  { %v1538_v14 = vsel %vm3749_vm12, 0, %v3748_v42  ;;  %v3167_v27 = vsel %vm3163_vm9, %v3147_v12, %v3150_v2  ;;  %v3174_v25 = vsel %vm3164_vm13, %v3171_v13, %v3173_v38  ;;  %v3177_v48 = vsel %vm3165_vm10, %v3159_v28, %v3176_v21 }
 0x32c   :  { %vm2914_vm14 = vcmp.lt.s32.totalorder %v6205_v51, 2  ;;  %v1539_v30 = vsub.s32 32, %v1538_v14  ;;  %v1543_v56 = vsub.s32 4294967266, %v1538_v14  ;;  %v3169_v60 = vsel %vm3165_vm10, %v3153_v63, %v3168_v46 }
 0x32d   :  { %v3178_v1 = vsel %vm3164_vm13, %v3175_v62, %v3177_v48  ;;  %vm2911_vm15 = vweird.f32 %v5948_v26  ;;  %v6268_v5 = vmul.u32.u64.low %v6236_v35, %v3174_v25  ;;  %v6269_v23 = vmul.u32.u64.high %v6236_v35, %v3174_v25, %v6268_v5 }
 0x32e   :  { %v6264_v44 = vmul.u32.u64.low %v6236_v35, %v3178_v1  ;;  %v6265_v15 = vmul.u32.u64.high %v6236_v35, %v3178_v1, %v6264_v44  ;;  %v1540_v19 = vshll.u32 %v6215_v61, %v1538_v14  ;;  %v1541_v54 = vshrl.u32 %v1523_v6, %v1539_v30 }
 0x32f   :  { %v1544_v40 = vadd.s32 127, %v1543_v56  ;;  %vm1374_vm0 = vcmp.gt.s32.totalorder %v1373_v31, 0  ;;  %vm2915_vm1 = vcmp.eq.s32.totalorder %v6205_v51, 0  ;;  %v3170_v2 = vsel %vm3164_vm13, %v3167_v27, %v3169_v60 }
 0x330   :  { %v1370_v22 = vand.u32 8388607, %v1363_v55  ;;  %v1375_v34 = vsel %vm1374_vm0, %v1373_v31, 0  ;;  %v1542_v49 = vor.u32 %v1541_v54, %v1540_v19  ;;  %v1556_v61 = vsel %vm6240_vm8, 0, %v1554_v4 }
 0x331   :  { %v4222_v20 = vpop.eup %4221  ;;  %v1545_v7 = vshll.u32 %v1544_v40, 23  ;;  %v1377_v6 = vand.u32 31, %v1375_v34  ;;  %vm2918_vm2 = vcmp.eq.s32.totalorder %v6205_v51, 2  ;;  %vm3188_vm3 = vc.u32 %v6265_v15, %v6268_v5 }
 0x332   :  { %v4224_v63 = vpop.eup %4223  ;;  %v2919_v10 = vxor.u32 2147483648, %v4222_v20  ;;  %v3189_v24 = vadd.s32 1, %v6269_v23  ;;  %v3186_v28 = vmul.u32 %v6236_v35, %v3170_v2  ;;  %v1560_v31 = vadd.s32 3, %v1556_v61 }
 0x333   :  { %v2916_v3 = vxor.u32 2147483648, %v4224_v63  ;;  %v1546_v36 = vor.u32 4788187, %v1545_v7  ;;  %v1378_v52 = vsub.s32 32, %v1377_v6  ;;  %v1371_v4 = vor.u32 8388608, %v1370_v22 }
 0x334   :  { %v2920_v57 = vsel %vm2918_vm2, %v2919_v10, %v4224_v63  ;;  %v3190_v12 = vsel %vm3188_vm3, %v3189_v24, %v6269_v23  ;;  %v1549_v46 = vcvt.s32.f32 %v1542_v49  ;;  %v1380_v62 = vshll.u32 %v4354_v33, %v1377_v6 }
 0x335   :  { %v2917_v17 = vsel %vm2915_vm1, %v4222_v20, %v2916_v3  ;;  %v1547_v42 = vand.u32 2147483647, %v1546_v36  ;;  %v3191_v13 = vadd.s32 %v3190_v12, %v3186_v28  ;;  %v1381_v38 = vshrl.u32 %v4355_v37, %v1378_v52 }
 0x336   :  { %v2921_v29 = vsel %vm2914_vm14, %v2917_v17, %v2920_v57  ;;  %v1384_v35 = vshrl.u32 %v4356_v39, %v1378_v52  ;;  %v1387_v25 = vshrl.u32 %v4357_v41, %v1378_v52  ;;  %v1376_v48 = vshrl.u32 %v1375_v34, 5 }
 0x337   :  { %v2922_v21 = vsel %vm2911_vm15, nan, %v2921_v29  ;;  %v1550_v14 = vmul.f32 %v1549_v46, %v1547_v42  ;;  %v3192_v27 = vadd.s32 536870912, %v3191_v13  ;;  %v1383_v30 = vshll.u32 %v4355_v37, %v1377_v6 }
 0x338   :  { %3675 = vst [vmem:[#allocation7 + $0xc0] sm:$0xff] %v2922_v21  ;;  %v1386_v51 = vshll.u32 %v4356_v39, %v1377_v6  ;;  %v1390_v56 = vshrl.u32 %v4358_v43, %v1378_v52  ;;  %v1382_v44 = vor.u32 %v1381_v38, %v1380_v62  ;;  %v1389_v23 = vshll.u32 %v4357_v41, %v1377_v6 }
 0x339   :  { %v1551_v60 = vxor.u32 2147483648, %v1550_v14  ;;  %v3193_v1 = vshrl.u32 %v3192_v27, 30  ;;  %vm3133_vm4 = vcmp.lt.s32.totalorder %v6162_v18, 0  ;;  %v1385_v26 = vor.u32 %v1384_v35, %v1383_v30 }
 0x33a   :  { %v1388_v19 = vor.u32 %v1387_v25, %v1386_v51  ;;  %v1392_v54 = vshll.u32 %v4358_v43, %v1377_v6  ;;  %v1393_v40 = vshrl.u32 %v4359_v50, %v1378_v52  ;;  %v6307_v22 = vand.u32 3, %v1560_v31 }
 0x33b   :  { %v1552_v2 = vsel %vm1469_vm7, %v1551_v60, %v1550_v14  ;;  %v3194_v34 = vshll.u32 %v3193_v1, 30  ;;  %v1391_v20 = vor.u32 %v1390_v56, %v1389_v23  ;;  %v1379_v7 = vshrl.u32 %v4354_v33, %v1378_v52 }
 0x33c   :  { %v1555_v49 = vsel %vm6240_vm8, %v5953_v16, %v1552_v2  ;;  %v1394_v61 = vor.u32 %v1393_v40, %v1392_v54  ;;  %v6313_v63 = vshll.u32 %v1371_v4, 8  ;;  %vm1395_vm5 = vcmp.lt.s32.totalorder %v1376_v48, 1 }
 0x33d   :  { %4225 = vcosq.f32 %v1555_v49  ;;  %v6315_v6 = vsub.s32 %v3191_v13, %v3194_v34  ;;  %vm1398_vm6 = vcmp.lt.s32.totalorder %v1376_v48, 4  ;;  %vm1396_vm7 = vcmp.lt.s32.totalorder %v1376_v48, 2 }
 0x33e   :  { %4227 = vsinq.f32 %v1555_v49  ;;  %v1400_v10 = vsel %vm1398_vm6, %v1388_v19, 2102212464  ;;  %v1403_v24 = vsel %vm1395_vm5, %v1382_v44, %v1385_v26  ;;  %v3217_v36 = vsub.s32 4, %v3193_v1 }
 0x33f   :  { %v3197_v3 = vsub.s32 0, %v6315_v6  ;;  %vm1397_vm9 = vcmp.lt.s32.totalorder %v1376_v48, 3  ;;  %v1404_v45 = vsel %vm1398_vm6, %v1391_v20, 920167782  ;;  %v1399_v28 = vsel %vm1395_vm5, %v1379_v7, %v1382_v44  ;;  %v6345_v48 = vpop.f32.mrb[14].mxu1 }
 0x340   :  { %v1405_v57 = vsel %vm1397_vm9, %v1388_v19, %v1404_v45  ;;  %v1407_v52 = vsel %vm1395_vm5, %v1385_v26, %v1388_v19  ;;  %v1408_v31 = vsel %vm1398_vm6, %v1394_v61, 1326507024  ;;  %v1401_v4 = vsel %vm1397_vm9, %v1385_v26, %v1400_v10 }
 0x341   :  { %v3811_v12 = vmin.u32 %v3197_v3, %v6315_v6  ;;  %v1406_v17 = vsel %vm1396_vm7, %v1403_v24, %v1405_v57  ;;  %v1409_v42 = vsel %vm1397_vm9, %v1391_v20, %v1408_v31  ;;  %v3030_v62 = vand.u32 2139095040, %v6210_v59 }
 0x342   :  { %v1410_v46 = vsel %vm1396_vm7, %v1407_v52, %v1409_v42  ;;  %v6322_v13 = vmul.u32.u64.low %v6313_v63, %v1406_v17  ;;  %v6323_v29 = vmul.u32.u64.high %v6313_v63, %v1406_v17, %v6322_v13  ;;  %v3218_v35 = vsel %vm3133_vm4, %v3217_v36, %v3193_v1 }
 0x343   :  { %v3199_v38 = vclz %v3811_v12  ;;  %v3027_v21 = vand.u32 2147483647, %v6210_v59  ;;  %v1402_v14 = vsel %vm1396_vm7, %v1399_v28, %v1401_v4  ;;  %v3031_v30 = vshrl.u32 %v3030_v62, 23 }
 0x344   :  { %v6331_v27 = vmul.u32.u64.low %v6313_v63, %v1410_v46  ;;  %v6332_v25 = vmul.u32.u64.high %v6313_v63, %v1410_v46, %v6331_v27  ;;  %vm1562_vm8 = vcmp.lt.s32.totalorder %v6307_v22, 2  ;;  %vm6337_vm10 = vcmp.le.f32.partialorder %v3131_v0, 0.7853982 }
 0x345   :  { %v3812_v56 = vadd.s32 4294967294, %v3199_v38  ;;  %v6343_v60 = vadd.f32 %v5944_v9, %v5936_v32  ;;  %vm1563_vm11 = vcmp.eq.s32.totalorder %v6307_v22, 0  ;;  %vm1566_vm12 = vcmp.eq.s32.totalorder %v6307_v22, 2 }
 0x346   :  { %v1421_v1 = vadd.s32 1, %v6323_v29  ;;  %v3806_v44 = vadd.s32 4294967169, %v3031_v30  ;;  %v3187_v0 = vadd.s32 %v6268_v5, %v6265_v15  ;;  %v3220_v26 = vsel %vm6337_vm10, 0, %v3218_v35 }
 0x347   :  { %v4226_v23 = vpop.eup %4225  ;;  %vm3813_vm13 = vcmp.lt.s32.totalorder %v3812_v56, 0  ;;  %v1418_v32 = vmul.u32 %v6313_v63, %v1402_v14  ;;  %vm1420_vm14 = vc.u32 %v6332_v25, %v6322_v13  ;;  %v3034_v40 = vand.u32 8388607, %v3027_v21 }
 0x348   :  { %v4228_v9 = vpop.eup %4227  ;;  %v1567_v19 = vxor.u32 2147483648, %v4226_v23  ;;  %v3202_v54 = vsel %vm3813_vm13, 0, %v3812_v56  ;;  %v1678_v49 = vand.u32 2139095040, %v6343_v60  ;;  %v1422_v7 = vsel %vm1420_vm14, %v1421_v1, %v6323_v29 }
 0x349   :  { %v1564_v2 = vxor.u32 2147483648, %v4228_v9  ;;  %v3203_v34 = vsub.s32 32, %v3202_v54  ;;  %v3207_v20 = vsub.s32 4294967266, %v3202_v54  ;;  %v3204_v5 = vshll.u32 %v6315_v6, %v3202_v54 }
 0x34a   :  { %v1568_v15 = vsel %vm1566_vm12, %v1567_v19, %v4228_v9  ;;  %v3037_v61 = vadd.s32 1, %v3806_v44  ;;  %v1423_v3 = vadd.s32 %v1422_v7, %v1418_v32  ;;  %vm1559_vm15 = vweird.f32 %v5953_v16 }
 0x34b   :  { %v1565_v63 = vsel %vm1563_vm11, %v4226_v23, %v1564_v2  ;;  %v3205_v10 = vshrl.u32 %v3187_v0, %v3203_v34  ;;  %v3208_v24 = vadd.s32 127, %v3207_v20  ;;  %v3224_v45 = vadd.s32 3, %v3220_v26 }
 0x34c   :  { %v1569_v36 = vsel %vm1562_vm8, %v1565_v63, %v1568_v15  ;;  %vm3038_vm0 = vcmp.gt.s32.totalorder %v3037_v61, 0  ;;  %v1424_v6 = vadd.s32 536870912, %v1423_v3  ;;  %v3035_v31 = vor.u32 8388608, %v3034_v40 }
 0x34d   :  { %v1570_v28 = vsel %vm1559_vm15, nan, %v1569_v36  ;;  %v3206_v57 = vor.u32 %v3205_v10, %v3204_v5  ;;  %v3209_v52 = vshll.u32 %v3208_v24, 23  ;;  %v3039_v12 = vsel %vm3038_vm0, %v3037_v61, 0 }
 0x34e   :  { %3662 = vst [vmem:[#allocation7 + $0x58] sm:$0xff] %v1570_v28  ;;  %v1425_v17 = vshrl.u32 %v1424_v6, 30  ;;  %v1679_v42 = vshrl.u32 %v1678_v49, 23  ;;  %v3041_v46 = vand.u32 31, %v3039_v12  ;;  %v6368_v38 = vand.u32 3, %v3224_v45 }
 0x34f   :  { %v3210_v4 = vor.u32 4788187, %v3209_v52  ;;  %v3213_v62 = vcvt.s32.f32 %v3206_v57  ;;  %vm1365_vm1 = vcmp.lt.s32.totalorder %v6179_v11, 0  ;;  %v6372_v22 = vadd.s32 %v6322_v13, %v6332_v25 }
 0x350   :  { %v1426_v16 = vshll.u32 %v1425_v17, 30  ;;  %v3042_v35 = vsub.s32 32, %v3041_v46  ;;  %v6374_v14 = vshll.u32 %v3035_v31, 8  ;;  %v1675_v27 = vand.u32 2147483647, %v6343_v60 }
 0x351   :  { %v3211_v29 = vand.u32 2147483647, %v3210_v4  ;;  %v6379_v1 = vshrl.u32 %v3039_v12, 5  ;;  %v3754_v44 = vadd.s32 4294967169, %v1679_v42  ;;  %v1449_v23 = vsub.s32 4, %v1425_v17 }
 0x352   :  { %v6377_v56 = vsub.s32 %v1423_v3, %v1426_v16  ;;  %v3044_v0 = vshll.u32 %v4354_v33, %v3041_v46  ;;  %v3045_v26 = vshrl.u32 %v4355_v37, %v3042_v35  ;;  %v3048_v32 = vshrl.u32 %v4356_v39, %v3042_v35  ;;  %v6426_v16 = vpop.f32.mrb[15].mxu0 }
 0x353   :  { %v3214_v30 = vmul.f32 %v3213_v62, %v3211_v29  ;;  %vm6386_vm2 = vcmp.le.f32.partialorder %v1363_v55, 0.7853982  ;;  %v3047_v19 = vshll.u32 %v4355_v37, %v3041_v46  ;;  %v3051_v54 = vshrl.u32 %v4357_v41, %v3042_v35 }
 0x354   :  { %v1429_v9 = vsub.s32 0, %v6377_v56  ;;  %v3046_v40 = vor.u32 %v3045_v26, %v3044_v0  ;;  %v3050_v2 = vshll.u32 %v4356_v39, %v3041_v46  ;;  %v3053_v34 = vshll.u32 %v4357_v41, %v3041_v46 }
 0x355   :  { %v3215_v13 = vxor.u32 2147483648, %v3214_v30  ;;  %v3054_v20 = vshrl.u32 %v4358_v43, %v3042_v35  ;;  %v3049_v15 = vor.u32 %v3048_v32, %v3047_v19  ;;  %v3056_v5 = vshll.u32 %v4358_v43, %v3041_v46 }
 0x356   :  { %v3743_v55 = vmin.u32 %v1429_v9, %v6377_v56  ;;  %v3052_v61 = vor.u32 %v3051_v54, %v3050_v2  ;;  %v3057_v10 = vshrl.u32 %v4359_v50, %v3042_v35  ;;  %vm3059_vm3 = vcmp.lt.s32.totalorder %v6379_v1, 1 }
 0x357   :  { %v3216_v49 = vsel %vm3133_vm4, %v3215_v13, %v3214_v30  ;;  %v3055_v63 = vor.u32 %v3054_v20, %v3053_v34  ;;  %v1685_v3 = vadd.s32 1, %v3754_v44  ;;  %v1450_v36 = vsel %vm1365_vm1, %v1449_v23, %v1425_v17 }
 0x358   :  { %v3219_v7 = vsel %vm6337_vm10, %v6162_v18, %v3216_v49  ;;  %v1431_v24 = vclz %v3743_v55  ;;  %v3043_v45 = vshrl.u32 %v4354_v33, %v3042_v35  ;;  %v3058_v28 = vor.u32 %v3057_v10, %v3056_v5 }
 0x359   :  { %4229 = vcosq.f32 %v3219_v7  ;;  %vm3061_vm4 = vcmp.lt.s32.totalorder %v6379_v1, 3  ;;  %vm3062_vm5 = vcmp.lt.s32.totalorder %v6379_v1, 4  ;;  %v3067_v51 = vsel %vm3059_vm3, %v3046_v40, %v3049_v15 }
 0x35a   :  { %4231 = vsinq.f32 %v3219_v7  ;;  %v3744_v57 = vadd.s32 4294967294, %v1431_v24  ;;  %v3064_v52 = vsel %vm3062_vm5, %v3052_v61, 2102212464  ;;  %v3068_v6 = vsel %vm3062_vm5, %v3055_v63, 920167782 }
 0x35b   :  { %v3071_v31 = vsel %vm3059_vm3, %v3049_v15, %v3052_v61  ;;  %v3072_v12 = vsel %vm3062_vm5, %v3058_v28, 1326507024  ;;  %vm3060_vm7 = vcmp.lt.s32.totalorder %v6379_v1, 2  ;;  %v3069_v4 = vsel %vm3061_vm4, %v3052_v61, %v3068_v6  ;;  %v6456_v1 = vld [vmem:[%s7063_s2] ss:$0 sm:$0xff] }
 0x35c   :  { %vm3745_vm6 = vcmp.lt.s32.totalorder %v3744_v57, 0  ;;  %v3073_v17 = vsel %vm3061_vm4, %v3055_v63, %v3072_v12  ;;  %vm3227_vm9 = vcmp.eq.s32.totalorder %v6368_v38, 0  ;;  %v1452_v46 = vsel %vm6386_vm2, 0, %v1450_v36 }
 0x35d   :  { %v1434_v42 = vsel %vm3745_vm6, 0, %v3744_v57  ;;  %v3070_v29 = vsel %vm3060_vm7, %v3067_v51, %v3069_v4  ;;  %v3074_v62 = vsel %vm3060_vm7, %v3071_v31, %v3073_v17  ;;  %vm3226_vm8 = vcmp.lt.s32.totalorder %v6368_v38, 2 }
 0x35e   :  { %v1435_v35 = vsub.s32 32, %v1434_v42  ;;  %v1439_v30 = vsub.s32 4294967266, %v1434_v42  ;;  %v3063_v44 = vsel %vm3059_vm3, %v3043_v45, %v3046_v40  ;;  %v3065_v23 = vsel %vm3061_vm4, %v3049_v15, %v3064_v52 }
 0x35f   :  { %vm3223_vm10 = vweird.f32 %v6162_v18  ;;  %v6435_v0 = vmul.u32.u64.low %v6374_v14, %v3074_v62  ;;  %v6436_v26 = vmul.u32.u64.high %v6374_v14, %v3074_v62, %v6435_v0  ;;  %v1436_v9 = vshll.u32 %v6377_v56, %v1434_v42 }
 0x360   :  { %v6439_v32 = vmul.u32.u64.low %v6374_v14, %v3070_v29  ;;  %v6440_v13 = vmul.u32.u64.high %v6374_v14, %v3070_v29, %v6439_v32  ;;  %v1437_v19 = vshrl.u32 %v6372_v22, %v1435_v35  ;;  %v1440_v54 = vadd.s32 127, %v1439_v30 }
 0x361   :  { %vm1686_vm11 = vcmp.gt.s32.totalorder %v1685_v3, 0  ;;  %v1456_v40 = vadd.s32 3, %v1452_v46  ;;  %v3066_v2 = vsel %vm3060_vm7, %v3063_v44, %v3065_v23  ;;  %v1682_v34 = vand.u32 8388607, %v1675_v27 }
 0x362   :  { %v1687_v20 = vsel %vm1686_vm11, %v1685_v3, 0  ;;  %vm3230_vm12 = vcmp.eq.s32.totalorder %v6368_v38, 2  ;;  %v1438_v55 = vor.u32 %v1437_v19, %v1436_v9  ;;  %v1441_v15 = vshll.u32 %v1440_v54, 23 }
 0x363   :  { %v4230_v49 = vpop.eup %4229  ;;  %v1689_v5 = vand.u32 31, %v1687_v20  ;;  %vm3084_vm13 = vc.u32 %v6436_v26, %v6439_v32  ;;  %v3085_v22 = vadd.s32 1, %v6440_v13  ;;  %v6460_v61 = vadd.f32 %v6456_v1, %v5990_v58 }
 0x364   :  { %v4232_v7 = vpop.eup %4231  ;;  %v3231_v56 = vxor.u32 2147483648, %v4230_v49  ;;  %v1442_v10 = vor.u32 4788187, %v1441_v15  ;;  %v3082_v24 = vmul.u32 %v6374_v14, %v3066_v2  ;;  %v6463_v45 = vand.u32 3, %v1456_v40 }
 0x365   :  { %v3228_v63 = vxor.u32 2147483648, %v4232_v7  ;;  %v1690_v3 = vsub.s32 32, %v1689_v5  ;;  %v3086_v28 = vsel %vm3084_vm13, %v3085_v22, %v6440_v13  ;;  %v1683_v57 = vor.u32 8388608, %v1682_v34 }
 0x366   :  { %v3232_v36 = vsel %vm3230_vm12, %v3231_v56, %v4232_v7  ;;  %v1443_v52 = vand.u32 2147483647, %v1442_v10  ;;  %v1445_v6 = vcvt.s32.f32 %v1438_v55  ;;  %v3087_v31 = vadd.s32 %v3086_v28, %v3082_v24 }
 0x367   :  { %v3229_v51 = vsel %vm3227_vm9, %v4230_v49, %v3228_v63  ;;  %v1692_v12 = vshll.u32 %v4354_v33, %v1689_v5  ;;  %v1693_v14 = vshrl.u32 %v4355_v37, %v1690_v3  ;;  %v1696_v4 = vshrl.u32 %v4356_v39, %v1690_v3 }
 0x368   :  { %v3233_v58 = vsel %vm3226_vm8, %v3229_v51, %v3232_v36  ;;  %v1446_v42 = vmul.f32 %v1445_v6, %v1443_v52  ;;  %v3088_v46 = vadd.s32 536870912, %v3087_v31  ;;  %v1699_v29 = vshrl.u32 %v4357_v41, %v1690_v3 }
 0x369   :  { %v3234_v17 = vsel %vm3223_vm10, nan, %v3233_v58  ;;  %v1688_v62 = vshrl.u32 %v1687_v20, 5  ;;  %v1695_v35 = vshll.u32 %v4355_v37, %v1689_v5  ;;  %v1698_v38 = vshll.u32 %v4356_v39, %v1689_v5 }
 0x36a   :  { %3678 = vst [vmem:[#allocation7 + $0xd8] sm:$0xff] %v3234_v17  ;;  %v1702_v30 = vshrl.u32 %v4358_v43, %v1690_v3  ;;  %v1447_v44 = vxor.u32 2147483648, %v1446_v42  ;;  %v3089_v23 = vshrl.u32 %v3088_v46, 30  ;;  %v1694_v0 = vor.u32 %v1693_v14, %v1692_v12 }
 0x36b   :  { %v1701_v13 = vshll.u32 %v4357_v41, %v1689_v5  ;;  %v1697_v9 = vor.u32 %v1696_v4, %v1695_v35  ;;  %v1700_v18 = vor.u32 %v1699_v29, %v1698_v38  ;;  %v1704_v19 = vshll.u32 %v4358_v43, %v1689_v5  ;;  %v6501_v4 = vpop.f32.mrb[15].mxu1 }
 0x36c   :  { %v1705_v54 = vshrl.u32 %v4359_v50, %v1690_v3  ;;  %v1448_v40 = vsel %vm1365_vm1, %v1447_v44, %v1446_v42  ;;  %v3090_v2 = vshll.u32 %v3089_v23, 30  ;;  %v6484_v20 = vshll.u32 %v1683_v57, 8 }
 0x36d   :  { %v1703_v34 = vor.u32 %v1702_v30, %v1701_v13  ;;  %v1451_v49 = vsel %vm6386_vm2, %v6179_v11, %v1448_v40  ;;  %v1691_v55 = vshrl.u32 %v4354_v33, %v1690_v3  ;;  %v3342_v7 = vand.u32 2139095040, %v6460_v61 }
 0x36e   :  { %v1706_v15 = vor.u32 %v1705_v54, %v1704_v19  ;;  %4233 = vcosq.f32 %v1451_v49  ;;  %v6491_v5 = vsub.s32 %v3087_v31, %v3090_v2  ;;  %vm1707_vm14 = vcmp.lt.s32.totalorder %v1688_v62, 1 }
 0x36f   :  { %vm1710_vm15 = vcmp.lt.s32.totalorder %v1688_v62, 4  ;;  %4235 = vsinq.f32 %v1451_v49  ;;  %vm1708_vm0 = vcmp.lt.s32.totalorder %v1688_v62, 2  ;;  %v1715_v22 = vsel %vm1707_vm14, %v1694_v0, %v1697_v9 }
 0x370   :  { %v1712_v56 = vsel %vm1710_vm15, %v1700_v18, 2102212464  ;;  %v3093_v63 = vsub.s32 0, %v6491_v5  ;;  %v3113_v10 = vsub.s32 4, %v3089_v23  ;;  %vm1709_vm1 = vcmp.lt.s32.totalorder %v1688_v62, 3 }
 0x371   :  { %v1716_v25 = vsel %vm1710_vm15, %v1703_v34, 920167782  ;;  %v1711_v24 = vsel %vm1707_vm14, %v1691_v55, %v1694_v0  ;;  %v1719_v3 = vsel %vm1707_vm14, %v1697_v9, %v1700_v18  ;;  %v1720_v28 = vsel %vm1710_vm15, %v1706_v15, 1326507024 }
 0x372   :  { %v1717_v36 = vsel %vm1709_vm1, %v1700_v18, %v1716_v25  ;;  %v3807_v57 = vmin.u32 %v3093_v63, %v6491_v5  ;;  %v1713_v51 = vsel %vm1709_vm1, %v1697_v9, %v1712_v56  ;;  %v1721_v6 = vsel %vm1709_vm1, %v1703_v34, %v1720_v28 }
 0x373   :  { %v1718_v52 = vsel %vm1708_vm0, %v1715_v22, %v1717_v36  ;;  %v1722_v31 = vsel %vm1708_vm0, %v1719_v3, %v1721_v6  ;;  %v3343_v14 = vshrl.u32 %v3342_v7, 23  ;;  %vm6505_vm2 = vcmp.le.f32.partialorder %v3027_v21, 0.7853982 }
 0x374   :  { %v6498_v58 = vmul.u32.u64.low %v6484_v20, %v1718_v52  ;;  %v6499_v12 = vmul.u32.u64.high %v6484_v20, %v1718_v52, %v6498_v58  ;;  %vm3029_vm3 = vcmp.lt.s32.totalorder %v6210_v59, 0  ;;  %v3095_v42 = vclz %v3807_v57 }
 0x375   :  { %vm1455_vm4 = vweird.f32 %v6179_v11  ;;  %v3114_v46 = vsel %vm3029_vm3, %v3113_v10, %v3089_v23  ;;  %v6514_v29 = vmul.u32.u64.low %v6484_v20, %v1722_v31  ;;  %v6515_v35 = vmul.u32.u64.high %v6484_v20, %v1722_v31, %v6514_v29 }
 0x376   :  { %v3818_v38 = vadd.s32 4294967169, %v3343_v14  ;;  %v3808_v30 = vadd.s32 4294967294, %v3095_v42  ;;  %v1714_v44 = vsel %vm1708_vm0, %v1711_v24, %v1713_v51  ;;  %v3339_v21 = vand.u32 2147483647, %v6460_v61 }
 0x377   :  { %v6521_v0 = vadd.f32 %v6456_v1, %v6082_v8  ;;  %vm1458_vm5 = vcmp.lt.s32.totalorder %v6463_v45, 2  ;;  %vm1459_vm6 = vcmp.eq.s32.totalorder %v6463_v45, 0  ;;  %v1733_v23 = vadd.s32 1, %v6499_v12 }
 0x378   :  { %v3349_v13 = vadd.s32 1, %v3818_v38  ;;  %v4234_v9 = vpop.eup %4233  ;;  %vm1462_vm7 = vcmp.eq.s32.totalorder %v6463_v45, 2  ;;  %v3083_v62 = vadd.s32 %v6439_v32, %v6436_v26  ;;  %vm3809_vm9 = vcmp.lt.s32.totalorder %v3808_v30, 0 }
 0x379   :  { %v3116_v18 = vsel %vm6505_vm2, 0, %v3114_v46  ;;  %v4236_v19 = vpop.eup %4235  ;;  %v1463_v8 = vxor.u32 2147483648, %v4234_v9  ;;  %v3098_v54 = vsel %vm3809_vm9, 0, %v3808_v30  ;;  %v1730_v40 = vmul.u32 %v6484_v20, %v1714_v44 }
 0x37a   :  { %vm1732_vm8 = vc.u32 %v6515_v35, %v6498_v58  ;;  %v1460_v2 = vxor.u32 2147483648, %v4236_v19  ;;  %v3099_v34 = vsub.s32 32, %v3098_v54  ;;  %v3103_v49 = vsub.s32 4294967266, %v3098_v54 }
 0x37b   :  { %v3346_v55 = vand.u32 8388607, %v3339_v21  ;;  %v1464_v15 = vsel %vm1462_vm7, %v1463_v8, %v4236_v19  ;;  %v3100_v26 = vshll.u32 %v6491_v5, %v3098_v54  ;;  %v1734_v32 = vsel %vm1732_vm8, %v1733_v23, %v6499_v12 }
 0x37c   :  { %vm3350_vm10 = vcmp.gt.s32.totalorder %v3349_v13, 0  ;;  %v1461_v7 = vsel %vm1459_vm6, %v4234_v9, %v1460_v2  ;;  %v3101_v56 = vshrl.u32 %v3083_v62, %v3099_v34  ;;  %v3104_v22 = vadd.s32 127, %v3103_v49 }
 0x37d   :  { %v1735_v20 = vadd.s32 %v1734_v32, %v1730_v40  ;;  %v1465_v63 = vsel %vm1458_vm5, %v1461_v7, %v1464_v15  ;;  %v3120_v10 = vadd.s32 3, %v3116_v18  ;;  %v3351_v25 = vsel %vm3350_vm10, %v3349_v13, 0 }
 0x37e   :  { %v1571_v24 = vand.u32 2147483647, %v6521_v0  ;;  %v1466_v36 = vsel %vm1455_vm4, nan, %v1465_v63  ;;  %v3102_v5 = vor.u32 %v3101_v56, %v3100_v26  ;;  %v3105_v3 = vshll.u32 %v3104_v22, 23 }
 0x37f   :  { %v1736_v28 = vadd.s32 536870912, %v1735_v20  ;;  %3661 = vst [vmem:[#allocation7 + $0x50] sm:$0xff] %v1466_v36  ;;  %v3347_v57 = vor.u32 8388608, %v3346_v55  ;;  %v3353_v51 = vand.u32 31, %v3351_v25  ;;  %v6546_v31 = vand.u32 3, %v3120_v10 }
 0x380   :  { %v3106_v52 = vor.u32 4788187, %v3105_v3  ;;  %v1574_v12 = vand.u32 2139095040, %v6521_v0  ;;  %v6551_v14 = vand.u32 8388607, %v1571_v24  ;;  %v3109_v42 = vcvt.s32.f32 %v3102_v5 }
 0x381   :  { %v6544_v6 = vshrl.u32 %v1736_v28, 30  ;;  %v3354_v45 = vsub.s32 32, %v3353_v51  ;;  %v6554_v46 = vadd.s32 %v6498_v58, %v6515_v35  ;;  %v6560_v23 = vshll.u32 %v3347_v57, 8 }
 0x382   :  { %v3107_v11 = vand.u32 2147483647, %v3106_v52  ;;  %v3356_v62 = vshll.u32 %v4354_v33, %v3353_v51  ;;  %v3352_v19 = vshrl.u32 %v3351_v25, 5  ;;  %v3359_v58 = vshll.u32 %v4355_v37, %v3353_v51 }
 0x383   :  { %v1738_v29 = vshll.u32 %v6544_v6, 30  ;;  %v3357_v38 = vshrl.u32 %v4355_v37, %v3354_v45  ;;  %v3360_v30 = vshrl.u32 %v4356_v39, %v3354_v45  ;;  %v3363_v44 = vshrl.u32 %v4357_v41, %v3354_v45 }
 0x384   :  { %v3110_v13 = vmul.f32 %v3109_v42, %v3107_v11  ;;  %v3366_v18 = vshrl.u32 %v4358_v43, %v3354_v45  ;;  %v3362_v35 = vshll.u32 %v4356_v39, %v3353_v51  ;;  %v1575_v8 = vshrl.u32 %v1574_v12, 23 }
 0x385   :  { %v6562_v9 = vsub.s32 %v1735_v20, %v1738_v29  ;;  %v3358_v2 = vor.u32 %v3357_v38, %v3356_v62  ;;  %v3365_v34 = vshll.u32 %v4357_v41, %v3353_v51  ;;  %v3361_v49 = vor.u32 %v3360_v30, %v3359_v58 }
 0x386   :  { %v3111_v54 = vxor.u32 2147483648, %v3110_v13  ;;  %v3364_v55 = vor.u32 %v3363_v44, %v3362_v35  ;;  %v3368_v15 = vshll.u32 %v4358_v43, %v3353_v51  ;;  %v3369_v26 = vshrl.u32 %v4359_v50, %v3354_v45 }
 0x387   :  { %v1741_v40 = vsub.s32 0, %v6562_v9  ;;  %v3367_v56 = vor.u32 %v3366_v18, %v3365_v34  ;;  %v1579_v22 = vor.u32 8388608, %v6551_v14  ;;  %v3355_v63 = vshrl.u32 %v4354_v33, %v3354_v45 }
 0x388   :  { %v3112_v32 = vsel %vm3029_vm3, %v3111_v54, %v3110_v13  ;;  %v3370_v10 = vor.u32 %v3369_v26, %v3368_v15  ;;  %v3750_v25 = vadd.s32 4294967169, %v1575_v8  ;;  %vm3371_vm11 = vcmp.lt.s32.totalorder %v3352_v19, 1 }
 0x389   :  { %v3755_v7 = vmin.u32 %v1741_v40, %v6562_v9  ;;  %v3115_v20 = vsel %vm6505_vm2, %v6210_v59, %v3112_v32  ;;  %vm3374_vm12 = vcmp.lt.s32.totalorder %v3352_v19, 4  ;;  %vm1677_vm13 = vcmp.lt.s32.totalorder %v6343_v60, 0 }
 0x38a   :  { %4237 = vcosq.f32 %v3115_v20  ;;  %vm3372_vm14 = vcmp.lt.s32.totalorder %v3352_v19, 2  ;;  %v3376_v5 = vsel %vm3374_vm12, %v3364_v55, 2102212464  ;;  %v3379_v3 = vsel %vm3371_vm11, %v3358_v2, %v3361_v49 }
 0x38b   :  { %v1743_v36 = vclz %v3755_v7  ;;  %4239 = vsinq.f32 %v3115_v20  ;;  %vm3373_vm15 = vcmp.lt.s32.totalorder %v3352_v19, 3  ;;  %v3380_v57 = vsel %vm3374_vm12, %v3367_v56, 920167782 }
 0x38c   :  { %v3383_v51 = vsel %vm3371_vm11, %v3361_v49, %v3364_v55  ;;  %v3375_v17 = vsel %vm3371_vm11, %v3355_v63, %v3358_v2  ;;  %v3381_v52 = vsel %vm3373_vm15, %v3364_v55, %v3380_v57  ;;  %v3384_v12 = vsel %vm3374_vm12, %v3370_v10, 1326507024 }
 0x38d   :  { %v3756_v28 = vadd.s32 4294967294, %v1743_v36  ;;  %v1581_v45 = vadd.s32 1, %v3750_v25  ;;  %v3377_v14 = vsel %vm3373_vm15, %v3361_v49, %v3376_v5  ;;  %v3382_v11 = vsel %vm3372_vm14, %v3379_v3, %v3381_v52 }
 0x38e   :  { %v3385_v42 = vsel %vm3373_vm15, %v3367_v56, %v3384_v12  ;;  %v6584_v30 = vmul.u32.u64.low %v6560_v23, %v3382_v11  ;;  %v6585_v44 = vmul.u32.u64.high %v6560_v23, %v3382_v11, %v6584_v30  ;;  %v1761_v18 = vsub.s32 4, %v6544_v6 }
 0x38f   :  { %vm3757_vm0 = vcmp.lt.s32.totalorder %v3756_v28, 0  ;;  %v3386_v38 = vsel %vm3372_vm14, %v3383_v51, %v3385_v42  ;;  %vm1582_vm1 = vcmp.gt.s32.totalorder %v1581_v45, 0  ;;  %vm3119_vm2 = vweird.f32 %v6210_v59 }
 0x390   :  { %v1746_v29 = vsel %vm3757_vm0, 0, %v3756_v28  ;;  %v3378_v58 = vsel %vm3372_vm14, %v3375_v17, %v3377_v14  ;;  %v6592_v35 = vmul.u32.u64.low %v6560_v23, %v3386_v38  ;;  %v6593_v8 = vmul.u32.u64.high %v6560_v23, %v3386_v38, %v6592_v35 }
 0x391   :  { %v1747_v13 = vsub.s32 32, %v1746_v29  ;;  %v1751_v62 = vsub.s32 4294967266, %v1746_v29  ;;  %v1583_v54 = vsel %vm1582_vm1, %v1581_v45, 0  ;;  %v1748_v40 = vshll.u32 %v6562_v9, %v1746_v29 }
 0x392   :  { %v1585_v49 = vand.u32 31, %v1583_v54  ;;  %vm3122_vm3 = vcmp.lt.s32.totalorder %v6546_v31, 2  ;;  %vm3123_vm4 = vcmp.eq.s32.totalorder %v6546_v31, 0  ;;  %vm6601_vm5 = vcmp.le.f32.partialorder %v1675_v27, 0.7853982 }
 0x393   :  { %v1749_v2 = vshrl.u32 %v6554_v46, %v1747_v13  ;;  %v1752_v34 = vadd.s32 127, %v1751_v62  ;;  %v3397_v55 = vadd.s32 1, %v6585_v44  ;;  %vm3126_vm6 = vcmp.eq.s32.totalorder %v6546_v31, 2 }
 0x394   :  { %v4238_v15 = vpop.eup %4237  ;;  %v1762_v46 = vsel %vm1677_vm13, %v1761_v18, %v6544_v6  ;;  %v3394_v56 = vmul.u32 %v6560_v23, %v3378_v58  ;;  %vm3396_vm7 = vc.u32 %v6593_v8, %v6584_v30  ;;  %v1586_v27 = vsub.s32 32, %v1585_v49 }
 0x395   :  { %v1750_v9 = vor.u32 %v1749_v2, %v1748_v40  ;;  %v1753_v26 = vshll.u32 %v1752_v34, 23  ;;  %v4240_v32 = vpop.eup %4239  ;;  %v3127_v7 = vxor.u32 2147483648, %v4238_v15  ;;  %v3398_v10 = vsel %vm3396_vm7, %v3397_v55, %v6585_v44 }
 0x396   :  { %v3124_v20 = vxor.u32 2147483648, %v4240_v32  ;;  %v6614_v25 = vshll.u32 %v1579_v22, 8  ;;  %v1764_v5 = vsel %vm6601_vm5, 0, %v1762_v46  ;;  %v3399_v3 = vadd.s32 %v3398_v10, %v3394_v56 }
 0x397   :  { %v1754_v63 = vor.u32 4788187, %v1753_v26  ;;  %v3128_v36 = vsel %vm3126_vm6, %v3127_v7, %v4240_v32  ;;  %v6620_v6 = vadd.f32 %v6456_v1, %v6164_v53  ;;  %v1757_v57 = vcvt.s32.f32 %v1750_v9 }
 0x398   :  { %v3125_v23 = vsel %vm3123_vm4, %v4238_v15, %v3124_v20  ;;  %v6624_v51 = vshrl.u32 %v1583_v54, 5  ;;  %v3400_v17 = vadd.s32 536870912, %v3399_v3  ;;  %v1589_v52 = vshrl.u32 %v4355_v37, %v1586_v27 }
 0x399   :  { %v1755_v28 = vand.u32 2147483647, %v1754_v63  ;;  %v3129_v22 = vsel %vm3122_vm3, %v3125_v23, %v3128_v36  ;;  %v1592_v12 = vshrl.u32 %v4356_v39, %v1586_v27  ;;  %v1588_v14 = vshll.u32 %v4354_v33, %v1585_v49 }
 0x39a   :  { %v3130_v45 = vsel %vm3119_vm2, nan, %v3129_v22  ;;  %v1595_v11 = vshrl.u32 %v4357_v41, %v1586_v27  ;;  %v3401_v42 = vshrl.u32 %v3400_v17, 30  ;;  %v1591_v29 = vshll.u32 %v4355_v37, %v1585_v49 }
 0x39b   :  { %v1758_v53 = vmul.f32 %v1757_v57, %v1755_v28  ;;  %3677 = vst [vmem:[#allocation7 + $0xd0] sm:$0xff] %v3130_v45  ;;  %v1594_v31 = vshll.u32 %v4356_v39, %v1585_v49  ;;  %v1598_v38 = vshrl.u32 %v4358_v43, %v1586_v27  ;;  %v1597_v13 = vshll.u32 %v4357_v41, %v1585_v49 }
 0x39c   :  { %v1600_v62 = vshll.u32 %v4358_v43, %v1585_v49  ;;  %v1601_v59 = vshrl.u32 %v4359_v50, %v1586_v27  ;;  %v1768_v18 = vadd.s32 3, %v1764_v5  ;;  %v3402_v58 = vshll.u32 %v3401_v42, 30 }
 0x39d   :  { %v1759_v44 = vxor.u32 2147483648, %v1758_v53  ;;  %v1590_v35 = vor.u32 %v1589_v52, %v1588_v14  ;;  %v1593_v54 = vor.u32 %v1592_v12, %v1591_v29  ;;  %v1596_v2 = vor.u32 %v1595_v11, %v1594_v31 }
 0x39e   :  { %v1599_v34 = vor.u32 %v1598_v38, %v1597_v13  ;;  %v1602_v55 = vor.u32 %v1601_v59, %v1600_v62  ;;  %v6645_v9 = vsub.s32 %v3399_v3, %v3402_v58  ;;  %v1587_v49 = vshrl.u32 %v4354_v33, %v1586_v27 }
 0x39f   :  { %v1760_v40 = vsel %vm1677_vm13, %v1759_v44, %v1758_v53  ;;  %v3238_v26 = vand.u32 2139095040, %v6620_v6  ;;  %vm1603_vm9 = vcmp.lt.s32.totalorder %v6624_v51, 1  ;;  %vm1604_vm8 = vcmp.lt.s32.totalorder %v6624_v51, 2 }
 0x3a0   :  { %v1763_v15 = vsel %vm6601_vm5, %v6343_v60, %v1760_v40  ;;  %vm1605_vm10 = vcmp.lt.s32.totalorder %v6624_v51, 3  ;;  %v3405_v46 = vsub.s32 0, %v6645_v9  ;;  %vm1606_vm11 = vcmp.lt.s32.totalorder %v6624_v51, 4 }
 0x3a1   :  { %4241 = vcosq.f32 %v1763_v15  ;;  %v1611_v19 = vsel %vm1603_vm9, %v1590_v35, %v1593_v54  ;;  %v1608_v32 = vsel %vm1606_vm11, %v1596_v2, 2102212464  ;;  %v1612_v7 = vsel %vm1606_vm11, %v1599_v34, 920167782 }
 0x3a2   :  { %4243 = vsinq.f32 %v1763_v15  ;;  %v1615_v56 = vsel %vm1603_vm9, %v1593_v54, %v1596_v2  ;;  %v1616_v27 = vsel %vm1606_vm11, %v1602_v55, 1326507024  ;;  %v3819_v20 = vmin.u32 %v3405_v46, %v6645_v9 }
 0x3a3   :  { %v3425_v63 = vsub.s32 4, %v3401_v42  ;;  %v1613_v10 = vsel %vm1605_vm10, %v1596_v2, %v1612_v7  ;;  %v1617_v36 = vsel %vm1605_vm10, %v1599_v34, %v1616_v27  ;;  %v1769_v5 = vand.u32 3, %v1768_v18 }
 0x3a4   :  { %v1614_v3 = vsel %vm1604_vm8, %v1611_v19, %v1613_v10  ;;  %v1618_v23 = vsel %vm1604_vm8, %v1615_v56, %v1617_v36  ;;  %v3239_v28 = vshrl.u32 %v3238_v26, 23  ;;  %vm3341_vm12 = vcmp.lt.s32.totalorder %v6460_v61, 0 }
 0x3a5   :  { %v3407_v57 = vclz %v3819_v20  ;;  %v1607_v22 = vsel %vm1603_vm9, %v1587_v49, %v1590_v35  ;;  %v1609_v17 = vsel %vm1605_vm10, %v1593_v54, %v1608_v32  ;;  %vm1767_vm13 = vweird.f32 %v6343_v60 }
 0x3a6   :  { %v6673_v52 = vmul.u32.u64.low %v6614_v25, %v1618_v23  ;;  %v6674_v12 = vmul.u32.u64.high %v6614_v25, %v1618_v23, %v6673_v52  ;;  %v6677_v45 = vmul.u32.u64.low %v6614_v25, %v1614_v3  ;;  %v6678_v53 = vmul.u32.u64.high %v6614_v25, %v1614_v3, %v6677_v45 }
 0x3a7   :  { %vm6684_vm14 = vcmp.le.f32.partialorder %v3339_v21, 0.7853982  ;;  %v3820_v11 = vadd.s32 4294967294, %v3407_v57  ;;  %v3426_v29 = vsel %vm3341_vm12, %v3425_v63, %v3401_v42  ;;  %v3814_v31 = vadd.s32 4294967169, %v3239_v28 }
 0x3a8   :  { %vm1770_vm15 = vcmp.lt.s32.totalorder %v1769_v5, 2  ;;  %vm1771_vm0 = vcmp.eq.s32.totalorder %v1769_v5, 0  ;;  %vm1774_vm1 = vcmp.eq.s32.totalorder %v1769_v5, 2  ;;  %v1610_v38 = vsel %vm1604_vm8, %v1607_v22, %v1609_v17 }
 0x3a9   :  { %v3395_v44 = vadd.s32 %v6584_v30, %v6593_v8  ;;  %vm3821_vm2 = vcmp.lt.s32.totalorder %v3820_v11, 0  ;;  %v3235_v21 = vand.u32 2147483647, %v6620_v6  ;;  %v3245_v13 = vadd.s32 1, %v3814_v31 }
 0x3aa   :  { %v3410_v59 = vsel %vm3821_vm2, 0, %v3820_v11  ;;  %v3428_v18 = vsel %vm6684_vm14, 0, %v3426_v29  ;;  %vm1628_vm3 = vc.u32 %v6674_v12, %v6677_v45  ;;  %v1629_v42 = vadd.s32 1, %v6678_v53 }
 0x3ab   :  { %v4242_v62 = vpop.eup %4241  ;;  %v3411_v35 = vsub.s32 32, %v3410_v59  ;;  %v3415_v54 = vsub.s32 4294967266, %v3410_v59  ;;  %v1626_v30 = vmul.u32 %v6614_v25, %v1610_v38  ;;  %v3412_v40 = vshll.u32 %v6645_v9, %v3410_v59 }
 0x3ac   :  { %v4244_v58 = vpop.eup %4243  ;;  %v1775_v51 = vxor.u32 2147483648, %v4242_v62  ;;  %v1630_v2 = vsel %vm1628_vm3, %v1629_v42, %v6678_v53  ;;  %vm3246_vm4 = vcmp.gt.s32.totalorder %v3245_v13, 0  ;;  %v3432_v46 = vadd.s32 3, %v3428_v18 }
 0x3ad   :  { %v1772_v8 = vxor.u32 2147483648, %v4244_v58  ;;  %v3413_v55 = vshrl.u32 %v3395_v44, %v3411_v35  ;;  %v3416_v15 = vadd.s32 127, %v3415_v54  ;;  %v1631_v49 = vadd.s32 %v1630_v2, %v1626_v30 }
 0x3ae   :  { %v1776_v34 = vsel %vm1774_vm1, %v1775_v51, %v4244_v58  ;;  %v3242_v19 = vand.u32 8388607, %v3235_v21  ;;  %v3247_v32 = vsel %vm3246_vm4, %v3245_v13, 0  ;;  %v6712_v57 = vand.u32 3, %v3432_v46 }
 0x3af   :  { %v1773_v26 = vsel %vm1771_vm0, %v4242_v62, %v1772_v8  ;;  %v3414_v7 = vor.u32 %v3413_v55, %v3412_v40  ;;  %v3417_v56 = vshll.u32 %v3416_v15, 23  ;;  %v1632_v9 = vadd.s32 536870912, %v1631_v49 }
 0x3b0   :  { %v1777_v25 = vsel %vm1770_vm15, %v1773_v26, %v1776_v34  ;;  %v3249_v20 = vand.u32 31, %v3247_v32  ;;  %v3243_v36 = vor.u32 8388608, %v3242_v19  ;;  %v6720_v52 = vadd.f32 %v6456_v1, %v6273_v47 }
 0x3b1   :  { %v1778_v27 = vsel %vm1767_vm13, nan, %v1777_v25  ;;  %v3418_v63 = vor.u32 4788187, %v3417_v56  ;;  %v6710_v10 = vshrl.u32 %v1632_v9, 30  ;;  %v3421_v28 = vcvt.s32.f32 %v3414_v7 }
 0x3b2   :  { %3664 = vst [vmem:[#allocation7 + $0x68] sm:$0xff] %v1778_v27  ;;  %v3250_v3 = vsub.s32 32, %v3249_v20  ;;  %v3252_v29 = vshll.u32 %v4354_v33, %v3249_v20  ;;  %v3248_v38 = vshrl.u32 %v3247_v32, 5  ;;  %v3255_v44 = vshll.u32 %v4355_v37, %v3249_v20 }
 0x3b3   :  { %v3419_v23 = vand.u32 2147483647, %v3418_v63  ;;  %v1634_v5 = vshll.u32 %v6710_v10, 30  ;;  %v3258_v13 = vshll.u32 %v4356_v39, %v3249_v20  ;;  %v6728_v62 = vshll.u32 %v3243_v36, 8 }
 0x3b4   :  { %v3253_v22 = vshrl.u32 %v4355_v37, %v3250_v3  ;;  %v3256_v17 = vshrl.u32 %v4356_v39, %v3250_v3  ;;  %v3259_v60 = vshrl.u32 %v4357_v41, %v3250_v3  ;;  %v3262_v31 = vshrl.u32 %v4358_v43, %v3250_v3 }
 0x3b5   :  { %v3422_v53 = vmul.f32 %v3421_v28, %v3419_v23  ;;  %v6722_v11 = vsub.s32 %v1631_v49, %v1634_v5  ;;  %v3261_v47 = vshll.u32 %v4357_v41, %v3249_v20  ;;  %v3264_v35 = vshll.u32 %v4358_v43, %v3249_v20 }
 0x3b6   :  { %v3254_v42 = vor.u32 %v3253_v22, %v3252_v29  ;;  %v3257_v58 = vor.u32 %v3256_v17, %v3255_v44  ;;  %v3260_v51 = vor.u32 %v3259_v60, %v3258_v13  ;;  %v3265_v54 = vshrl.u32 %v4359_v50, %v3250_v3 }
 0x3b7   :  { %v3423_v59 = vxor.u32 2147483648, %v3422_v53  ;;  %v1637_v18 = vsub.s32 0, %v6722_v11  ;;  %v3263_v40 = vor.u32 %v3262_v31, %v3261_v47  ;;  %v1886_v2 = vand.u32 2139095040, %v6720_v52 }
 0x3b8   :  { %v1657_v55 = vsub.s32 4, %v6710_v10  ;;  %v3251_v15 = vshrl.u32 %v4354_v33, %v3250_v3  ;;  %v3266_v49 = vor.u32 %v3265_v54, %v3264_v35  ;;  %vm1573_vm5 = vcmp.lt.s32.totalorder %v6521_v0, 0 }
 0x3b9   :  { %v3424_v30 = vsel %vm3341_vm12, %v3423_v59, %v3422_v53  ;;  %v3751_v8 = vmin.u32 %v1637_v18, %v6722_v11  ;;  %vm3267_vm6 = vcmp.lt.s32.totalorder %v3248_v38, 1  ;;  %vm3270_vm7 = vcmp.lt.s32.totalorder %v3248_v38, 4 }
 0x3ba   :  { %v3427_v34 = vsel %vm6684_vm14, %v6460_v61, %v3424_v30  ;;  %vm3268_vm9 = vcmp.lt.s32.totalorder %v3248_v38, 2  ;;  %v3272_v46 = vsel %vm3270_vm7, %v3260_v51, 2102212464  ;;  %v3275_v19 = vsel %vm3267_vm6, %v3254_v42, %v3257_v58 }
 0x3bb   :  { %4245 = vcosq.f32 %v3427_v34  ;;  %v1639_v26 = vclz %v3751_v8  ;;  %vm3269_vm8 = vcmp.lt.s32.totalorder %v3248_v38, 3  ;;  %v3276_v25 = vsel %vm3270_vm7, %v3263_v40, 920167782 }
 0x3bc   :  { %4247 = vsinq.f32 %v3427_v34  ;;  %v3279_v14 = vsel %vm3267_vm6, %v3257_v58, %v3260_v51  ;;  %vm6746_vm10 = vcmp.le.f32.partialorder %v1571_v24, 0.7853982  ;;  %v3271_v56 = vsel %vm3267_vm6, %v3251_v15, %v3254_v42 }
 0x3bd   :  { %v3752_v32 = vadd.s32 4294967294, %v1639_v26  ;;  %v3277_v9 = vsel %vm3269_vm8, %v3260_v51, %v3276_v25  ;;  %v3280_v27 = vsel %vm3270_vm7, %v3266_v49, 1326507024  ;;  %v1887_v20 = vshrl.u32 %v1886_v2, 23 }
 0x3be   :  { %v3273_v63 = vsel %vm3269_vm8, %v3257_v58, %v3272_v46  ;;  %v3278_v36 = vsel %vm3268_vm9, %v3275_v19, %v3277_v9  ;;  %v3281_v3 = vsel %vm3269_vm8, %v3263_v40, %v3280_v27  ;;  %vm3434_vm12 = vcmp.lt.s32.totalorder %v6712_v57, 2 }
 0x3bf   :  { %vm3753_vm11 = vcmp.lt.s32.totalorder %v3752_v32, 0  ;;  %v3282_v28 = vsel %vm3268_vm9, %v3279_v14, %v3281_v3  ;;  %v6753_v5 = vmul.u32.u64.low %v6728_v62, %v3278_v36  ;;  %v6754_v22 = vmul.u32.u64.high %v6728_v62, %v3278_v36, %v6753_v5 }
 0x3c0   :  { %v1642_v23 = vsel %vm3753_vm11, 0, %v3752_v32  ;;  %v1627_v24 = vadd.s32 %v6677_v45, %v6674_v12  ;;  %v3762_v53 = vadd.s32 4294967169, %v1887_v20  ;;  %vm3431_vm13 = vweird.f32 %v6460_v61 }
 0x3c1   :  { %v1643_v17 = vsub.s32 32, %v1642_v23  ;;  %v1647_v60 = vsub.s32 4294967266, %v1642_v23  ;;  %vm3435_vm14 = vcmp.eq.s32.totalorder %v6712_v57, 0  ;;  %v3274_v29 = vsel %vm3268_vm9, %v3271_v56, %v3273_v63 }
 0x3c2   :  { %v6764_v31 = vmul.u32.u64.low %v6728_v62, %v3282_v28  ;;  %v6765_v44 = vmul.u32.u64.high %v6728_v62, %v3282_v28, %v6764_v31  ;;  %v1644_v13 = vshll.u32 %v6722_v11, %v1642_v23  ;;  %v1893_v42 = vadd.s32 1, %v3762_v53 }
 0x3c3   :  { %v1645_v59 = vshrl.u32 %v1627_v24, %v1643_v17  ;;  %v1648_v18 = vadd.s32 127, %v1647_v60  ;;  %vm3438_vm15 = vcmp.eq.s32.totalorder %v6712_v57, 2  ;;  %v1658_v12 = vsel %vm1573_vm5, %v1657_v55, %v6710_v10 }
 0x3c4   :  { %v3293_v45 = vadd.s32 1, %v6754_v22  ;;  %v6775_v38 = vadd.f32 %v6456_v1, %v6345_v48  ;;  %v1883_v11 = vand.u32 2147483647, %v6720_v52  ;;  %vm1894_vm0 = vcmp.gt.s32.totalorder %v1893_v42, 0 }
 0x3c5   :  { %v4246_v47 = vpop.eup %4245  ;;  %v1646_v58 = vor.u32 %v1645_v59, %v1644_v13  ;;  %v1649_v51 = vshll.u32 %v1648_v18, 23  ;;  %v3290_v30 = vmul.u32 %v6728_v62, %v3274_v29  ;;  %vm3292_vm1 = vc.u32 %v6765_v44, %v6753_v5 }
 0x3c6   :  { %v4248_v35 = vpop.eup %4247  ;;  %v3439_v54 = vxor.u32 2147483648, %v4246_v47  ;;  %v1895_v10 = vsel %vm1894_vm0, %v1893_v42, 0  ;;  %v1660_v48 = vsel %vm6746_vm10, 0, %v1658_v12  ;;  %v3294_v2 = vsel %vm3292_vm1, %v3293_v45, %v6754_v22 }
 0x3c7   :  { %v3436_v8 = vxor.u32 2147483648, %v4248_v35  ;;  %v1650_v40 = vor.u32 4788187, %v1649_v51  ;;  %v3295_v55 = vadd.s32 %v3294_v2, %v3290_v30  ;;  %v1897_v15 = vand.u32 31, %v1895_v10 }
 0x3c8   :  { %v3440_v34 = vsel %vm3438_vm15, %v3439_v54, %v4248_v35  ;;  %v6788_v49 = vadd.f32 %v6456_v1, %v6426_v16  ;;  %v1653_v46 = vcvt.s32.f32 %v1646_v58  ;;  %v1890_v19 = vand.u32 8388607, %v1883_v11 }
 0x3c9   :  { %v3437_v62 = vsel %vm3435_vm14, %v4246_v47, %v3436_v8  ;;  %v1651_v26 = vand.u32 2147483647, %v1650_v40  ;;  %v1664_v25 = vadd.s32 3, %v1660_v48  ;;  %v3296_v14 = vadd.s32 536870912, %v3295_v55 }
 0x3ca   :  { %v3441_v32 = vsel %vm3434_vm12, %v3437_v62, %v3440_v34  ;;  %v1898_v56 = vsub.s32 32, %v1897_v15  ;;  %v1900_v16 = vshll.u32 %v4354_v33, %v1897_v15  ;;  %v1903_v1 = vshll.u32 %v4355_v37, %v1897_v15 }
 0x3cb   :  { %v3442_v9 = vsel %vm3431_vm13, nan, %v3441_v32  ;;  %v1654_v27 = vmul.f32 %v1653_v46, %v1651_v26  ;;  %v6800_v20 = vshrl.u32 %v3296_v14, 30  ;;  %v1906_v57 = vshll.u32 %v4356_v39, %v1897_v15 }
 0x3cc   :  { %3680 = vst [vmem:[#allocation7 + $0xe8] sm:$0xff] %v3442_v9  ;;  %v1901_v63 = vshrl.u32 %v4355_v37, %v1898_v56  ;;  %v1904_v36 = vshrl.u32 %v4356_v39, %v1898_v56  ;;  %v1907_v23 = vshrl.u32 %v4357_v41, %v1898_v56  ;;  %v1909_v61 = vshll.u32 %v4357_v41, %v1897_v15 }
 0x3cd   :  { %v1655_v3 = vxor.u32 2147483648, %v1654_v27  ;;  %v1910_v28 = vshrl.u32 %v4358_v43, %v1898_v56  ;;  %v3298_v22 = vshll.u32 %v6800_v20, 30  ;;  %v1896_v24 = vshrl.u32 %v1895_v10, 5 }
 0x3ce   :  { %v1902_v17 = vor.u32 %v1901_v63, %v1900_v16  ;;  %v3550_v60 = vand.u32 2139095040, %v6775_v38  ;;  %v1905_v29 = vor.u32 %v1904_v36, %v1903_v1  ;;  %v1908_v31 = vor.u32 %v1907_v23, %v1906_v57 }
 0x3cf   :  { %v1656_v53 = vsel %vm1573_vm5, %v1655_v3, %v1654_v27  ;;  %v1911_v13 = vor.u32 %v1910_v28, %v1909_v61  ;;  %v6815_v18 = vsub.s32 %v3295_v55, %v3298_v22  ;;  %v1912_v42 = vshll.u32 %v4358_v43, %v1897_v15 }
 0x3d0   :  { %v1659_v59 = vsel %vm6746_vm10, %v6521_v0, %v1656_v53  ;;  %v1913_v12 = vshrl.u32 %v4359_v50, %v1898_v56  ;;  %v6819_v45 = vand.u32 3, %v1664_v25  ;;  %v1891_v47 = vor.u32 8388608, %v1890_v19 }
 0x3d1   :  { %4249 = vcosq.f32 %v1659_v59  ;;  %v3547_v58 = vand.u32 2147483647, %v6775_v38  ;;  %vm3237_vm2 = vcmp.lt.s32.totalorder %v6620_v6, 0  ;;  %v3301_v51 = vsub.s32 0, %v6815_v18 }
 0x3d2   :  { %4251 = vsinq.f32 %v1659_v59  ;;  %v1914_v35 = vor.u32 %v1913_v12, %v1912_v42  ;;  %v3551_v7 = vshrl.u32 %v3550_v60, 23  ;;  %v1899_v54 = vshrl.u32 %v4354_v33, %v1898_v56 }
 0x3d3   :  { %vm1915_vm3 = vcmp.lt.s32.totalorder %v1896_v24, 1  ;;  %vm1917_vm4 = vcmp.lt.s32.totalorder %v1896_v24, 3  ;;  %vm1918_vm5 = vcmp.lt.s32.totalorder %v1896_v24, 4  ;;  %v3815_v30 = vmin.u32 %v3301_v51, %v6815_v18 }
 0x3d4   :  { %v1920_v10 = vsel %vm1918_vm5, %v1908_v31, 2102212464  ;;  %v1923_v8 = vsel %vm1915_vm3, %v1902_v17, %v1905_v29  ;;  %v1924_v40 = vsel %vm1918_vm5, %v1911_v13, 920167782  ;;  %v1927_v2 = vsel %vm1915_vm3, %v1905_v29, %v1908_v31 }
 0x3d5   :  { %v1925_v48 = vsel %vm1917_vm4, %v1908_v31, %v1924_v40  ;;  %v1928_v34 = vsel %vm1918_vm5, %v1914_v35, 1326507024  ;;  %v1931_v55 = vshll.u32 %v1891_v47, 8  ;;  %vm6829_vm6 = vcmp.le.f32.partialorder %v3235_v21, 0.7853982 }
 0x3d6   :  { %v3303_v62 = vclz %v3815_v30  ;;  %vm1916_vm7 = vcmp.lt.s32.totalorder %v1896_v24, 2  ;;  %v1919_v26 = vsel %vm1915_vm3, %v1899_v54, %v1902_v17  ;;  %v1921_v46 = vsel %vm1917_vm4, %v1905_v29, %v1920_v10 }
 0x3d7   :  { %v3321_v19 = vsub.s32 4, %v6800_v20  ;;  %v1926_v32 = vsel %vm1916_vm7, %v1923_v8, %v1925_v48  ;;  %v1929_v25 = vsel %vm1917_vm4, %v1911_v13, %v1928_v34  ;;  %v3826_v14 = vadd.s32 4294967169, %v3551_v7 }
 0x3d8   :  { %vm1663_vm9 = vweird.f32 %v6521_v0  ;;  %v3816_v56 = vadd.s32 4294967294, %v3303_v62  ;;  %v1930_v9 = vsel %vm1916_vm7, %v1927_v2, %v1929_v25  ;;  %vm1666_vm8 = vcmp.lt.s32.totalorder %v6819_v45, 2 }
 0x3d9   :  { %v6837_v27 = vmul.u32.u64.low %v1931_v55, %v1926_v32  ;;  %v6838_v21 = vmul.u32.u64.high %v1931_v55, %v1926_v32, %v6837_v27  ;;  %v1922_v16 = vsel %vm1916_vm7, %v1919_v26, %v1921_v46  ;;  %vm1667_vm10 = vcmp.eq.s32.totalorder %v6819_v45, 0 }
 0x3da   :  { %v6842_v1 = vmul.u32.u64.low %v1931_v55, %v1930_v9  ;;  %v6843_v63 = vmul.u32.u64.high %v1931_v55, %v1930_v9, %v6842_v1  ;;  %vm1670_vm11 = vcmp.eq.s32.totalorder %v6819_v45, 2  ;;  %vm3817_vm12 = vcmp.lt.s32.totalorder %v3816_v56, 0 }
 0x3db   :  { %v3557_v36 = vadd.s32 1, %v3826_v14  ;;  %v4250_v57 = vpop.eup %4249  ;;  %v3291_v3 = vadd.s32 %v6753_v5, %v6765_v44  ;;  %v3306_v23 = vsel %vm3817_vm12, 0, %v3816_v56  ;;  %v3322_v61 = vsel %vm3237_vm2, %v3321_v19, %v6800_v20 }
 0x3dc   :  { %v3554_v28 = vand.u32 8388607, %v3547_v58  ;;  %v4252_v22 = vpop.eup %4251  ;;  %v1671_v24 = vxor.u32 2147483648, %v4250_v57  ;;  %v3307_v17 = vsub.s32 32, %v3306_v23  ;;  %v3311_v60 = vsub.s32 4294967266, %v3306_v23 }
 0x3dd   :  { %v1938_v53 = vmul.u32 %v1931_v55, %v1922_v16  ;;  %v1668_v29 = vxor.u32 2147483648, %v4252_v22  ;;  %v3308_v31 = vshll.u32 %v6815_v18, %v3306_v23  ;;  %vm1940_vm13 = vc.u32 %v6843_v63, %v6837_v27 }
 0x3de   :  { %v1941_v5 = vadd.s32 1, %v6838_v21  ;;  %v1672_v44 = vsel %vm1670_vm11, %v1671_v24, %v4252_v22  ;;  %v3309_v20 = vshrl.u32 %v3291_v3, %v3307_v17  ;;  %v3312_v13 = vadd.s32 127, %v3311_v60 }
 0x3df   :  { %vm3558_vm14 = vcmp.gt.s32.totalorder %v3557_v36, 0  ;;  %v1669_v59 = vsel %vm1667_vm10, %v4250_v57, %v1668_v29  ;;  %v3324_v42 = vsel %vm6829_vm6, 0, %v3322_v61  ;;  %v3555_v48 = vor.u32 8388608, %v3554_v28 }
 0x3e0   :  { %v1942_v12 = vsel %vm1940_vm13, %v1941_v5, %v6838_v21  ;;  %v3559_v18 = vsel %vm3558_vm14, %v3557_v36, 0  ;;  %v1673_v47 = vsel %vm1666_vm8, %v1669_v59, %v1672_v44  ;;  %v3310_v51 = vor.u32 %v3309_v20, %v3308_v31 }
 0x3e1   :  { %v3313_v35 = vshll.u32 %v3312_v13, 23  ;;  %v1943_v7 = vadd.s32 %v1942_v12, %v1938_v53  ;;  %v1674_v54 = vsel %vm1663_vm9, nan, %v1673_v47  ;;  %v3561_v30 = vand.u32 31, %v3559_v18 }
 0x3e2   :  { %3663 = vst [vmem:[#allocation7 + $0x60] sm:$0xff] %v1674_v54  ;;  %v3328_v40 = vadd.s32 3, %v3324_v42  ;;  %v3317_v55 = vcvt.s32.f32 %v3310_v51  ;;  %v1782_v45 = vand.u32 2139095040, %v6788_v49  ;;  %v3560_v26 = vshrl.u32 %v3559_v18, 5 }
 0x3e3   :  { %v3314_v10 = vor.u32 4788187, %v3313_v35  ;;  %v1944_v8 = vadd.s32 536870912, %v1943_v7  ;;  %v3562_v2 = vsub.s32 32, %v3561_v30  ;;  %v3570_v14 = vshll.u32 %v4356_v39, %v3561_v30 }
 0x3e4   :  { %v3564_v9 = vshll.u32 %v4354_v33, %v3561_v30  ;;  %v3567_v21 = vshll.u32 %v4355_v37, %v3561_v30  ;;  %v3573_v16 = vshll.u32 %v4357_v41, %v3561_v30  ;;  %v6882_v57 = vand.u32 3, %v3328_v40 }
 0x3e5   :  { %v3315_v34 = vand.u32 2147483647, %v3314_v10  ;;  %v6869_v62 = vshrl.u32 %v1944_v8, 30  ;;  %v3565_v46 = vshrl.u32 %v4355_v37, %v3562_v2  ;;  %v3568_v19 = vshrl.u32 %v4356_v39, %v3562_v2 }
 0x3e6   :  { %v3571_v0 = vshrl.u32 %v4357_v41, %v3562_v2  ;;  %v3574_v56 = vshrl.u32 %v4358_v43, %v3562_v2  ;;  %v3577_v1 = vshrl.u32 %v4359_v50, %v3562_v2  ;;  %v3576_v24 = vshll.u32 %v4358_v43, %v3561_v30 }
 0x3e7   :  { %v3318_v32 = vmul.f32 %v3317_v55, %v3315_v34  ;;  %v1946_v25 = vshll.u32 %v6869_v62, 30  ;;  %v3566_v61 = vor.u32 %v3565_v46, %v3564_v9  ;;  %v3569_v28 = vor.u32 %v3568_v19, %v3567_v21 }
 0x3e8   :  { %v3572_v23 = vor.u32 %v3571_v0, %v3570_v14  ;;  %v3575_v22 = vor.u32 %v3574_v56, %v3573_v16  ;;  %v3595_v53 = vshll.u32 %v3555_v48, 8  ;;  %v1783_v29 = vshrl.u32 %v1782_v45, 23 }
 0x3e9   :  { %v3319_v36 = vxor.u32 2147483648, %v3318_v32  ;;  %v6884_v3 = vsub.s32 %v1943_v7, %v1946_v25  ;;  %v3563_v5 = vshrl.u32 %v4354_v33, %v3562_v2  ;;  %v3578_v44 = vor.u32 %v3577_v1, %v3576_v24 }
 0x3ea   :  { %vm3582_vm15 = vcmp.lt.s32.totalorder %v3560_v26, 4  ;;  %vm3579_vm0 = vcmp.lt.s32.totalorder %v3560_v26, 1  ;;  %vm3581_vm1 = vcmp.lt.s32.totalorder %v3560_v26, 3  ;;  %v3758_v7 = vadd.s32 4294967169, %v1783_v29 }
 0x3eb   :  { %v3320_v17 = vsel %vm3237_vm2, %v3319_v36, %v3318_v32  ;;  %v1949_v60 = vsub.s32 0, %v6884_v3  ;;  %v3584_v13 = vsel %vm3582_vm15, %v3572_v23, 2102212464  ;;  %v3587_v59 = vsel %vm3579_vm0, %v3566_v61, %v3569_v28 }
 0x3ec   :  { %v3323_v31 = vsel %vm6829_vm6, %v6620_v6, %v3320_v17  ;;  %v3588_v42 = vsel %vm3582_vm15, %v3575_v22, 920167782  ;;  %v3583_v18 = vsel %vm3579_vm0, %v3563_v5, %v3566_v61  ;;  %v3585_v47 = vsel %vm3581_vm1, %v3569_v28, %v3584_v13 }
 0x3ed   :  { %4253 = vcosq.f32 %v3323_v31  ;;  %v3763_v20 = vmin.u32 %v1949_v60, %v6884_v3  ;;  %v3591_v51 = vsel %vm3579_vm0, %v3569_v28, %v3572_v23  ;;  %vm3580_vm2 = vcmp.lt.s32.totalorder %v3560_v26, 2 }
 0x3ee   :  { %4255 = vsinq.f32 %v3323_v31  ;;  %v3589_v15 = vsel %vm3581_vm1, %v3572_v23, %v3588_v42  ;;  %v3592_v35 = vsel %vm3582_vm15, %v3578_v44, 1326507024  ;;  %v1779_v8 = vand.u32 2147483647, %v6788_v49 }
 0x3ef   :  { %v1951_v12 = vclz %v3763_v20  ;;  %v3590_v30 = vsel %vm3580_vm2, %v3587_v59, %v3589_v15  ;;  %v3593_v10 = vsel %vm3581_vm1, %v3575_v22, %v3592_v35  ;;  %v3586_v40 = vsel %vm3580_vm2, %v3583_v18, %v3585_v47 }
 0x3f0   :  { %v3594_v48 = vsel %vm3580_vm2, %v3591_v51, %v3593_v10  ;;  %v6896_v2 = vmul.u32.u64.low %v3595_v53, %v3590_v30  ;;  %v6897_v34 = vmul.u32.u64.high %v3595_v53, %v3590_v30, %v6896_v2  ;;  %v1789_v46 = vadd.s32 1, %v3758_v7 }
 0x3f1   :  { %v3764_v54 = vadd.s32 4294967294, %v1951_v12  ;;  %v6900_v55 = vmul.u32.u64.low %v3595_v53, %v3594_v48  ;;  %v6901_v45 = vmul.u32.u64.high %v3595_v53, %v3594_v48, %v6900_v55  ;;  %vm3334_vm4 = vcmp.eq.s32.totalorder %v6882_v57, 2 }
 0x3f2   :  { %vm1885_vm5 = vcmp.lt.s32.totalorder %v6720_v52, 0  ;;  %v1969_v19 = vsub.s32 4, %v6869_v62  ;;  %v1939_v0 = vadd.s32 %v6837_v27, %v6843_v63  ;;  %vm1790_vm6 = vcmp.gt.s32.totalorder %v1789_v46, 0 }
 0x3f3   :  { %vm3765_vm3 = vcmp.lt.s32.totalorder %v3764_v54, 0  ;;  %v3602_v14 = vmul.u32 %v3595_v53, %v3586_v40  ;;  %v3605_v56 = vadd.s32 1, %v6897_v34  ;;  %v1786_v9 = vand.u32 8388607, %v1779_v8 }
 0x3f4   :  { %v1954_v26 = vsel %vm3765_vm3, 0, %v3764_v54  ;;  %v1791_v21 = vsel %vm1790_vm6, %v1789_v46, 0  ;;  %vm3604_vm7 = vc.u32 %v6901_v45, %v6896_v2  ;;  %v1970_v63 = vsel %vm1885_vm5, %v1969_v19, %v6869_v62 }
 0x3f5   :  { %v1955_v32 = vsub.s32 32, %v1954_v26  ;;  %v1959_v25 = vsub.s32 4294967266, %v1954_v26  ;;  %v1956_v1 = vshll.u32 %v6884_v3, %v1954_v26  ;;  %v3606_v28 = vsel %vm3604_vm7, %v3605_v56, %v6897_v34  ;;  %v4277_v26 = vld [vmem:[%s7063_s2] ss:$0 sm:$0xff]  ;;  %s4360_s2 = smov [#allocation7]  }
 0x3f6   :  { %v1793_v22 = vand.u32 31, %v1791_v21  ;;  %v3607_v53 = vadd.s32 %v3606_v28, %v3602_v14  ;;  %vm3331_vm9 = vcmp.eq.s32.totalorder %v6882_v57, 0  ;;  %vm6923_vm8 = vcmp.le.f32.partialorder %v1883_v11, 0.7853982  ;;  %s3688_s21 = sshll.u32 %s4360_s2, 4  ;;  %s3689_s21 = int_to_ptr.vmem [resolvable:$true] %s3688_s21 }
 0x3f7   :  { %v4254_v16 = vpop.eup %4253  ;;  %v1957_v36 = vshrl.u32 %v1939_v0, %v1955_v32  ;;  %v1960_v23 = vadd.s32 127, %v1959_v25  ;;  %vm3330_vm10 = vcmp.lt.s32.totalorder %v6882_v57, 2  ;;  %vm3327_vm11 = vweird.f32 %v6620_v6  ;;  %s4322_s24 = scalar_lea.vmem %s3689_s21, 4096  ;;  %p4327_p3 = scmp.lt.s32.totalorder %s3689_s21, %s3689_s21 }
 0x3f8   :  { %v4256_v61 = vpop.eup %4255  ;;  %v3335_v27 = vxor.u32 2147483648, %v4254_v16  ;;  %v1794_v31 = vsub.s32 32, %v1793_v22  ;;  %v3608_v44 = vadd.s32 536870912, %v3607_v53  ;;  %v1972_v13 = vsel %vm6923_vm8, 0, %v1970_v63  ;;  %p4323_p2 = scmp.ne.s32.totalorder %s3689_s21, %s4322_s24  ;;  %p4328_p4 = scmp.lt.s32.totalorder %s4322_s24, %s4322_s24 }
 0x3f9   :  { %v3332_v24 = vxor.u32 2147483648, %v4256_v61  ;;  %v1958_v17 = vor.u32 %v1957_v36, %v1956_v1  ;;  %v1961_v60 = vshll.u32 %v1960_v23, 23  ;;  %v1787_v59 = vor.u32 8388608, %v1786_v9 }
 0x3fa   :  { %v3336_v3 = vsel %vm3334_vm4, %v3335_v27, %v4256_v61  ;;  %v6931_v11 = vshrl.u32 %v3608_v44, 30  ;;  %v1792_v47 = vshrl.u32 %v1791_v21, 5  ;;  %v1797_v51 = vshrl.u32 %v4355_v37, %v1794_v31  ;;  %p4329_p5 = por %p4328_p4, %p4327_p3 }
 0x3fb   :  { %v3333_v62 = vsel %vm3331_vm9, %v4254_v16, %v3332_v24  ;;  %v1962_v5 = vor.u32 4788187, %v1961_v60  ;;  %v1965_v18 = vcvt.s32.f32 %v1958_v17  ;;  %v1800_v57 = vshrl.u32 %v4356_v39, %v1794_v31 }
 0x3fc   :  { %v3337_v20 = vsel %vm3330_vm10, %v3333_v62, %v3336_v3  ;;  %v1803_v15 = vshrl.u32 %v4357_v41, %v1794_v31  ;;  %v3610_v6 = vshll.u32 %v6931_v11, 30  ;;  %v1802_v7 = vshll.u32 %v4356_v39, %v1793_v22  ;;  %p4330_p6 = pnand %p4329_p5, %p4323_p2 }
 0x3fd   :  { %v3338_v42 = vsel %vm3327_vm11, nan, %v3337_v20  ;;  %v1963_v12 = vand.u32 2147483647, %v1962_v5  ;;  %v1806_v54 = vshrl.u32 %v4358_v43, %v1794_v31  ;;  %v1796_v30 = vshll.u32 %v4354_v33, %v1793_v22 }
 0x3fe   :  { %3679 = vst [vmem:[#allocation7 + $0xe0] sm:$0xff] %v3338_v42  ;;  %v1799_v10 = vshll.u32 %v4355_v37, %v1793_v22  ;;  %v1805_v40 = vshll.u32 %v4357_v41, %v1793_v22  ;;  %v1809_v48 = vshrl.u32 %v4359_v50, %v1794_v31  ;;  %v6943_v55 = vsub.s32 %v3607_v53, %v3610_v6 }
 0x3ff   :  { %v1966_v35 = vmul.f32 %v1965_v18, %v1963_v12  ;;  %v1804_v46 = vor.u32 %v1803_v15, %v1802_v7  ;;  %v6949_v19 = vadd.f32 %v4277_v26, %v6501_v4  ;;  %v1798_v0 = vor.u32 %v1797_v51, %v1796_v30 }
 0x400   :  { %v1801_v32 = vor.u32 %v1800_v57, %v1799_v10  ;;  %v1807_v25 = vor.u32 %v1806_v54, %v1805_v40  ;;  %v1808_v14 = vshll.u32 %v4358_v43, %v1793_v22  ;;  %v1976_v9 = vadd.s32 3, %v1972_v13 }
 0x401   :  { %v1967_v34 = vxor.u32 2147483648, %v1966_v35  ;;  %v3613_v21 = vsub.s32 0, %v6943_v55  ;;  %v1827_v16 = vshll.u32 %v1787_v59, 8  ;;  %v1795_v36 = vshrl.u32 %v4354_v33, %v1794_v31 }
 0x402   :  { %v1810_v4 = vor.u32 %v1809_v48, %v1808_v14  ;;  %vm1814_vm12 = vcmp.lt.s32.totalorder %v1792_v47, 4  ;;  %vm1811_vm13 = vcmp.lt.s32.totalorder %v1792_v47, 1  ;;  %vm1812_vm14 = vcmp.lt.s32.totalorder %v1792_v47, 2 }
 0x403   :  { %v1968_v56 = vsel %vm1885_vm5, %v1967_v34, %v1966_v35  ;;  %v3827_v23 = vmin.u32 %v3613_v21, %v6943_v55  ;;  %v1816_v61 = vsel %vm1814_vm12, %v1804_v46, 2102212464  ;;  %v1819_v27 = vsel %vm1811_vm13, %v1798_v0, %v1801_v32 }
 0x404   :  { %v1971_v1 = vsel %vm6923_vm8, %v6720_v52, %v1968_v56  ;;  %v1820_v63 = vsel %vm1814_vm12, %v1807_v25, 920167782  ;;  %vm1813_vm15 = vcmp.lt.s32.totalorder %v1792_v47, 3  ;;  %v1815_v22 = vsel %vm1811_vm13, %v1795_v36, %v1798_v0 }
 0x405   :  { %4257 = vcosq.f32 %v1971_v1  ;;  %v3615_v28 = vclz %v3827_v23  ;;  %v1823_v24 = vsel %vm1811_vm13, %v1801_v32, %v1804_v46  ;;  %v1817_v17 = vsel %vm1813_vm15, %v1801_v32, %v1816_v61 }
 0x406   :  { %4259 = vsinq.f32 %v1971_v1  ;;  %v1821_v60 = vsel %vm1813_vm15, %v1804_v46, %v1820_v63  ;;  %v1824_v53 = vsel %vm1814_vm12, %v1810_v4, 1326507024  ;;  %v3446_v3 = vand.u32 2139095040, %v6949_v19 }
 0x407   :  { %v1977_v29 = vand.u32 3, %v1976_v9  ;;  %v3828_v31 = vadd.s32 4294967294, %v3615_v28  ;;  %v1822_v62 = vsel %vm1812_vm14, %v1819_v27, %v1821_v60  ;;  %v1825_v5 = vsel %vm1813_vm15, %v1807_v25, %v1824_v53 }
 0x408   :  { %v1826_v44 = vsel %vm1812_vm14, %v1823_v24, %v1825_v5  ;;  %v6963_v20 = vmul.u32.u64.low %v1827_v16, %v1822_v62  ;;  %v6964_v13 = vmul.u32.u64.high %v1827_v16, %v1822_v62, %v6963_v20  ;;  %v3447_v59 = vshrl.u32 %v3446_v3, 23 }
 0x409   :  { %vm3829_vm0 = vcmp.lt.s32.totalorder %v3828_v31, 0  ;;  %v1818_v42 = vsel %vm1812_vm14, %v1815_v22, %v1817_v17  ;;  %v6968_v12 = vmul.u32.u64.low %v1827_v16, %v1826_v44  ;;  %v6969_v18 = vmul.u32.u64.high %v1827_v16, %v1826_v44, %v6968_v12 }
 0x40a   :  { %v3618_v51 = vsel %vm3829_vm0, 0, %v3828_v31  ;;  %v3822_v57 = vadd.s32 4294967169, %v3447_v59  ;;  %vm3549_vm1 = vcmp.lt.s32.totalorder %v6775_v38, 0  ;;  %v3603_v15 = vadd.s32 %v6896_v2, %v6901_v45 }
 0x40b   :  { %v3619_v35 = vsub.s32 32, %v3618_v51  ;;  %v3623_v6 = vsub.s32 4294967266, %v3618_v51  ;;  %vm1982_vm2 = vcmp.eq.s32.totalorder %v1977_v29, 2  ;;  %v1834_v7 = vmul.u32 %v1827_v16, %v1818_v42 }
 0x40c   :  { %v1837_v54 = vadd.s32 1, %v6964_v13  ;;  %v3453_v30 = vadd.s32 1, %v3822_v57  ;;  %v3620_v47 = vshll.u32 %v6943_v55, %v3618_v51  ;;  %vm1836_vm3 = vc.u32 %v6969_v18, %v6963_v20 }
 0x40d   :  { %v3621_v40 = vshrl.u32 %v3603_v15, %v3619_v35  ;;  %v3624_v48 = vadd.s32 127, %v3623_v6  ;;  %v3633_v26 = vsub.s32 4, %v6931_v11  ;;  %vm1979_vm5 = vcmp.eq.s32.totalorder %v1977_v29, 0 }
 0x40e   :  { %v1838_v2 = vsel %vm1836_vm3, %v1837_v54, %v6964_v13  ;;  %vm3454_vm4 = vcmp.gt.s32.totalorder %v3453_v30, 0  ;;  %v3443_v55 = vand.u32 2147483647, %v6949_v19  ;;  %vm1978_vm6 = vcmp.lt.s32.totalorder %v1977_v29, 2 }
 0x40f   :  { %v4258_v10 = vpop.eup %4257  ;;  %v3622_v0 = vor.u32 %v3621_v40, %v3620_v47  ;;  %v3625_v32 = vshll.u32 %v3624_v48, 23  ;;  %v1839_v25 = vadd.s32 %v1838_v2, %v1834_v7  ;;  %v3455_v56 = vsel %vm3454_vm4, %v3453_v30, 0 }
 0x410   :  { %v4260_v34 = vpop.eup %4259  ;;  %v1983_v46 = vxor.u32 2147483648, %v4258_v10  ;;  %vm1975_vm7 = vweird.f32 %v6720_v52  ;;  %v3634_v36 = vsel %vm3549_vm1, %v3633_v26, %v6931_v11  ;;  %v3457_v4 = vand.u32 31, %v3455_v56 }
 0x411   :  { %v1980_v45 = vxor.u32 2147483648, %v4260_v34  ;;  %v3626_v21 = vor.u32 4788187, %v3625_v32  ;;  %v1840_v16 = vadd.s32 536870912, %v1839_v25  ;;  %v3629_v27 = vcvt.s32.f32 %v3622_v0 }
 0x412   :  { %v1984_v14 = vsel %vm1982_vm2, %v1983_v46, %v4260_v34  ;;  %vm6990_vm9 = vcmp.le.f32.partialorder %v3547_v58, 0.7853982  ;;  %v3450_v52 = vand.u32 8388607, %v3443_v55  ;;  %v3458_v22 = vsub.s32 32, %v3457_v4 }
 0x413   :  { %v1981_v9 = vsel %vm1979_vm5, %v4258_v10, %v1980_v45  ;;  %v3627_v61 = vand.u32 2147483647, %v3626_v21  ;;  %v6986_v63 = vshrl.u32 %v1840_v16, 30  ;;  %v3636_v11 = vsel %vm6990_vm9, 0, %v3634_v36 }
 0x414   :  { %v1985_v1 = vsel %vm1978_vm6, %v1981_v9, %v1984_v14  ;;  %v3460_v60 = vshll.u32 %v4354_v33, %v3457_v4  ;;  %v3461_v53 = vshrl.u32 %v4355_v37, %v3458_v22  ;;  %v3463_v3 = vshll.u32 %v4355_v37, %v3457_v4 }
 0x415   :  { %v1986_v23 = vsel %vm1975_vm7, nan, %v1985_v1  ;;  %v3630_v24 = vmul.f32 %v3629_v27, %v3627_v61  ;;  %v1842_v17 = vshll.u32 %v6986_v63, 30  ;;  %v3464_v58 = vshrl.u32 %v4356_v39, %v3458_v22 }
 0x416   :  { %3666 = vst [vmem:[#allocation7 + $0x78] sm:$0xff] %v1986_v23  ;;  %v3467_v29 = vshrl.u32 %v4357_v41, %v3458_v22  ;;  %v3466_v5 = vshll.u32 %v4356_v39, %v3457_v4  ;;  %v3470_v44 = vshrl.u32 %v4358_v43, %v3458_v22  ;;  %v3451_v13 = vor.u32 8388608, %v3450_v52 }
 0x417   :  { %v3631_v31 = vxor.u32 2147483648, %v3630_v24  ;;  %v1843_v62 = vsub.s32 %v1839_v25, %v1842_v17  ;;  %v3456_v59 = vshrl.u32 %v3455_v56, 5  ;;  %v3462_v42 = vor.u32 %v3461_v53, %v3460_v60 }
 0x418   :  { %v3469_v12 = vshll.u32 %v4357_v41, %v3457_v4  ;;  %v3465_v37 = vor.u32 %v3464_v58, %v3463_v3  ;;  %v3468_v15 = vor.u32 %v3467_v29, %v3466_v5  ;;  %v3472_v39 = vshll.u32 %v4358_v43, %v3457_v4 }
 0x419   :  { %v3632_v51 = vsel %vm3549_vm1, %v3631_v31, %v3630_v24  ;;  %v1845_v57 = vsub.s32 0, %v1843_v62  ;;  %v3473_v7 = vshrl.u32 %v4359_v50, %v3458_v22  ;;  %v3640_v30 = vadd.s32 3, %v3636_v11 }
 0x41a   :  { %v3635_v35 = vsel %vm6990_vm9, %v6775_v38, %v3632_v51  ;;  %v3471_v6 = vor.u32 %v3470_v44, %v3469_v12  ;;  %v3491_v10 = vshll.u32 %v3451_v13, 8  ;;  %v3459_v40 = vshrl.u32 %v4354_v33, %v3458_v22 }
 0x41b   :  { %4261 = vcosq.f32 %v3635_v35  ;;  %v3759_v54 = vmin.u32 %v1845_v57, %v1843_v62  ;;  %v3474_v41 = vor.u32 %v3473_v7, %v3472_v39  ;;  %vm3475_vm8 = vcmp.lt.s32.totalorder %v3456_v59, 1 }
 0x41c   :  { %4263 = vsinq.f32 %v3635_v35  ;;  %vm3478_vm10 = vcmp.lt.s32.totalorder %v3456_v59, 4  ;;  %vm3477_vm11 = vcmp.lt.s32.totalorder %v3456_v59, 3  ;;  %v3483_v34 = vsel %vm3475_vm8, %v3462_v42, %v3465_v37 }
 0x41d   :  { %v1847_v47 = vclz %v3759_v54  ;;  %v3480_v48 = vsel %vm3478_vm10, %v3468_v15, 2102212464  ;;  %v3484_v46 = vsel %vm3478_vm10, %v3471_v6, 920167782  ;;  %vm3476_vm12 = vcmp.lt.s32.totalorder %v3456_v59, 2 }
 0x41e   :  { %v3485_v43 = vsel %vm3477_vm11, %v3468_v15, %v3484_v46  ;;  %v3487_v2 = vsel %vm3475_vm8, %v3465_v37, %v3468_v15  ;;  %v3479_v50 = vsel %vm3475_vm8, %v3459_v40, %v3462_v42  ;;  %v3481_v45 = vsel %vm3477_vm11, %v3465_v37, %v3480_v48 }
 0x41f   :  { %v3760_v26 = vadd.s32 4294967294, %v1847_v47  ;;  %v3486_v0 = vsel %vm3476_vm12, %v3483_v34, %v3485_v43  ;;  %v3488_v32 = vsel %vm3478_vm10, %v3474_v41, 1326507024  ;;  %v3641_v21 = vand.u32 3, %v3640_v30 }
 0x420   :  { %v3489_v25 = vsel %vm3477_vm11, %v3471_v6, %v3488_v32  ;;  %v7016_v14 = vmul.u32.u64.low %v3491_v10, %v3486_v0  ;;  %v7017_v56 = vmul.u32.u64.high %v3491_v10, %v3486_v0, %v7016_v14  ;;  %v1835_v16 = vadd.s32 %v6963_v20, %v6969_v18 }
 0x421   :  { %vm3761_vm13 = vcmp.lt.s32.totalorder %v3760_v26, 0  ;;  %v3490_v9 = vsel %vm3476_vm12, %v3487_v2, %v3489_v25  ;;  %v3482_v4 = vsel %vm3476_vm12, %v3479_v50, %v3481_v45  ;;  %vm3646_vm14 = vcmp.eq.s32.totalorder %v3641_v21, 2 }
 0x422   :  { %v1850_v33 = vsel %vm3761_vm13, 0, %v3760_v26  ;;  %v7024_v23 = vmul.u32.u64.low %v3491_v10, %v3490_v9  ;;  %v7025_v61 = vmul.u32.u64.high %v3491_v10, %v3490_v9, %v7024_v23  ;;  %v3501_v24 = vadd.s32 1, %v7017_v56 }
 0x423   :  { %v1851_v1 = vsub.s32 32, %v1850_v33  ;;  %v1855_v36 = vsub.s32 4294967266, %v1850_v33  ;;  %v1852_v28 = vshll.u32 %v1843_v62, %v1850_v33  ;;  %vm3643_vm15 = vcmp.eq.s32.totalorder %v3641_v21, 0 }
 0x424   :  { %v3498_v18 = vmul.u32 %v3491_v10, %v3482_v4  ;;  %vm3500_vm0 = vc.u32 %v7025_v61, %v7016_v14  ;;  %vm3642_vm1 = vcmp.lt.s32.totalorder %v3641_v21, 2  ;;  %vm3639_vm2 = vweird.f32 %v6775_v38 }
 0x425   :  { %v4262_v27 = vpop.eup %4261  ;;  %v1853_v52 = vshrl.u32 %v1835_v16, %v1851_v1  ;;  %v1856_v22 = vadd.s32 127, %v1855_v36  ;;  %v3502_v31 = vsel %vm3500_vm0, %v3501_v24, %v7017_v56  ;;  %v1865_v51 = vsub.s32 4, %v6986_v63 }
 0x426   :  { %v4264_v11 = vpop.eup %4263  ;;  %v3647_v17 = vxor.u32 2147483648, %v4262_v27  ;;  %v3503_v5 = vadd.s32 %v3502_v31, %v3498_v18  ;;  %vm1781_vm3 = vcmp.lt.s32.totalorder %v6788_v49, 0  ;;  %vm1780_vm4 = vcmp.le.f32.partialorder %v1779_v8, 0.7853982 }
 0x427   :  { %v3644_v60 = vxor.u32 2147483648, %v4264_v11  ;;  %v1854_v53 = vor.u32 %v1853_v52, %v1852_v28  ;;  %v1857_v3 = vshll.u32 %v1856_v22, 23  ;;  %v1866_v38 = vsel %vm1781_vm3, %v1865_v51, %v6986_v63 }
 0x428   :  { %v3648_v20 = vsel %vm3646_vm14, %v3647_v17, %v4264_v11  ;;  %v3504_v42 = vadd.s32 536870912, %v3503_v5  ;;  %v1868_v7 = vsel %vm1780_vm4, 0, %v1866_v38  ;;  %v3499_v63 = vadd.s32 %v7016_v14, %v7025_v61 }
 0x429   :  { %v3645_v58 = vsel %vm3643_vm15, %v4262_v27, %v3644_v60  ;;  %v1858_v29 = vor.u32 4788187, %v1857_v3  ;;  %v1861_v59 = vcvt.s32.f32 %v1854_v53  ;;  %v1872_v41 = vadd.s32 3, %v1868_v7 }
 0x42a   :  { %v3649_v62 = vsel %vm3642_vm1, %v3645_v58, %v3648_v20  ;;  %v3505_v57 = vshrl.u32 %v3504_v42, 30  ;;  %vm1871_vm8 = vweird.f32 %v6788_v49  ;;  %vm3445_vm10 = vcmp.lt.s32.totalorder %v6949_v19, 0 }
 0x42b   :  { %v3650_v44 = vsel %vm3639_vm2, nan, %v3649_v62  ;;  %v1859_v13 = vand.u32 2147483647, %v1858_v29  ;;  %v1873_v40 = vand.u32 3, %v1872_v41  ;;  %vm3444_vm11 = vcmp.le.f32.partialorder %v3443_v55, 0.7853982 }
 0x42c   :  { %3682 = vst [vmem:[#allocation7 + $0xf8] sm:$0xff] %v3650_v44  ;;  %v3506_v15 = vshll.u32 %v3505_v57, 30  ;;  %v3529_v4 = vsub.s32 4, %v3505_v57  ;;  %vm3535_vm15 = vweird.f32 %v6949_v19 }
 0x42d   :  { %v1862_v12 = vmul.f32 %v1861_v59, %v1859_v13  ;;  %vm1875_vm6 = vcmp.eq.s32.totalorder %v1873_v40, 0  ;;  %vm1878_vm7 = vcmp.eq.s32.totalorder %v1873_v40, 2  ;;  %vm1874_vm9 = vcmp.lt.s32.totalorder %v1873_v40, 2 }
 0x42e   :  { %v3507_v39 = vsub.s32 %v3503_v5, %v3506_v15  ;;  %v3530_v27 = vsel %vm3445_vm10, %v3529_v4, %v3505_v57 }
 0x42f   :  { %v1863_v37 = vxor.u32 2147483648, %v1862_v12  ;;  %v3532_v28 = vsel %vm3444_vm11, 0, %v3530_v27 }
 0x430   :  { %v3509_v54 = vsub.s32 0, %v3507_v39  ;;  %v3536_v52 = vadd.s32 3, %v3532_v28 }
 0x431   :  { %v1864_v35 = vsel %vm1781_vm3, %v1863_v37, %v1862_v12 }
 0x432   :  { %v1867_v6 = vsel %vm1780_vm4, %v6788_v49, %v1864_v35  ;;  %v3823_v30 = vmin.u32 %v3509_v54, %v3507_v39  ;;  %v3537_v22 = vand.u32 3, %v3536_v52 }
 0x433   :  { %4265 = vcosq.f32 %v1867_v6 }
 0x434   :  { %4267 = vsinq.f32 %v1867_v6  ;;  %v3511_v10 = vclz %v3823_v30  ;;  %vm3542_vm12 = vcmp.eq.s32.totalorder %v3537_v22, 2  ;;  %vm3539_vm13 = vcmp.eq.s32.totalorder %v3537_v22, 0 }
 0x435   :  { %vm3538_vm14 = vcmp.lt.s32.totalorder %v3537_v22, 2 }
 0x436   :  { %v3824_v47 = vadd.s32 4294967294, %v3511_v10 }
 0x438   :  { %vm3825_vm5 = vcmp.lt.s32.totalorder %v3824_v47, 0 }
 0x439   :  { %v3514_v34 = vsel %vm3825_vm5, 0, %v3824_v47 }
 0x43a   :  { %v3515_v26 = vsub.s32 32, %v3514_v34  ;;  %v3519_v43 = vsub.s32 4294967266, %v3514_v34  ;;  %v3516_v45 = vshll.u32 %v3507_v39, %v3514_v34 }
 0x43c   :  { %v3517_v0 = vshrl.u32 %v3499_v63, %v3515_v26  ;;  %v3520_v32 = vadd.s32 127, %v3519_v43 }
 0x43d   :  { %v4266_v48 = vpop.eup %4265 }
 0x43e   :  { %v4268_v46 = vpop.eup %4267  ;;  %v1879_v8 = vxor.u32 2147483648, %v4266_v48  ;;  %v3518_v33 = vor.u32 %v3517_v0, %v3516_v45  ;;  %v3521_v9 = vshll.u32 %v3520_v32, 23 }
 0x43f   :  { %v1876_v2 = vxor.u32 2147483648, %v4268_v46 }
 0x440   :  { %v1880_v50 = vsel %vm1878_vm7, %v1879_v8, %v4268_v46  ;;  %v3522_v16 = vor.u32 4788187, %v3521_v9  ;;  %v3525_v1 = vcvt.s32.f32 %v3518_v33 }
 0x441   :  { %v1877_v25 = vsel %vm1875_vm6, %v4266_v48, %v1876_v2 }
 0x442   :  { %v1881_v56 = vsel %vm1874_vm9, %v1877_v25, %v1880_v50  ;;  %v3523_v14 = vand.u32 2147483647, %v3522_v16 }
 0x443   :  { %v1882_v21 = vsel %vm1871_vm8, nan, %v1881_v56 }
 0x444   :  { %3665 = vst [vmem:[#allocation7 + $0x70] sm:$0xff] %v1882_v21  ;;  %v3526_v36 = vmul.f32 %v3525_v1, %v3523_v14 }
 0x446   :  { %v3527_v23 = vxor.u32 2147483648, %v3526_v36 }
 0x448   :  { %v3528_v61 = vsel %vm3445_vm10, %v3527_v23, %v3526_v36 }
 0x449   :  { %v3531_v49 = vsel %vm3444_vm11, %v6949_v19, %v3528_v61 }
 0x44a   :  { %4269 = vcosq.f32 %v3531_v49 }
 0x44b   :  { %4271 = vsinq.f32 %v3531_v49 }
 0x454   :  { %v4270_v24 = vpop.eup %4269 }
 0x455   :  { %v4272_v11 = vpop.eup %4271  ;;  %v3543_v17 = vxor.u32 2147483648, %v4270_v24 }
 0x456   :  { %v3540_v60 = vxor.u32 2147483648, %v4272_v11 }
 0x457   :  { %v3544_v53 = vsel %vm3542_vm12, %v3543_v17, %v4272_v11 }
 0x458   :  { %v3541_v55 = vsel %vm3539_vm13, %v4270_v24, %v3540_v60 }
 0x459   :  { %v3545_v3 = vsel %vm3538_vm14, %v3541_v55, %v3544_v53 }
 0x45a   :  { %v3546_v20 = vsel %vm3535_vm15, nan, %v3545_v3 }
 0x45b   :  { %3681 = vst [vmem:[#allocation7 + $0xf0] sm:$0xff] %v3546_v20 }
 0x45c   :  { %4333 = shalt.err (!%p4330_p6)
}
 0x45d   :  { %s4334_s27 = scalar_lea.hbm %s7064_s3, 4096 }
 0x45e   :  { %p4335_p7 = scmp.ne.s32.totalorder %s7064_s3, %s4334_s27  ;;  %p4338_p8 = scmp.lt.u32.totalorder %s4334_s27, %s7064_s3 }
 0x460   :  { %p4340_p9 = pnand %p4338_p8, %p4335_p7 }
 0x462   :  { %4343 = shalt.err (!%p4340_p9)
}
 0x463   :  { %3694 = dma.vmem_to_hbm [thread:$0]  %s3689_s21, 4096, %s7064_s3, [#allocation4], %s4351_s22, %s4351_s22, %s4352_s23  }
 0x464   :  { %4348 = dma.done.wait [#allocation4], 4096  }
 0x465   :  { %4349 = vsyncadd [#allocation4], 4294963200 }
 0x466   :  { %3698 = vsyncpa [#allocation3], 1 }
 0x467   :  { %3699 = vsyncpa [#allocation6], 1 }
 0x468   :  { %3700 = vsyncpa [#allocation4], 1 }

</bundles_post_ra>
